<compile_context>
chip_gen: v7x
topology: tpu7x:2x2x1
jax: 0.10.0
libtpu: 0.0.40
codegen_flags: <defaults>
</compile_context>

<pallas_src>
import functools

import jax
import jax.numpy as jnp
from jax import lax
from jax.experimental import pallas as pl
from jax.experimental.pallas import tpu as pltpu


# ----------------------------------------------------------------------------
# Pallas kernel: T_CHUNK LSTM steps per grid iteration. Gate order: i, f, g, o.
# gates_t = xgates_t + h_{t-1} @ W_hh^T   (xgates precomputed outside the loop)
# ----------------------------------------------------------------------------
def lstm_recurrent_kernel(xg_ref, whh_ref, hs_ref, hn_ref, cn_ref, h_sc, c_sc):
    t_chunk = xg_ref.shape[0]
    H = h_sc.shape[-1]
    tc = pl.program_id(1)                      # time-chunk index (serial axis)

    # hidden=None in the PyTorch forward -> zero state at the first chunk of
    # every batch tile (grid order is batch-major, time-minor).
    @pl.when(tc == 0)
    def _():
        h_sc[...] = jnp.zeros_like(h_sc)
        c_sc[...] = jnp.zeros_like(c_sc)

    whh = whh_ref[...]                         # (H, 4H), resident across grid

    def step(j, carry):
        h, c = carry
        gates = xg_ref[j] + jnp.dot(h, whh, preferred_element_type=jnp.float32)
        # H is a multiple of 128 at real sizes -> these slices are lane-aligned.
        i_g = jax.nn.sigmoid(gates[:, 0:H])
        f_g = jax.nn.sigmoid(gates[:, H:2 * H])
        g_g = jnp.tanh(gates[:, 2 * H:3 * H])
        o_g = jax.nn.sigmoid(gates[:, 3 * H:4 * H])
        c_new = f_g * c + i_g * g_g
        h_new = o_g * jnp.tanh(c_new)
        hs_ref[j] = h_new.astype(hs_ref.dtype)  # contiguous (B_tile, H) store
        return h_new, c_new

    # Carry (h, c) in vregs across the unrolled chunk; touch scratch once.
    h_fin, c_fin = lax.fori_loop(0, t_chunk, step, (h_sc[...], c_sc[...]),
                                 unroll=True)
    h_sc[...] = h_fin
    c_sc[...] = c_fin

    # Final-state outputs: write only on the last chunk (saves 2 full-block
    # stores per grid step on the serial path).
    @pl.when(tc == pl.num_programs(1) - 1)
    def _():
        hn_ref[...] = h_fin.astype(hn_ref.dtype)
        cn_ref[...] = c_fin.astype(cn_ref.dtype)


# ----------------------------------------------------------------------------
# Wrapper: embedding gather + hoisted input projection, Pallas recurrence,
# hoisted FC projection (emitted batch-first, no transpose pass).
# ----------------------------------------------------------------------------
@functools.partial(jax.jit, static_argnames=("t_chunk", "b_tile"))
def lstm_sequence_model_forward(tokens, params, *, t_chunk=8, b_tile=None):
    emb = jnp.take(params["embedding"], tokens, axis=0)      # (B, T, E) gather
    B, T, E = emb.shape
    H = params["whh"].shape[0]
    V = params["wfc"].shape[1]
    if b_tile is None:
        b_tile = B
    assert T % t_chunk == 0 and B % b_tile == 0

    # Hoisted, non-recurrent input projection over all T*B rows at once.
    # Output written time-major (T, B, 4H); the layout change is fused into the
    # matmul's output store (no separate transpose pass over HBM).
    b_gates = (params["b_ih"] + params["b_hh"]).astype(jnp.float32)
    xgates = (jnp.einsum("bte,eg->tbg", emb.astype(jnp.float32), params["wih"],
                         preferred_element_type=jnp.float32)
              + b_gates[None, None, :])                       # (T, B, 4H)

    num_b = B // b_tile
    num_t = T // t_chunk

    grid_spec = pltpu.PrefetchScalarGridSpec(
        num_scalar_prefetch=0,
        grid=(num_b, num_t),                                  # (parallel, serial)
        in_specs=[
            pl.BlockSpec((t_chunk, b_tile, 4 * H), lambda b, c: (c, b, 0)),
            pl.BlockSpec((H, 4 * H), lambda b, c: (0, 0)),    # W_hh^T resident
        ],
        out_specs=[
            pl.BlockSpec((t_chunk, b_tile, H), lambda b, c: (c, b, 0)),  # h_t
            pl.BlockSpec((b_tile, H), lambda b, c: (b, 0)),   # h_n (resident)
            pl.BlockSpec((b_tile, H), lambda b, c: (b, 0)),   # c_n (resident)
        ],
        scratch_shapes=[
            pltpu.VMEM((b_tile, H), jnp.float32),             # h state
            pltpu.VMEM((b_tile, H), jnp.float32),             # c state
        ],
    )

    hs_tbh, h_n, c_n = pl.pallas_call(
        lstm_recurrent_kernel,
        out_shape=(
            jax.ShapeDtypeStruct((T, B, H), jnp.float32),
            jax.ShapeDtypeStruct((B, H), jnp.float32),
            jax.ShapeDtypeStruct((B, H), jnp.float32),
        ),
        grid_spec=grid_spec,
        compiler_params=pltpu.CompilerParams(
            # batch tiles are independent -> megacore-shardable on v7x;
            # the time axis carries the recurrence -> sequential.
            dimension_semantics=("parallel", "arbitrary"),
            # Only W_hh (+ small xgates/hs chunks) is VMEM-resident now, so this
            # fits comfortably within v7x's 64 MiB physical VMEM as well.
            vmem_limit_bytes=32 * 1024 * 1024,
        ),
    )(xgates, params["whh"])

    # TODO(synk): dropout(p=0.2) is identity here (eval-mode semantics); the
    # training-mode stochastic mask is not implemented.

    # Hoisted FC: one big (T*B, H) @ (H, V) projection over all timesteps,
    # producing batch-first (B, T, V) directly (transpose fused into the matmul
    # output layout -> no extra HBM pass).
    logits = (jnp.einsum("tbh,hv->btv", hs_tbh, params["wfc"],
                         preferred_element_type=jnp.float32)
              + params["b_fc"][None, None, :])
    return logits, (h_n[None, ...], c_n[None, ...])


# ----------------------------------------------------------------------------
# Pure-JAX reference (mirrors torch nn.LSTM + nn.Linear math) for validation.
# ----------------------------------------------------------------------------
def reference_forward(tokens, params):
    emb = jnp.take(params["embedding"], tokens, axis=0)
    B, T, E = emb.shape
    H = params["whh"].shape[0]

    def step(carry, x_t):
        h, c = carry
        gates = (x_t @ params["wih"] + h @ params["whh"]
                 + params["b_ih"] + params["b_hh"])
        i_g, f_g, g_g, o_g = jnp.split(gates, 4, axis=-1)
        i_g = jax.nn.sigmoid(i_g)
        f_g = jax.nn.sigmoid(f_g)
        g_g = jnp.tanh(g_g)
        o_g = jax.nn.sigmoid(o_g)
        c = f_g * c + i_g * g_g
        h = o_g * jnp.tanh(c)
        return (h, c), h

    init = (jnp.zeros((B, H), jnp.float32), jnp.zeros((B, H), jnp.float32))
    (h_n, c_n), hs = jax.lax.scan(step, init, jnp.transpose(emb, (1, 0, 2)))
    out = jnp.einsum("tbh,hv->tbv", hs, params["wfc"]) + params["b_fc"]
    return jnp.transpose(out, (1, 0, 2)), (h_n[None], c_n[None])


# ----------------------------------------------------------------------------
# Deterministic parameter init (shapes from the nn.Module __init__).
# Weights stored transposed vs torch so all matmuls are plain row-major dots.
# ----------------------------------------------------------------------------
def init_params(key, vocab_size, embedding_dim, hidden_dim):
    ks = jax.random.split(key, 7)
    scale = 0.1
    return {
        "embedding": scale * jax.random.normal(ks[0], (vocab_size, embedding_dim), jnp.float32),
        "wih": scale * jax.random.normal(ks[1], (embedding_dim, 4 * hidden_dim), jnp.float32),
        "whh": scale * jax.random.normal(ks[2], (hidden_dim, 4 * hidden_dim), jnp.float32),
        "b_ih": scale * jax.random.normal(ks[3], (4 * hidden_dim,), jnp.float32),
        "b_hh": scale * jax.random.normal(ks[4], (4 * hidden_dim,), jnp.float32),
        "wfc": scale * jax.random.normal(ks[5], (hidden_dim, vocab_size), jnp.float32),
        "b_fc": scale * jax.random.normal(ks[6], (vocab_size,), jnp.float32),
    }


if __name__ == "__main__":
    jax.config.update("jax_default_matmul_precision", "highest")

    # Small but tile-aligned shapes: B multiple of 8, H/V multiples of 128 so
    # every Pallas block is lane-dense and the gate slices are vreg-aligned.
    vocab_size, embedding_dim, hidden_dim = 128, 64, 128
    B, T = 8, 16

    key = jax.random.PRNGKey(0)
    k_param, k_tok = jax.random.split(key)
    params = init_params(k_param, vocab_size, embedding_dim, hidden_dim)
    tokens = jax.random.randint(k_tok, (B, T), 0, vocab_size, dtype=jnp.int32)

    logits, (h_n, c_n) = lstm_sequence_model_forward(tokens, params, t_chunk=8)
    jax.block_until_ready((logits, h_n, c_n))

    ref_logits, (ref_h, ref_c) = reference_forward(tokens, params)
    assert logits.shape == (B, T, vocab_size)
    assert h_n.shape == (1, B, hidden_dim) and c_n.shape == (1, B, hidden_dim)
    assert jnp.allclose(logits, ref_logits, atol=1e-3, rtol=1e-3)
    assert jnp.allclose(h_n, ref_h, atol=1e-3, rtol=1e-3)
    assert jnp.allclose(c_n, ref_c, atol=1e-3, rtol=1e-3)

    print("KERNEL_OK")
</pallas_src>

<mosaic_0001>
module attributes {stable_mosaic.version = 11 : i64} {
  func.func @lstm_recurrent_kernel(%arg0: i32, %arg1: i32, %arg2: memref<8x8x512xf32, #tpu.memory_space<vmem>>, %arg3: memref<128x512xf32, #tpu.memory_space<vmem>>, %arg4: memref<8x8x128xf32, #tpu.memory_space<vmem>>, %arg5: memref<8x128xf32, #tpu.memory_space<vmem>>, %arg6: memref<8x128xf32, #tpu.memory_space<vmem>>, %arg7: memref<8x128xf32, #tpu.memory_space<vmem>>, %arg8: memref<8x128xf32, #tpu.memory_space<vmem>>) attributes {dimension_semantics = [#tpu.dimension_semantics<parallel>, #tpu.dimension_semantics<arbitrary>], iteration_bounds = array<i64: 1, 2>, scalar_prefetch = 0 : i64, scratch_operands = 2 : i64, tpu.core_type = #tpu.core_type<tc>, window_params = [{transform_indices = @transform_0, window_bounds = array<i64: 8, 8, 512>}, {pipeline_mode = #tpu.pipeline_mode<synchronous>, transform_indices = @transform_1, window_bounds = array<i64: 128, 512>}, {transform_indices = @transform_2, window_bounds = array<i64: 8, 8, 128>}, {transform_indices = @transform_3, window_bounds = array<i64: 8, 128>}, {transform_indices = @transform_4, window_bounds = array<i64: 8, 128>}]} {
    %c0_i32 = arith.constant 0 : i32
    %0 = arith.cmpi eq, %arg1, %c0_i32 : i32
    %1 = arith.extui %0 : i1 to i32
    %c0_i32_0 = arith.constant 0 : i32
    %2 = arith.cmpi ne, %1, %c0_i32_0 : i32
    scf.if %2 {
      %cst_76 = arith.constant 0.000000e+00 : f32
      %283 = vector.broadcast %cst_76 : f32 to vector<8x128xf32>
      %c0_77 = arith.constant 0 : index
      %c0_78 = arith.constant 0 : index
      %284 = vector.load %arg7[%c0_77, %c0_78] : memref<8x128xf32, #tpu.memory_space<vmem>>, vector<8x128xf32>
      tpu.vector_store %arg7[%c0_77, %c0_78], %283 {strides = array<i32>} : memref<8x128xf32, #tpu.memory_space<vmem>>, vector<8x128xf32>,
      %cst_79 = arith.constant 0.000000e+00 : f32
      %285 = vector.broadcast %cst_79 : f32 to vector<8x128xf32>
      %c0_80 = arith.constant 0 : index
      %c0_81 = arith.constant 0 : index
      %286 = vector.load %arg8[%c0_80, %c0_81] : memref<8x128xf32, #tpu.memory_space<vmem>>, vector<8x128xf32>
      tpu.vector_store %arg8[%c0_80, %c0_81], %285 {strides = array<i32>} : memref<8x128xf32, #tpu.memory_space<vmem>>, vector<8x128xf32>,
    } else {
    }
    %c0 = arith.constant 0 : index
    %c0_1 = arith.constant 0 : index
    %3 = vector.load %arg3[%c0, %c0_1] : memref<128x512xf32, #tpu.memory_space<vmem>>, vector<128x512xf32>
    %c0_2 = arith.constant 0 : index
    %c0_3 = arith.constant 0 : index
    %4 = vector.load %arg7[%c0_2, %c0_3] : memref<8x128xf32, #tpu.memory_space<vmem>>, vector<8x128xf32>
    %c0_4 = arith.constant 0 : index
    %c0_5 = arith.constant 0 : index
    %5 = vector.load %arg8[%c0_4, %c0_5] : memref<8x128xf32, #tpu.memory_space<vmem>>, vector<8x128xf32>
    %c0_i32_6 = arith.constant 0 : i32
    %6 = arith.index_cast %c0_i32_6 : i32 to index
    %c0_7 = arith.constant 0 : index
    %c0_8 = arith.constant 0 : index
    %7 = vector.load %arg2[%6, %c0_7, %c0_8] : memref<8x8x512xf32, #tpu.memory_space<vmem>>, vector<1x8x512xf32>
    %8 = vector.shape_cast %7 : vector<1x8x512xf32> to vector<8x512xf32>
    %cst = arith.constant dense<0.000000e+00> : vector<8x512xf32>
    %9 = tpu.matmul %4, %3, %cst {dimension_numbers = #tpu.dot_dimension_numbers<[1], [0], [0], [1], [0, 0, 1, 1], [], []>, precision = #tpu.contract_precision<fp32>} : vector<8x128xf32>, vector<128x512xf32>, vector<8x512xf32> -> vector<8x512xf32>
    %10 = arith.addf %8, %9 : vector<8x512xf32>
    %11 = vector.extract_strided_slice %10 {offsets = [0, 0], sizes = [8, 128], strides = [1, 1]} : vector<8x512xf32> to vector<8x128xf32>
    %12 = arith.negf %11 : vector<8x128xf32>
    %13 = math.exp %12 : vector<8x128xf32>
    %cst_9 = arith.constant 1.000000e+00 : f32
    %14 = vector.broadcast %cst_9 : f32 to vector<8x128xf32>
    %15 = arith.addf %14, %13 : vector<8x128xf32>
    %16 = arith.divf %14, %15 : vector<8x128xf32>
    %17 = vector.extract_strided_slice %10 {offsets = [0, 128], sizes = [8, 128], strides = [1, 1]} : vector<8x512xf32> to vector<8x128xf32>
    %18 = arith.negf %17 : vector<8x128xf32>
    %19 = math.exp %18 : vector<8x128xf32>
    %cst_10 = arith.constant 1.000000e+00 : f32
    %20 = vector.broadcast %cst_10 : f32 to vector<8x128xf32>
    %21 = arith.addf %20, %19 : vector<8x128xf32>
    %22 = arith.divf %20, %21 : vector<8x128xf32>
    %23 = vector.extract_strided_slice %10 {offsets = [0, 256], sizes = [8, 128], strides = [1, 1]} : vector<8x512xf32> to vector<8x128xf32>
    %24 = math.tanh %23 : vector<8x128xf32>
    %25 = vector.extract_strided_slice %10 {offsets = [0, 384], sizes = [8, 128], strides = [1, 1]} : vector<8x512xf32> to vector<8x128xf32>
    %26 = arith.negf %25 : vector<8x128xf32>
    %27 = math.exp %26 : vector<8x128xf32>
    %cst_11 = arith.constant 1.000000e+00 : f32
    %28 = vector.broadcast %cst_11 : f32 to vector<8x128xf32>
    %29 = arith.addf %28, %27 : vector<8x128xf32>
    %30 = arith.divf %28, %29 : vector<8x128xf32>
    %31 = arith.mulf %22, %5 : vector<8x128xf32>
    %32 = arith.mulf %16, %24 : vector<8x128xf32>
    %33 = arith.addf %31, %32 : vector<8x128xf32>
    %34 = math.tanh %33 : vector<8x128xf32>
    %35 = arith.mulf %30, %34 : vector<8x128xf32>
    %36 = arith.index_cast %c0_i32_6 : i32 to index
    %c0_12 = arith.constant 0 : index
    %c0_13 = arith.constant 0 : index
    %37 = vector.load %arg4[%36, %c0_12, %c0_13] : memref<8x8x128xf32, #tpu.memory_space<vmem>>, vector<1x8x128xf32>
    %38 = vector.shape_cast %37 : vector<1x8x128xf32> to vector<8x128xf32>
    %39 = vector.shape_cast %35 : vector<8x128xf32> to vector<1x8x128xf32>
    tpu.vector_store %arg4[%36, %c0_12, %c0_13], %39 {strides = array<i32>} : memref<8x8x128xf32, #tpu.memory_space<vmem>>, vector<1x8x128xf32>,
    %c1_i32 = arith.constant 1 : i32
    %40 = arith.index_cast %c1_i32 : i32 to index
    %c0_14 = arith.constant 0 : index
    %c0_15 = arith.constant 0 : index
    %41 = vector.load %arg2[%40, %c0_14, %c0_15] : memref<8x8x512xf32, #tpu.memory_space<vmem>>, vector<1x8x512xf32>
    %42 = vector.shape_cast %41 : vector<1x8x512xf32> to vector<8x512xf32>
    %cst_16 = arith.constant dense<0.000000e+00> : vector<8x512xf32>
    %43 = tpu.matmul %35, %3, %cst_16 {dimension_numbers = #tpu.dot_dimension_numbers<[1], [0], [0], [1], [0, 0, 1, 1], [], []>, precision = #tpu.contract_precision<fp32>} : vector<8x128xf32>, vector<128x512xf32>, vector<8x512xf32> -> vector<8x512xf32>
    %44 = arith.addf %42, %43 : vector<8x512xf32>
    %45 = vector.extract_strided_slice %44 {offsets = [0, 0], sizes = [8, 128], strides = [1, 1]} : vector<8x512xf32> to vector<8x128xf32>
    %46 = arith.negf %45 : vector<8x128xf32>
    %47 = math.exp %46 : vector<8x128xf32>
    %cst_17 = arith.constant 1.000000e+00 : f32
    %48 = vector.broadcast %cst_17 : f32 to vector<8x128xf32>
    %49 = arith.addf %48, %47 : vector<8x128xf32>
    %50 = arith.divf %48, %49 : vector<8x128xf32>
    %51 = vector.extract_strided_slice %44 {offsets = [0, 128], sizes = [8, 128], strides = [1, 1]} : vector<8x512xf32> to vector<8x128xf32>
    %52 = arith.negf %51 : vector<8x128xf32>
    %53 = math.exp %52 : vector<8x128xf32>
    %cst_18 = arith.constant 1.000000e+00 : f32
    %54 = vector.broadcast %cst_18 : f32 to vector<8x128xf32>
    %55 = arith.addf %54, %53 : vector<8x128xf32>
    %56 = arith.divf %54, %55 : vector<8x128xf32>
    %57 = vector.extract_strided_slice %44 {offsets = [0, 256], sizes = [8, 128], strides = [1, 1]} : vector<8x512xf32> to vector<8x128xf32>
    %58 = math.tanh %57 : vector<8x128xf32>
    %59 = vector.extract_strided_slice %44 {offsets = [0, 384], sizes = [8, 128], strides = [1, 1]} : vector<8x512xf32> to vector<8x128xf32>
    %60 = arith.negf %59 : vector<8x128xf32>
    %61 = math.exp %60 : vector<8x128xf32>
    %cst_19 = arith.constant 1.000000e+00 : f32
    %62 = vector.broadcast %cst_19 : f32 to vector<8x128xf32>
    %63 = arith.addf %62, %61 : vector<8x128xf32>
    %64 = arith.divf %62, %63 : vector<8x128xf32>
    %65 = arith.mulf %56, %33 : vector<8x128xf32>
    %66 = arith.mulf %50, %58 : vector<8x128xf32>
    %67 = arith.addf %65, %66 : vector<8x128xf32>
    %68 = math.tanh %67 : vector<8x128xf32>
    %69 = arith.mulf %64, %68 : vector<8x128xf32>
    %70 = arith.index_cast %c1_i32 : i32 to index
    %c0_20 = arith.constant 0 : index
    %c0_21 = arith.constant 0 : index
    %71 = vector.load %arg4[%70, %c0_20, %c0_21] : memref<8x8x128xf32, #tpu.memory_space<vmem>>, vector<1x8x128xf32>
    %72 = vector.shape_cast %71 : vector<1x8x128xf32> to vector<8x128xf32>
    %73 = vector.shape_cast %69 : vector<8x128xf32> to vector<1x8x128xf32>
    tpu.vector_store %arg4[%70, %c0_20, %c0_21], %73 {strides = array<i32>} : memref<8x8x128xf32, #tpu.memory_space<vmem>>, vector<1x8x128xf32>,
    %c2_i32 = arith.constant 2 : i32
    %74 = arith.index_cast %c2_i32 : i32 to index
    %c0_22 = arith.constant 0 : index
    %c0_23 = arith.constant 0 : index
    %75 = vector.load %arg2[%74, %c0_22, %c0_23] : memref<8x8x512xf32, #tpu.memory_space<vmem>>, vector<1x8x512xf32>
    %76 = vector.shape_cast %75 : vector<1x8x512xf32> to vector<8x512xf32>
    %cst_24 = arith.constant dense<0.000000e+00> : vector<8x512xf32>
    %77 = tpu.matmul %69, %3, %cst_24 {dimension_numbers = #tpu.dot_dimension_numbers<[1], [0], [0], [1], [0, 0, 1, 1], [], []>, precision = #tpu.contract_precision<fp32>} : vector<8x128xf32>, vector<128x512xf32>, vector<8x512xf32> -> vector<8x512xf32>
    %78 = arith.addf %76, %77 : vector<8x512xf32>
    %79 = vector.extract_strided_slice %78 {offsets = [0, 0], sizes = [8, 128], strides = [1, 1]} : vector<8x512xf32> to vector<8x128xf32>
    %80 = arith.negf %79 : vector<8x128xf32>
    %81 = math.exp %80 : vector<8x128xf32>
    %cst_25 = arith.constant 1.000000e+00 : f32
    %82 = vector.broadcast %cst_25 : f32 to vector<8x128xf32>
    %83 = arith.addf %82, %81 : vector<8x128xf32>
    %84 = arith.divf %82, %83 : vector<8x128xf32>
    %85 = vector.extract_strided_slice %78 {offsets = [0, 128], sizes = [8, 128], strides = [1, 1]} : vector<8x512xf32> to vector<8x128xf32>
    %86 = arith.negf %85 : vector<8x128xf32>
    %87 = math.exp %86 : vector<8x128xf32>
    %cst_26 = arith.constant 1.000000e+00 : f32
    %88 = vector.broadcast %cst_26 : f32 to vector<8x128xf32>
    %89 = arith.addf %88, %87 : vector<8x128xf32>
    %90 = arith.divf %88, %89 : vector<8x128xf32>
    %91 = vector.extract_strided_slice %78 {offsets = [0, 256], sizes = [8, 128], strides = [1, 1]} : vector<8x512xf32> to vector<8x128xf32>
    %92 = math.tanh %91 : vector<8x128xf32>
    %93 = vector.extract_strided_slice %78 {offsets = [0, 384], sizes = [8, 128], strides = [1, 1]} : vector<8x512xf32> to vector<8x128xf32>
    %94 = arith.negf %93 : vector<8x128xf32>
    %95 = math.exp %94 : vector<8x128xf32>
    %cst_27 = arith.constant 1.000000e+00 : f32
    %96 = vector.broadcast %cst_27 : f32 to vector<8x128xf32>
    %97 = arith.addf %96, %95 : vector<8x128xf32>
    %98 = arith.divf %96, %97 : vector<8x128xf32>
    %99 = arith.mulf %90, %67 : vector<8x128xf32>
    %100 = arith.mulf %84, %92 : vector<8x128xf32>
    %101 = arith.addf %99, %100 : vector<8x128xf32>
    %102 = math.tanh %101 : vector<8x128xf32>
    %103 = arith.mulf %98, %102 : vector<8x128xf32>
    %104 = arith.index_cast %c2_i32 : i32 to index
    %c0_28 = arith.constant 0 : index
    %c0_29 = arith.constant 0 : index
    %105 = vector.load %arg4[%104, %c0_28, %c0_29] : memref<8x8x128xf32, #tpu.memory_space<vmem>>, vector<1x8x128xf32>
    %106 = vector.shape_cast %105 : vector<1x8x128xf32> to vector<8x128xf32>
    %107 = vector.shape_cast %103 : vector<8x128xf32> to vector<1x8x128xf32>
    tpu.vector_store %arg4[%104, %c0_28, %c0_29], %107 {strides = array<i32>} : memref<8x8x128xf32, #tpu.memory_space<vmem>>, vector<1x8x128xf32>,
    %c3_i32 = arith.constant 3 : i32
    %108 = arith.index_cast %c3_i32 : i32 to index
    %c0_30 = arith.constant 0 : index
    %c0_31 = arith.constant 0 : index
    %109 = vector.load %arg2[%108, %c0_30, %c0_31] : memref<8x8x512xf32, #tpu.memory_space<vmem>>, vector<1x8x512xf32>
    %110 = vector.shape_cast %109 : vector<1x8x512xf32> to vector<8x512xf32>
    %cst_32 = arith.constant dense<0.000000e+00> : vector<8x512xf32>
    %111 = tpu.matmul %103, %3, %cst_32 {dimension_numbers = #tpu.dot_dimension_numbers<[1], [0], [0], [1], [0, 0, 1, 1], [], []>, precision = #tpu.contract_precision<fp32>} : vector<8x128xf32>, vector<128x512xf32>, vector<8x512xf32> -> vector<8x512xf32>
    %112 = arith.addf %110, %111 : vector<8x512xf32>
    %113 = vector.extract_strided_slice %112 {offsets = [0, 0], sizes = [8, 128], strides = [1, 1]} : vector<8x512xf32> to vector<8x128xf32>
    %114 = arith.negf %113 : vector<8x128xf32>
    %115 = math.exp %114 : vector<8x128xf32>
    %cst_33 = arith.constant 1.000000e+00 : f32
    %116 = vector.broadcast %cst_33 : f32 to vector<8x128xf32>
    %117 = arith.addf %116, %115 : vector<8x128xf32>
    %118 = arith.divf %116, %117 : vector<8x128xf32>
    %119 = vector.extract_strided_slice %112 {offsets = [0, 128], sizes = [8, 128], strides = [1, 1]} : vector<8x512xf32> to vector<8x128xf32>
    %120 = arith.negf %119 : vector<8x128xf32>
    %121 = math.exp %120 : vector<8x128xf32>
    %cst_34 = arith.constant 1.000000e+00 : f32
    %122 = vector.broadcast %cst_34 : f32 to vector<8x128xf32>
    %123 = arith.addf %122, %121 : vector<8x128xf32>
    %124 = arith.divf %122, %123 : vector<8x128xf32>
    %125 = vector.extract_strided_slice %112 {offsets = [0, 256], sizes = [8, 128], strides = [1, 1]} : vector<8x512xf32> to vector<8x128xf32>
    %126 = math.tanh %125 : vector<8x128xf32>
    %127 = vector.extract_strided_slice %112 {offsets = [0, 384], sizes = [8, 128], strides = [1, 1]} : vector<8x512xf32> to vector<8x128xf32>
    %128 = arith.negf %127 : vector<8x128xf32>
    %129 = math.exp %128 : vector<8x128xf32>
    %cst_35 = arith.constant 1.000000e+00 : f32
    %130 = vector.broadcast %cst_35 : f32 to vector<8x128xf32>
    %131 = arith.addf %130, %129 : vector<8x128xf32>
    %132 = arith.divf %130, %131 : vector<8x128xf32>
    %133 = arith.mulf %124, %101 : vector<8x128xf32>
    %134 = arith.mulf %118, %126 : vector<8x128xf32>
    %135 = arith.addf %133, %134 : vector<8x128xf32>
    %136 = math.tanh %135 : vector<8x128xf32>
    %137 = arith.mulf %132, %136 : vector<8x128xf32>
    %138 = arith.index_cast %c3_i32 : i32 to index
    %c0_36 = arith.constant 0 : index
    %c0_37 = arith.constant 0 : index
    %139 = vector.load %arg4[%138, %c0_36, %c0_37] : memref<8x8x128xf32, #tpu.memory_space<vmem>>, vector<1x8x128xf32>
    %140 = vector.shape_cast %139 : vector<1x8x128xf32> to vector<8x128xf32>
    %141 = vector.shape_cast %137 : vector<8x128xf32> to vector<1x8x128xf32>
    tpu.vector_store %arg4[%138, %c0_36, %c0_37], %141 {strides = array<i32>} : memref<8x8x128xf32, #tpu.memory_space<vmem>>, vector<1x8x128xf32>,
    %c4_i32 = arith.constant 4 : i32
    %142 = arith.index_cast %c4_i32 : i32 to index
    %c0_38 = arith.constant 0 : index
    %c0_39 = arith.constant 0 : index
    %143 = vector.load %arg2[%142, %c0_38, %c0_39] : memref<8x8x512xf32, #tpu.memory_space<vmem>>, vector<1x8x512xf32>
    %144 = vector.shape_cast %143 : vector<1x8x512xf32> to vector<8x512xf32>
    %cst_40 = arith.constant dense<0.000000e+00> : vector<8x512xf32>
    %145 = tpu.matmul %137, %3, %cst_40 {dimension_numbers = #tpu.dot_dimension_numbers<[1], [0], [0], [1], [0, 0, 1, 1], [], []>, precision = #tpu.contract_precision<fp32>} : vector<8x128xf32>, vector<128x512xf32>, vector<8x512xf32> -> vector<8x512xf32>
    %146 = arith.addf %144, %145 : vector<8x512xf32>
    %147 = vector.extract_strided_slice %146 {offsets = [0, 0], sizes = [8, 128], strides = [1, 1]} : vector<8x512xf32> to vector<8x128xf32>
    %148 = arith.negf %147 : vector<8x128xf32>
    %149 = math.exp %148 : vector<8x128xf32>
    %cst_41 = arith.constant 1.000000e+00 : f32
    %150 = vector.broadcast %cst_41 : f32 to vector<8x128xf32>
    %151 = arith.addf %150, %149 : vector<8x128xf32>
    %152 = arith.divf %150, %151 : vector<8x128xf32>
    %153 = vector.extract_strided_slice %146 {offsets = [0, 128], sizes = [8, 128], strides = [1, 1]} : vector<8x512xf32> to vector<8x128xf32>
    %154 = arith.negf %153 : vector<8x128xf32>
    %155 = math.exp %154 : vector<8x128xf32>
    %cst_42 = arith.constant 1.000000e+00 : f32
    %156 = vector.broadcast %cst_42 : f32 to vector<8x128xf32>
    %157 = arith.addf %156, %155 : vector<8x128xf32>
    %158 = arith.divf %156, %157 : vector<8x128xf32>
    %159 = vector.extract_strided_slice %146 {offsets = [0, 256], sizes = [8, 128], strides = [1, 1]} : vector<8x512xf32> to vector<8x128xf32>
    %160 = math.tanh %159 : vector<8x128xf32>
    %161 = vector.extract_strided_slice %146 {offsets = [0, 384], sizes = [8, 128], strides = [1, 1]} : vector<8x512xf32> to vector<8x128xf32>
    %162 = arith.negf %161 : vector<8x128xf32>
    %163 = math.exp %162 : vector<8x128xf32>
    %cst_43 = arith.constant 1.000000e+00 : f32
    %164 = vector.broadcast %cst_43 : f32 to vector<8x128xf32>
    %165 = arith.addf %164, %163 : vector<8x128xf32>
    %166 = arith.divf %164, %165 : vector<8x128xf32>
    %167 = arith.mulf %158, %135 : vector<8x128xf32>
    %168 = arith.mulf %152, %160 : vector<8x128xf32>
    %169 = arith.addf %167, %168 : vector<8x128xf32>
    %170 = math.tanh %169 : vector<8x128xf32>
    %171 = arith.mulf %166, %170 : vector<8x128xf32>
    %172 = arith.index_cast %c4_i32 : i32 to index
    %c0_44 = arith.constant 0 : index
    %c0_45 = arith.constant 0 : index
    %173 = vector.load %arg4[%172, %c0_44, %c0_45] : memref<8x8x128xf32, #tpu.memory_space<vmem>>, vector<1x8x128xf32>
    %174 = vector.shape_cast %173 : vector<1x8x128xf32> to vector<8x128xf32>
    %175 = vector.shape_cast %171 : vector<8x128xf32> to vector<1x8x128xf32>
    tpu.vector_store %arg4[%172, %c0_44, %c0_45], %175 {strides = array<i32>} : memref<8x8x128xf32, #tpu.memory_space<vmem>>, vector<1x8x128xf32>,
    %c5_i32 = arith.constant 5 : i32
    %176 = arith.index_cast %c5_i32 : i32 to index
    %c0_46 = arith.constant 0 : index
    %c0_47 = arith.constant 0 : index
    %177 = vector.load %arg2[%176, %c0_46, %c0_47] : memref<8x8x512xf32, #tpu.memory_space<vmem>>, vector<1x8x512xf32>
    %178 = vector.shape_cast %177 : vector<1x8x512xf32> to vector<8x512xf32>
    %cst_48 = arith.constant dense<0.000000e+00> : vector<8x512xf32>
    %179 = tpu.matmul %171, %3, %cst_48 {dimension_numbers = #tpu.dot_dimension_numbers<[1], [0], [0], [1], [0, 0, 1, 1], [], []>, precision = #tpu.contract_precision<fp32>} : vector<8x128xf32>, vector<128x512xf32>, vector<8x512xf32> -> vector<8x512xf32>
    %180 = arith.addf %178, %179 : vector<8x512xf32>
    %181 = vector.extract_strided_slice %180 {offsets = [0, 0], sizes = [8, 128], strides = [1, 1]} : vector<8x512xf32> to vector<8x128xf32>
    %182 = arith.negf %181 : vector<8x128xf32>
    %183 = math.exp %182 : vector<8x128xf32>
    %cst_49 = arith.constant 1.000000e+00 : f32
    %184 = vector.broadcast %cst_49 : f32 to vector<8x128xf32>
    %185 = arith.addf %184, %183 : vector<8x128xf32>
    %186 = arith.divf %184, %185 : vector<8x128xf32>
    %187 = vector.extract_strided_slice %180 {offsets = [0, 128], sizes = [8, 128], strides = [1, 1]} : vector<8x512xf32> to vector<8x128xf32>
    %188 = arith.negf %187 : vector<8x128xf32>
    %189 = math.exp %188 : vector<8x128xf32>
    %cst_50 = arith.constant 1.000000e+00 : f32
    %190 = vector.broadcast %cst_50 : f32 to vector<8x128xf32>
    %191 = arith.addf %190, %189 : vector<8x128xf32>
    %192 = arith.divf %190, %191 : vector<8x128xf32>
    %193 = vector.extract_strided_slice %180 {offsets = [0, 256], sizes = [8, 128], strides = [1, 1]} : vector<8x512xf32> to vector<8x128xf32>
    %194 = math.tanh %193 : vector<8x128xf32>
    %195 = vector.extract_strided_slice %180 {offsets = [0, 384], sizes = [8, 128], strides = [1, 1]} : vector<8x512xf32> to vector<8x128xf32>
    %196 = arith.negf %195 : vector<8x128xf32>
    %197 = math.exp %196 : vector<8x128xf32>
    %cst_51 = arith.constant 1.000000e+00 : f32
    %198 = vector.broadcast %cst_51 : f32 to vector<8x128xf32>
    %199 = arith.addf %198, %197 : vector<8x128xf32>
    %200 = arith.divf %198, %199 : vector<8x128xf32>
    %201 = arith.mulf %192, %169 : vector<8x128xf32>
    %202 = arith.mulf %186, %194 : vector<8x128xf32>
    %203 = arith.addf %201, %202 : vector<8x128xf32>
    %204 = math.tanh %203 : vector<8x128xf32>
    %205 = arith.mulf %200, %204 : vector<8x128xf32>
    %206 = arith.index_cast %c5_i32 : i32 to index
    %c0_52 = arith.constant 0 : index
    %c0_53 = arith.constant 0 : index
    %207 = vector.load %arg4[%206, %c0_52, %c0_53] : memref<8x8x128xf32, #tpu.memory_space<vmem>>, vector<1x8x128xf32>
    %208 = vector.shape_cast %207 : vector<1x8x128xf32> to vector<8x128xf32>
    %209 = vector.shape_cast %205 : vector<8x128xf32> to vector<1x8x128xf32>
    tpu.vector_store %arg4[%206, %c0_52, %c0_53], %209 {strides = array<i32>} : memref<8x8x128xf32, #tpu.memory_space<vmem>>, vector<1x8x128xf32>,
    %c6_i32 = arith.constant 6 : i32
    %210 = arith.index_cast %c6_i32 : i32 to index
    %c0_54 = arith.constant 0 : index
    %c0_55 = arith.constant 0 : index
    %211 = vector.load %arg2[%210, %c0_54, %c0_55] : memref<8x8x512xf32, #tpu.memory_space<vmem>>, vector<1x8x512xf32>
    %212 = vector.shape_cast %211 : vector<1x8x512xf32> to vector<8x512xf32>
    %cst_56 = arith.constant dense<0.000000e+00> : vector<8x512xf32>
    %213 = tpu.matmul %205, %3, %cst_56 {dimension_numbers = #tpu.dot_dimension_numbers<[1], [0], [0], [1], [0, 0, 1, 1], [], []>, precision = #tpu.contract_precision<fp32>} : vector<8x128xf32>, vector<128x512xf32>, vector<8x512xf32> -> vector<8x512xf32>
    %214 = arith.addf %212, %213 : vector<8x512xf32>
    %215 = vector.extract_strided_slice %214 {offsets = [0, 0], sizes = [8, 128], strides = [1, 1]} : vector<8x512xf32> to vector<8x128xf32>
    %216 = arith.negf %215 : vector<8x128xf32>
    %217 = math.exp %216 : vector<8x128xf32>
    %cst_57 = arith.constant 1.000000e+00 : f32
    %218 = vector.broadcast %cst_57 : f32 to vector<8x128xf32>
    %219 = arith.addf %218, %217 : vector<8x128xf32>
    %220 = arith.divf %218, %219 : vector<8x128xf32>
    %221 = vector.extract_strided_slice %214 {offsets = [0, 128], sizes = [8, 128], strides = [1, 1]} : vector<8x512xf32> to vector<8x128xf32>
    %222 = arith.negf %221 : vector<8x128xf32>
    %223 = math.exp %222 : vector<8x128xf32>
    %cst_58 = arith.constant 1.000000e+00 : f32
    %224 = vector.broadcast %cst_58 : f32 to vector<8x128xf32>
    %225 = arith.addf %224, %223 : vector<8x128xf32>
    %226 = arith.divf %224, %225 : vector<8x128xf32>
    %227 = vector.extract_strided_slice %214 {offsets = [0, 256], sizes = [8, 128], strides = [1, 1]} : vector<8x512xf32> to vector<8x128xf32>
    %228 = math.tanh %227 : vector<8x128xf32>
    %229 = vector.extract_strided_slice %214 {offsets = [0, 384], sizes = [8, 128], strides = [1, 1]} : vector<8x512xf32> to vector<8x128xf32>
    %230 = arith.negf %229 : vector<8x128xf32>
    %231 = math.exp %230 : vector<8x128xf32>
    %cst_59 = arith.constant 1.000000e+00 : f32
    %232 = vector.broadcast %cst_59 : f32 to vector<8x128xf32>
    %233 = arith.addf %232, %231 : vector<8x128xf32>
    %234 = arith.divf %232, %233 : vector<8x128xf32>
    %235 = arith.mulf %226, %203 : vector<8x128xf32>
    %236 = arith.mulf %220, %228 : vector<8x128xf32>
    %237 = arith.addf %235, %236 : vector<8x128xf32>
    %238 = math.tanh %237 : vector<8x128xf32>
    %239 = arith.mulf %234, %238 : vector<8x128xf32>
    %240 = arith.index_cast %c6_i32 : i32 to index
    %c0_60 = arith.constant 0 : index
    %c0_61 = arith.constant 0 : index
    %241 = vector.load %arg4[%240, %c0_60, %c0_61] : memref<8x8x128xf32, #tpu.memory_space<vmem>>, vector<1x8x128xf32>
    %242 = vector.shape_cast %241 : vector<1x8x128xf32> to vector<8x128xf32>
    %243 = vector.shape_cast %239 : vector<8x128xf32> to vector<1x8x128xf32>
    tpu.vector_store %arg4[%240, %c0_60, %c0_61], %243 {strides = array<i32>} : memref<8x8x128xf32, #tpu.memory_space<vmem>>, vector<1x8x128xf32>,
    %c7_i32 = arith.constant 7 : i32
    %244 = arith.index_cast %c7_i32 : i32 to index
    %c0_62 = arith.constant 0 : index
    %c0_63 = arith.constant 0 : index
    %245 = vector.load %arg2[%244, %c0_62, %c0_63] : memref<8x8x512xf32, #tpu.memory_space<vmem>>, vector<1x8x512xf32>
    %246 = vector.shape_cast %245 : vector<1x8x512xf32> to vector<8x512xf32>
    %cst_64 = arith.constant dense<0.000000e+00> : vector<8x512xf32>
    %247 = tpu.matmul %239, %3, %cst_64 {dimension_numbers = #tpu.dot_dimension_numbers<[1], [0], [0], [1], [0, 0, 1, 1], [], []>, precision = #tpu.contract_precision<fp32>} : vector<8x128xf32>, vector<128x512xf32>, vector<8x512xf32> -> vector<8x512xf32>
    %248 = arith.addf %246, %247 : vector<8x512xf32>
    %249 = vector.extract_strided_slice %248 {offsets = [0, 0], sizes = [8, 128], strides = [1, 1]} : vector<8x512xf32> to vector<8x128xf32>
    %250 = arith.negf %249 : vector<8x128xf32>
    %251 = math.exp %250 : vector<8x128xf32>
    %cst_65 = arith.constant 1.000000e+00 : f32
    %252 = vector.broadcast %cst_65 : f32 to vector<8x128xf32>
    %253 = arith.addf %252, %251 : vector<8x128xf32>
    %254 = arith.divf %252, %253 : vector<8x128xf32>
    %255 = vector.extract_strided_slice %248 {offsets = [0, 128], sizes = [8, 128], strides = [1, 1]} : vector<8x512xf32> to vector<8x128xf32>
    %256 = arith.negf %255 : vector<8x128xf32>
    %257 = math.exp %256 : vector<8x128xf32>
    %cst_66 = arith.constant 1.000000e+00 : f32
    %258 = vector.broadcast %cst_66 : f32 to vector<8x128xf32>
    %259 = arith.addf %258, %257 : vector<8x128xf32>
    %260 = arith.divf %258, %259 : vector<8x128xf32>
    %261 = vector.extract_strided_slice %248 {offsets = [0, 256], sizes = [8, 128], strides = [1, 1]} : vector<8x512xf32> to vector<8x128xf32>
    %262 = math.tanh %261 : vector<8x128xf32>
    %263 = vector.extract_strided_slice %248 {offsets = [0, 384], sizes = [8, 128], strides = [1, 1]} : vector<8x512xf32> to vector<8x128xf32>
    %264 = arith.negf %263 : vector<8x128xf32>
    %265 = math.exp %264 : vector<8x128xf32>
    %cst_67 = arith.constant 1.000000e+00 : f32
    %266 = vector.broadcast %cst_67 : f32 to vector<8x128xf32>
    %267 = arith.addf %266, %265 : vector<8x128xf32>
    %268 = arith.divf %266, %267 : vector<8x128xf32>
    %269 = arith.mulf %260, %237 : vector<8x128xf32>
    %270 = arith.mulf %254, %262 : vector<8x128xf32>
    %271 = arith.addf %269, %270 : vector<8x128xf32>
    %272 = math.tanh %271 : vector<8x128xf32>
    %273 = arith.mulf %268, %272 : vector<8x128xf32>
    %274 = arith.index_cast %c7_i32 : i32 to index
    %c0_68 = arith.constant 0 : index
    %c0_69 = arith.constant 0 : index
    %275 = vector.load %arg4[%274, %c0_68, %c0_69] : memref<8x8x128xf32, #tpu.memory_space<vmem>>, vector<1x8x128xf32>
    %276 = vector.shape_cast %275 : vector<1x8x128xf32> to vector<8x128xf32>
    %277 = vector.shape_cast %273 : vector<8x128xf32> to vector<1x8x128xf32>
    tpu.vector_store %arg4[%274, %c0_68, %c0_69], %277 {strides = array<i32>} : memref<8x8x128xf32, #tpu.memory_space<vmem>>, vector<1x8x128xf32>,
    %c8_i32 = arith.constant 8 : i32
    %c0_70 = arith.constant 0 : index
    %c0_71 = arith.constant 0 : index
    %278 = vector.load %arg7[%c0_70, %c0_71] : memref<8x128xf32, #tpu.memory_space<vmem>>, vector<8x128xf32>
    tpu.vector_store %arg7[%c0_70, %c0_71], %273 {strides = array<i32>} : memref<8x128xf32, #tpu.memory_space<vmem>>, vector<8x128xf32>,
    %c0_72 = arith.constant 0 : index
    %c0_73 = arith.constant 0 : index
    %279 = vector.load %arg8[%c0_72, %c0_73] : memref<8x128xf32, #tpu.memory_space<vmem>>, vector<8x128xf32>
    tpu.vector_store %arg8[%c0_72, %c0_73], %271 {strides = array<i32>} : memref<8x128xf32, #tpu.memory_space<vmem>>, vector<8x128xf32>,
    %c1_i32_74 = arith.constant 1 : i32
    %280 = arith.cmpi eq, %arg1, %c1_i32_74 : i32
    %281 = arith.extui %280 : i1 to i32
    %c0_i32_75 = arith.constant 0 : i32
    %282 = arith.cmpi ne, %281, %c0_i32_75 : i32
    scf.if %282 {
      %c0_76 = arith.constant 0 : index
      %c0_77 = arith.constant 0 : index
      %283 = vector.load %arg5[%c0_76, %c0_77] : memref<8x128xf32, #tpu.memory_space<vmem>>, vector<8x128xf32>
      tpu.vector_store %arg5[%c0_76, %c0_77], %273 {strides = array<i32>} : memref<8x128xf32, #tpu.memory_space<vmem>>, vector<8x128xf32>,
      %c0_78 = arith.constant 0 : index
      %c0_79 = arith.constant 0 : index
      %284 = vector.load %arg6[%c0_78, %c0_79] : memref<8x128xf32, #tpu.memory_space<vmem>>, vector<8x128xf32>
      tpu.vector_store %arg6[%c0_78, %c0_79], %271 {strides = array<i32>} : memref<8x128xf32, #tpu.memory_space<vmem>>, vector<8x128xf32>,
    } else {
    }
    return
  }
  func.func @transform_0(%arg0: i32, %arg1: i32) -> (i32, i32, i32) {
    %c0_i32 = arith.constant 0 : i32
    %c0_i32_0 = arith.constant 0 : i32
    return %arg1, %arg0, %c0_i32 : i32, i32, i32
  }
  func.func @transform_1(%arg0: i32, %arg1: i32) -> (i32, i32) {
    %c0_i32 = arith.constant 0 : i32
    %c0_i32_0 = arith.constant 0 : i32
    %c0_i32_1 = arith.constant 0 : i32
    return %c0_i32, %c0_i32_0 : i32, i32
  }
  func.func @transform_2(%arg0: i32, %arg1: i32) -> (i32, i32, i32) {
    %c0_i32 = arith.constant 0 : i32
    %c0_i32_0 = arith.constant 0 : i32
    return %arg1, %arg0, %c0_i32 : i32, i32, i32
  }
  func.func @transform_3(%arg0: i32, %arg1: i32) -> (i32, i32) {
    %c0_i32 = arith.constant 0 : i32
    %c0_i32_0 = arith.constant 0 : i32
    return %arg0, %c0_i32 : i32, i32
  }
  func.func @transform_4(%arg0: i32, %arg1: i32) -> (i32, i32) {
    %c0_i32 = arith.constant 0 : i32
    %c0_i32_0 = arith.constant 0 : i32
    return %arg0, %c0_i32 : i32, i32
  }
}

</mosaic_0001>

<bundles_post_ra>
// kernel: lstm_sequence_model_forward.1
= control target key start
LH: loop header
LB: loop body
LE: loop exit
PB: predicated region body
PF: predicated region fallthrough
CT: control target
= control target key end

     0   :  { %10 = vsyncpa [#allocation5], 0  ;;  %s21508_s0 = inlined_call_operand.vmem [shape: f32[16,8,512], index: 0, kind: input, shape index: {}]   ;;  %s21509_s1 = inlined_call_operand.vmem [shape: f32[128,512], index: 1, kind: input, shape index: {}]   ;;  %s21510_s2 = inlined_call_operand.vmem [shape: f32[16,8,128], index: 2, kind: output, shape index: {0}]   ;;  %s21511_s3 = inlined_call_operand.hbm [shape: f32[8,128], index: 3, kind: output, shape index: {1}]   ;;  %s21512_s4 = inlined_call_operand.hbm [shape: f32[8,128], index: 4, kind: output, shape index: {2}]  }
   0x1   :  { %11 = vsyncpa [#allocation7], 0  ;;  %s18012_s15 = smov 0   ;;  %s18014_s16 = smov 0  }
   0x2   :  { %s18016_s17 = smov 0  }
   0x3 LB: > { %s14421_s18 = sadd.s32 4294967295, %s17981_s17   ;;  %s26_s19 = sadd.s32 1, %s17977_s16  ;;  %s17981_s17 = sphi %s18016_s17, %s17_s17   ;;  %s17977_s16 = sphi %s18014_s16, %s23022_s16   ;;  %s17973_s15 = sphi %s18012_s15, %s23021_s15  }
   0x4   : > { %p27_p0 = scmp.ge.s32.totalorder %s26_s19, 2  ;;  %p14425_p1 = scmp.ge.s32.totalorder %s17981_s17, 1 }
   0x5   : > { %p191_p2 = scmp.lt.s32.totalorder %s17981_s17, 3 }
   0x6   : > { %s23024_s19 = smov (%p27_p0, %s26_s19), 0 }
   0x7   : > { %p192_p3 = pnand %p14425_p1, %p191_p2 }
   0x9   : > { %195 = sbr.rel (%p192_p3) target bundleno = 3592 (0xe08), region = 28 }
  0x10   : > { %s14426_s20 = sshll.u32 %s17973_s15, 3  ;;  %p14431_p5 = scmp.ne.s32.totalorder %s17973_s15, 0 }
  0x11   : > { %p226_p4 = scmp.lt.s32.totalorder %s14426_s20, 15  ;;  %v17983_v0 = vmov (!%p14431_p5), 0.0  }
  0x12   : > { %248 = sbr.rel (%p14431_p5) target bundleno = 25 (0x19), region = 32  ;;  %249 = vst [vmem:[#allocation2] sm:$0xff] (!%p14431_p5), %v17983_v0  ;;  %250 = vst [vmem:[#allocation3] sm:$0xff] (!%p14431_p5), %v17983_v0 }
  0x13   : > { %s23026_s20 = smov (!%p226_p4, %s14426_s20), 15 }
  0x14   : > { %s14498_s21 = sshll.u32 %s23026_s20, 5  ;;  %s14430_s22 = sshll.u32 %s23026_s20, 3 }
  0x15   : > { %s18037_s25 = scalar_lea.vmem %s21508_s0, %s14498_s21  ;;  %s18042_s28 = scalar_lea.vmem %s21510_s2, %s14430_s22 }
  0x19 PF: > { %v18048_v1 = vld [vmem:[%s21509_s1 + $0x8] sm:$0xff]  ;;  %v18058_v3 = vld [vmem:[%s21509_s1 + $0x18] sm:$0xff]  ;;  %v18071_v8 = vld [vmem:[%s21509_s1] sm:$0xff]  ;;  %v21516_v10 = vmov 0.0   ;;  %p14491_p6 = scmp.ne.s32.totalorder %s17973_s15, 1 }
  0x1a   : > { %v18053_v2 = vld [vmem:[%s21509_s1 + $0x28] sm:$0xff]  ;;  %v21540_v4 = vand.u32 4294901760, %v18048_v1  ;;  %v18065_v6 = vld [vmem:[%s21509_s1 + $0x38] sm:$0xff]  ;;  %v21538_v7 = vand.u32 4294901760, %v18058_v3  ;;  %v18076_v9 = vld [vmem:[%s21509_s1 + $0x20] sm:$0xff]  ;;  %417 = vmatprep.mubr.f32.mxu0 %v21516_v10  ;;  %1272 = vmatprep.mubr.f32.mxu1 %v21516_v10  ;;  %v21534_v12 = vand.u32 4294901760, %v18071_v8 }
  0x1b   : > { %v21539_v5 = vand.u32 4294901760, %v18053_v2  ;;  %v21537_v11 = vand.u32 4294901760, %v18065_v6  ;;  %v21533_v13 = vand.u32 4294901760, %v18076_v9  ;;  %v18086_v14 = vld [vmem:[%s21509_s1 + $0x10] sm:$0xff]  ;;  %v18096_v16 = vld [vmem:[%s21509_s1 + $0x48] sm:$0xff]  ;;  %v18115_v22 = vld [vmem:[%s21509_s1 + $0x58] sm:$0xff] }
  0x1c   : > { %v18091_v15 = vld [vmem:[%s21509_s1 + $0x30] sm:$0xff]  ;;  %v21532_v18 = vand.u32 4294901760, %v18086_v14  ;;  %v18109_v20 = vld [vmem:[%s21509_s1 + $0x68] sm:$0xff]  ;;  %v21530_v21 = vand.u32 4294901760, %v18096_v16  ;;  %v18120_v23 = vld [vmem:[%s21509_s1 + $0x78] sm:$0xff]  ;;  %v21526_v27 = vand.u32 4294901760, %v18115_v22 }
  0x1d   : > { %v18102_v17 = vpack.c.bf16 %v21539_v5, %v21540_v4  ;;  %v21531_v19 = vand.u32 4294901760, %v18091_v15  ;;  %v18126_v24 = vpack.c.bf16 %v21537_v11, %v21538_v7  ;;  %v18132_v25 = vpack.c.bf16 %v21533_v13, %v21534_v12  ;;  %v18139_v28 = vld [vmem:[%s21509_s1 + $0x40] sm:$0xff]  ;;  %v18149_v30 = vld [vmem:[%s21509_s1 + $0x50] sm:$0xff]  ;;  %v18169_v36 = vld [vmem:[%s21509_s1 + $0x88] sm:$0xff] }
  0x1e   : > { %v21527_v26 = vand.u32 4294901760, %v18109_v20  ;;  %v18144_v29 = vld [vmem:[%s21509_s1 + $0x60] sm:$0xff]  ;;  %v21525_v32 = vand.u32 4294901760, %v18120_v23  ;;  %v21524_v33 = vand.u32 4294901760, %v18139_v28  ;;  %v18164_v35 = vld [vmem:[%s21509_s1 + $0x70] sm:$0xff]  ;;  %v18174_v37 = vld [vmem:[%s21509_s1 + $0xa8] sm:$0xff] }
  0x1f   : > { %21981 = vst [vmem:[#allocation10_spill] sm:$0xff] %v18102_v17  ;;  %21982 = vst [vmem:[#allocation11_spill] sm:$0xff] %v18126_v24  ;;  %14500 = vmatprep.subr.bf16.mxu0 %v18102_v17  ;;  %v18156_v31 = vpack.c.bf16 %v21531_v19, %v21532_v18  ;;  %v21519_v34 = vand.u32 4294901760, %v18144_v29  ;;  %14692 = vmatprep.subr.bf16.mxu1 %v18126_v24  ;;  %v21518_v39 = vand.u32 4294901760, %v18149_v30  ;;  %v21515_v40 = vand.u32 4294901760, %v18164_v35  ;;  %v18190_v42 = vld [vmem:[%s21509_s1 + $0x98] sm:$0xff] }
  0x20   : > { %21983 = vst [vmem:[#allocation12_spill] sm:$0xff] %v18132_v25  ;;  %14502 = vmatpush1.bf16.msra.mxu0 %v18132_v25  ;;  %v18182_v38 = vpack.c.bf16 %v21527_v26, %v21530_v21  ;;  %v21514_v41 = vand.u32 4294901760, %v18169_v36  ;;  %v18195_v43 = vld [vmem:[%s21509_s1 + $0xb8] sm:$0xff]  ;;  %v18200_v44 = vld [vmem:[%s21509_s1 + $0x80] sm:$0xff]  ;;  %v18207_v45 = vpack.c.bf16 %v21525_v32, %v21526_v27  ;;  %v21513_v47 = vand.u32 4294901760, %v18174_v37  ;;  %v18225_v50 = vld [vmem:[%s21509_s1 + $0x90] sm:$0xff] }
  0x21   : > { %21984 = vst [vmem:[#allocation13_spill] sm:$0xff] %v18156_v31  ;;  %14694 = vmatpush1.bf16.msra.mxu1 %v18156_v31  ;;  %v18213_v46 = vpack.c.bf16 %v21519_v34, %v21524_v33  ;;  %v21521_v48 = vand.u32 4294901760, %v18190_v42  ;;  %v18220_v49 = vld [vmem:[%s21509_s1 + $0xa0] sm:$0xff]  ;;  %v18230_v51 = vld [vmem:[%s21509_s1 + $0xb0] sm:$0xff]  ;;  %v18237_v52 = vpack.c.bf16 %v21515_v40, %v21518_v39  ;;  %v21520_v53 = vand.u32 4294901760, %v18195_v43  ;;  %v18245_v56 = vld [vmem:[%s21509_s1 + $0xc8] sm:$0xff] }
  0x22   : > { %21985 = vst [vmem:[#allocation14_spill] sm:$0xff] %v18182_v38  ;;  %21986 = vst [vmem:[#allocation15_spill] sm:$0xff] %v18207_v45  ;;  %14504 = vmatprep.subr.bf16.mxu0 %v18182_v38  ;;  %v21523_v54 = vand.u32 4294901760, %v18200_v44  ;;  %v21522_v55 = vand.u32 4294901760, %v18220_v49  ;;  %v18250_v57 = vld [vmem:[%s21509_s1 + $0xe8] sm:$0xff]  ;;  %v18255_v58 = vld [vmem:[%s21509_s1 + $0xd8] sm:$0xff]  ;;  %14696 = vmatprep.subr.bf16.mxu1 %v18207_v45  ;;  %v18262_v59 = vpack.c.bf16 %v21513_v47, %v21514_v41 }
  0x23   : > { %21987 = vst [vmem:[#allocation16_spill] sm:$0xff] %v18213_v46  ;;  %21988 = vst [vmem:[#allocation17_spill] sm:$0xff] %v18237_v52  ;;  %v21529_v60 = vand.u32 4294901760, %v18225_v50  ;;  %v21528_v61 = vand.u32 4294901760, %v18230_v51  ;;  %v21536_v62 = vand.u32 4294901760, %v18245_v56  ;;  %v18270_v63 = vld [vmem:[%s21509_s1 + $0xf8] sm:$0xff]  ;;  %v18287_v41 = vpack.c.bf16 %v21520_v53, %v21521_v48 }
  0x24   : > { %21989 = vst [vmem:[#allocation18_spill] sm:$0xff] %v18262_v59  ;;  %v18275_v0 = vld [vmem:[%s21509_s1 + $0xc0] sm:$0xff]  ;;  %14506 = vmatpush1.bf16.msra.mxu0 %v18213_v46  ;;  %v18293_v40 = vpack.c.bf16 %v21522_v55, %v21523_v54  ;;  %v21535_v10 = vand.u32 4294901760, %v18250_v57  ;;  %v21542_v39 = vand.u32 4294901760, %v18255_v58  ;;  %v18300_v34 = vld [vmem:[%s21509_s1 + $0xd0] sm:$0xff]  ;;  %v18310_v48 = vld [vmem:[%s21509_s1 + $0x108] sm:$0xff] }
  0x25   : > { %v18280_v47 = vld [vmem:[%s21509_s1 + $0xe0] sm:$0xff]  ;;  %21990 = vst [vmem:[#allocation19_spill] sm:$0xff] %v18287_v41  ;;  %v18305_v53 = vld [vmem:[%s21509_s1 + $0xf0] sm:$0xff]  ;;  %14698 = vmatpush1.bf16.msra.mxu1 %v18237_v52  ;;  %14508 = vmatprep.subr.bf16.mxu0 %v18262_v59  ;;  %v18318_v55 = vpack.c.bf16 %v21528_v61, %v21529_v60  ;;  %v21541_v54 = vand.u32 4294901760, %v18270_v63  ;;  %v21544_v33 = vand.u32 4294901760, %v18275_v0  ;;  %v18326_v27 = vld [vmem:[%s21509_s1 + $0x128] sm:$0xff] }
  0x26   : > { %21991 = vst [vmem:[#allocation20_spill] sm:$0xff] %v18293_v40  ;;  %v21543_v32 = vand.u32 4294901760, %v18280_v47  ;;  %v18331_v26 = vld [vmem:[%s21509_s1 + $0x118] sm:$0xff]  ;;  %14700 = vmatprep.subr.bf16.mxu1 %v18287_v41  ;;  %v18343_v60 = vpack.c.bf16 %v21535_v10, %v21536_v62  ;;  %v21548_v21 = vand.u32 4294901760, %v18300_v34  ;;  %v21547_v19 = vand.u32 4294901760, %v18305_v53  ;;  %v18351_v13 = vld [vmem:[%s21509_s1 + $0x100] sm:$0xff] }
  0x27   : > { %21992 = vst [vmem:[#allocation21_spill] sm:$0xff] %v18318_v55  ;;  %v18336_v61 = vld [vmem:[%s21509_s1 + $0x138] sm:$0xff]  ;;  %21995 = vst [vmem:[#allocation24_spill] sm:$0xff] %v18351_v13  ;;  %v18356_v12 = vld [vmem:[%s21509_s1 + $0x120] sm:$0xff]  ;;  %v18367_v62 = vpack.c.bf16 %v21541_v54, %v21542_v39  ;;  %v22008_v7 = vand.u32 4294901760, %v18326_v27 }
  0x28   : > { %21993 = vst [vmem:[#allocation22_spill] sm:$0xff] %v18336_v61  ;;  %21994 = vst [vmem:[#allocation23_spill] sm:$0xff] %v18343_v60  ;;  %v18361_v10 = vld [vmem:[%s21509_s1 + $0x110] sm:$0xff]  ;;  %v18373_v11 = vpack.c.bf16 %v21543_v32, %v21544_v33  ;;  %v18385_v54 = vld [vmem:[%s21509_s1 + $0x148] sm:$0xff]  ;;  %14510 = vmatpush1.bf16.msra.mxu0 %v18293_v40  ;;  %v18397_v32 = vpack.c.bf16 %v21547_v19, %v21548_v21  ;;  %v22007_v21 = vand.u32 4294901760, %v18310_v48  ;;  %v22014_v52 = vand.u32 4294901760, %v18336_v61 }
  0x29   : > { %21996 = vst [vmem:[#allocation25_spill] sm:$0xff] %v18356_v12  ;;  %21997 = vst [vmem:[#allocation26_spill] sm:$0xff] %v18361_v10  ;;  %v18380_v4 = vld [vmem:[%s21509_s1 + $0x130] sm:$0xff]  ;;  %v18390_v39 = vld [vmem:[%s21509_s1 + $0x168] sm:$0xff]  ;;  %14702 = vmatpush1.bf16.msra.mxu1 %v18318_v55  ;;  %14512 = vmatprep.subr.bf16.mxu0 %v18343_v60  ;;  %v22016_v33 = vand.u32 4294901760, %v18351_v13  ;;  %v22017_v60 = vand.u32 4294901760, %v18356_v12 }
  0x2a   : > { %21998 = vst [vmem:[#allocation27_spill] sm:$0xff] %v18367_v62  ;;  %21999 = vst [vmem:[#allocation28_spill] sm:$0xff] %v18373_v11  ;;  %v18405_v18 = vld [vmem:[%s21509_s1 + $0x158] sm:$0xff]  ;;  %v18415_v19 = vld [vmem:[%s21509_s1 + $0x140] sm:$0xff]  ;;  %v18423_v5 = vpack.c.bf16 %v22008_v7, %v22007_v21  ;;  %14704 = vmatprep.subr.bf16.mxu1 %v18367_v62  ;;  %v22013_v21 = vand.u32 4294901760, %v18331_v26  ;;  %v22027_v24 = vand.u32 4294901760, %v18390_v39 }
  0x2b   : > { %22000 = vst [vmem:[#allocation29_spill] sm:$0xff] %v18380_v4  ;;  %22001 = vst [vmem:[#allocation30_spill] sm:$0xff] %v18385_v54  ;;  %v18410_v41 = vld [vmem:[%s21509_s1 + $0x178] sm:$0xff]  ;;  %v18431_v59 = vld [vmem:[%s21509_s1 + $0x160] sm:$0xff]  ;;  %v18454_v45 = vpack.c.bf16 %v22017_v60, %v22016_v33  ;;  %v22021_v33 = vand.u32 4294901760, %v18361_v10  ;;  %v22022_v60 = vand.u32 4294901760, %v18380_v4 }
  0x2c   : > { %22002 = vst [vmem:[#allocation31_spill] sm:$0xff] %v18390_v39  ;;  %22003 = vst [vmem:[#allocation32_spill] sm:$0xff] %v18397_v32  ;;  %v18436_v55 = vld [vmem:[%s21509_s1 + $0x150] sm:$0xff]  ;;  %v18448_v40 = vpack.c.bf16 %v22014_v52, %v22013_v21  ;;  %v18461_v62 = vld [vmem:[%s21509_s1 + $0x188] sm:$0xff]  ;;  %14514 = vmatpush1.bf16.msra.mxu0 %v18373_v11  ;;  %v22031_v10 = vand.u32 4294901760, %v18410_v41  ;;  %v22033_v46 = vand.u32 4294901760, %v18415_v19 }
  0x2d   : > { %22004 = vst [vmem:[#allocation33_spill] sm:$0xff] %v18405_v18  ;;  %22005 = vst [vmem:[#allocation34_spill] sm:$0xff] %v18410_v41  ;;  %v18441_v7 = vld [vmem:[%s21509_s1 + $0x170] sm:$0xff]  ;;  %v18466_v52 = vld [vmem:[%s21509_s1 + $0x1a8] sm:$0xff]  ;;  %v18477_v31 = vpack.c.bf16 %v22022_v60, %v22021_v33  ;;  %v22026_v60 = vand.u32 4294901760, %v18385_v54  ;;  %14706 = vmatpush1.bf16.msra.mxu1 %v18397_v32  ;;  %14516 = vmatprep.subr.bf16.mxu0 %v18423_v5  ;;  %v22034_v39 = vand.u32 4294901760, %v18431_v59 }
  0x2e   : > { %22006 = vst [vmem:[#allocation35_spill] sm:$0xff] %v18415_v19  ;;  %22009 = vst [vmem:[#allocation36_spill] sm:$0xff] %v18423_v5  ;;  %v18471_v21 = vld [vmem:[%s21509_s1 + $0x198] sm:$0xff]  ;;  %v18490_v17 = vld [vmem:[%s21509_s1 + $0x180] sm:$0xff]  ;;  %14708 = vmatprep.subr.bf16.mxu1 %v18448_v40  ;;  %v22041_v13 = vand.u32 4294901760, %v18466_v52 }
  0x2f   : > { %22010 = vst [vmem:[#allocation37_spill] sm:$0xff] %v18431_v59  ;;  %22011 = vst [vmem:[#allocation38_spill] sm:$0xff] %v18436_v55  ;;  %v18485_v25 = vld [vmem:[%s21509_s1 + $0x1b8] sm:$0xff]  ;;  %v18495_v33 = vld [vmem:[%s21509_s1 + $0x1a0] sm:$0xff]  ;;  %v18502_v38 = vpack.c.bf16 %v22027_v24, %v22026_v60  ;;  %v22030_v60 = vand.u32 4294901760, %v18405_v18  ;;  %v18534_v54 = vpack.c.bf16 %v22034_v39, %v22033_v46  ;;  %v22037_v39 = vand.u32 4294901760, %v18441_v7 }
  0x30   : > { %22012 = vst [vmem:[#allocation39_spill] sm:$0xff] %v18441_v7  ;;  %22015 = vst [vmem:[#allocation40_spill] sm:$0xff] %v18448_v40  ;;  %v18510_v12 = vld [vmem:[%s21509_s1 + $0x190] sm:$0xff]  ;;  %v18520_v24 = vld [vmem:[%s21509_s1 + $0x1c8] sm:$0xff]  ;;  %14518 = vmatpush1.bf16.msra.mxu0 %v18454_v45  ;;  %v22047_v7 = vand.u32 4294901760, %v18495_v33 }
  0x31   : > { %22018 = vst [vmem:[#allocation41_spill] sm:$0xff] %v18454_v45  ;;  %22019 = vst [vmem:[#allocation42_spill] sm:$0xff] %v18461_v62  ;;  %v18515_v11 = vld [vmem:[%s21509_s1 + $0x1b0] sm:$0xff]  ;;  %v18528_v4 = vpack.c.bf16 %v22031_v10, %v22030_v60  ;;  %v18541_v32 = vld [vmem:[%s21509_s1 + $0x1e8] sm:$0xff]  ;;  %v22036_v60 = vand.u32 4294901760, %v18436_v55  ;;  %v22046_v55 = vand.u32 4294901760, %v18490_v17  ;;  %14710 = vmatpush1.bf16.msra.mxu1 %v18477_v31  ;;  %14520 = vmatprep.subr.bf16.mxu0 %v18502_v38 }
  0x32   : > { %22020 = vst [vmem:[#allocation43_spill] sm:$0xff] %v18466_v52  ;;  %22023 = vst [vmem:[#allocation44_spill] sm:$0xff] %v18477_v31  ;;  %v18546_v10 = vld [vmem:[%s21509_s1 + $0x1d8] sm:$0xff]  ;;  %v18566_v40 = vld [vmem:[%s21509_s1 + $0x1c0] sm:$0xff]  ;;  %v22049_v45 = vand.u32 4294901760, %v18510_v12  ;;  %v22052_v18 = vand.u32 4294901760, %v18520_v24 }
  0x33   : > { %22024 = vst [vmem:[#allocation45_spill] sm:$0xff] %v18485_v25  ;;  %22025 = vst [vmem:[#allocation46_spill] sm:$0xff] %v18495_v33  ;;  %v18553_v46 = vpack.c.bf16 %v22037_v39, %v22036_v60  ;;  %v18561_v59 = vld [vmem:[%s21509_s1 + $0x1f8] sm:$0xff]  ;;  %v18571_v60 = vld [vmem:[%s21509_s1 + $0x1e0] sm:$0xff]  ;;  %v22040_v39 = vand.u32 4294901760, %v18461_v62  ;;  %v18603_v52 = vpack.c.bf16 %v22047_v7, %v22046_v55  ;;  %v21627_v62 = vand.u32 4294901760, %v18541_v32  ;;  %14712 = vmatprep.subr.bf16.mxu1 %v18528_v4 }
  0x34   : > { %22028 = vst [vmem:[#allocation47_spill] sm:$0xff] %v18502_v38  ;;  %22029 = vst [vmem:[#allocation48_spill] sm:$0xff] %v18520_v24  ;;  %v18585_v19 = vld [vmem:[%s21509_s1 + $0x1d0] sm:$0xff]  ;;  %v315_v7 = vld [vmem:[#allocation2] sm:$0xff]  ;;  %v22055_v55 = vand.u32 4294901760, %v18546_v10  ;;  %v22056_v33 = vand.u32 4294901760, %v18561_v59  ;;  %14522 = vmatpush1.bf16.msra.mxu0 %v18534_v54 }
  0x35   : > { %22032 = vst [vmem:[#allocation49_spill] sm:$0xff] %v18528_v4  ;;  %22035 = vst [vmem:[#allocation50_spill] sm:$0xff] %v18534_v54  ;;  %v18577_v5 = vpack.c.bf16 %v22041_v13, %v22040_v39  ;;  %v18590_v41 = vld [vmem:[%s21509_s1 + $0x1f0] sm:$0xff]  ;;  %v22043_v13 = vand.u32 4294901760, %v18471_v21  ;;  %v22044_v39 = vand.u32 4294901760, %v18485_v25  ;;  %v22050_v25 = vand.u32 4294901760, %v18515_v11  ;;  %14714 = vmatpush1.bf16.msra.mxu1 %v18553_v46 }
  0x36   : > { %22038 = vst [vmem:[#allocation51_spill] sm:$0xff] %v18553_v46  ;;  %22039 = vst [vmem:[#allocation52_spill] sm:$0xff] %v18566_v40  ;;  %v18623_v31 = vpack.c.bf16 %v21627_v62, %v22052_v18  ;;  %v18636_v4 = vpack.c.bf16 %v22056_v33, %v22055_v55  ;;  %v22058_v24 = vand.u32 4294901760, %v18566_v40  ;;  %v22059_v18 = vand.u32 4294901760, %v18571_v60 }
  0x37   : > { %22042 = vst [vmem:[#allocation53_spill] sm:$0xff] %v18577_v5  ;;  %v18597_v61 = vpack.c.bf16 %v22044_v39, %v22043_v13  ;;  %22048 = vst [vmem:[#allocation55_spill] sm:$0xff] %v18603_v52  ;;  %v18613_v13 = vpack.c.bf16 %v22050_v25, %v22049_v45  ;;  %v22054_v45 = vand.u32 4294901760, %v18048_v1  ;;  %v22061_v38 = vand.u32 4294901760, %v18053_v2  ;;  %14524 = vmatprep.subr.bf16.mxu0 %v18577_v5 }
  0x38   : > { %22053 = vst [vmem:[#allocation57_spill] sm:$0xff] %v18623_v31  ;;  %22057 = vst [vmem:[#allocation58_spill] sm:$0xff] %v18636_v4  ;;  %v18642_v62 = vpack.c.bf16 %v22059_v18, %v22058_v24  ;;  %v22064_v33 = vand.u32 4294901760, %v18585_v19  ;;  %v22065_v55 = vand.u32 4294901760, %v18590_v41  ;;  %v22067_v18 = vand.u32 4294901760, %v18065_v6  ;;  %14526 = vmatpush1.bf16.msra.mxu0 %v18603_v52 }
  0x39   : > { %22045 = vst [vmem:[#allocation54_spill] sm:$0xff] %v18597_v61  ;;  %22051 = vst [vmem:[#allocation56_spill] sm:$0xff] %v18613_v13  ;;  %v18630_v39 = vsub.f32 %v18048_v1, %v22054_v45  ;;  %v18647_v25 = vsub.f32 %v18053_v2, %v22061_v38  ;;  %v22062_v1 = vand.u32 4294901760, %v18058_v3  ;;  %v18667_v38 = vand.u32 4294901760, %v315_v7  ;;  %14716 = vmatprep.subr.bf16.mxu1 %v18597_v61 }
  0x3a   : > { %22060 = vst [vmem:[#allocation59_spill] sm:$0xff] %v18642_v62  ;;  %v18659_v40 = vpack.c.bf16 %v22065_v55, %v22064_v33  ;;  %v18665_v2 = vsub.f32 %v18065_v6, %v22067_v18  ;;  %v22070_v33 = vand.u32 4294901760, %v18071_v8  ;;  %v22071_v24 = vand.u32 4294901760, %v18076_v9  ;;  %14718 = vmatpush1.bf16.msra.mxu1 %v18613_v13  ;;  %14528 = vmatprep.subr.bf16.mxu0 %v18623_v31 }
  0x3b   : > { %v18652_v45 = vsub.f32 %v18058_v3, %v22062_v1  ;;  %22069 = vst [vmem:[#allocation63_spill] sm:$0xff] %v18667_v38  ;;  %v22072_v18 = vand.u32 4294901760, %v18630_v39  ;;  %v18689_v1 = vsub.f32 %v315_v7, %v18667_v38  ;;  %v22074_v5 = vand.u32 4294901760, %v18086_v14  ;;  %14720 = vmatprep.subr.bf16.mxu1 %v18636_v4 }
  0x3c   : > { %22066 = vst [vmem:[#allocation61_spill] sm:$0xff] %v18659_v40  ;;  %22068 = vst [vmem:[#allocation62_spill] sm:$0xff] %v18665_v2  ;;  %v18676_v55 = vsub.f32 %v18071_v8, %v22070_v33  ;;  %v18681_v6 = vsub.f32 %v18076_v9, %v22071_v24  ;;  %v22075_v33 = vand.u32 4294901760, %v18647_v25  ;;  %v22077_v54 = vand.u32 4294901760, %v18665_v2  ;;  %14530 = vmatpush1.bf16.msra.mxu0 %v18642_v62 }
  0x3d   : > { %22063 = vst [vmem:[#allocation60_spill] sm:$0xff] %v18652_v45  ;;  %v432_v46 = vsub.f32 %v18630_v39, %v22072_v18  ;;  %22073 = vst [vmem:[#allocation64_spill] sm:$0xff] %v18689_v1  ;;  %v18694_v8 = vsub.f32 %v18086_v14, %v22074_v5  ;;  %v22076_v24 = vand.u32 4294901760, %v18652_v45  ;;  %v18709_v14 = vand.u32 4294901760, %v18689_v1 }
  0x3e   : > { %v444_v9 = vsub.f32 %v18647_v25, %v22075_v33  ;;  %v1299_v5 = vsub.f32 %v18665_v2, %v22077_v54  ;;  %v22079_v3 = vand.u32 4294901760, %v18676_v55  ;;  %14722 = vmatpush1.bf16.msra.mxu1 %v18659_v40  ;;  %v22103_v40 = vand.u32 4294901760, %v18174_v37 }
  0x3f   : > { %v1287_v61 = vsub.f32 %v18652_v45, %v22076_v24  ;;  %v433_v7 = vand.u32 4294901760, %v432_v46  ;;  %22078 = vst [vmem:[#allocation65_spill] sm:$0xff] %v18709_v14  ;;  %v22080_v46 = vand.u32 4294901760, %v18681_v6  ;;  %v421_v33 = vsub.f32 %v18689_v1, %v18709_v14 }
  0x40   : > { %v445_v24 = vand.u32 4294901760, %v444_v9  ;;  %v438_v52 = vsub.f32 %v18676_v55, %v22079_v3  ;;  %v1300_v54 = vand.u32 4294901760, %v1299_v5  ;;  %v22081_v13 = vand.u32 4294901760, %v18694_v8 }
  0x41   : > { %v1288_v18 = vand.u32 4294901760, %v1287_v61  ;;  %v450_v38 = vsub.f32 %v18681_v6, %v22080_v46  ;;  %v22082_v61 = vand.u32 4294901760, %v18091_v15  ;;  %v22084_v46 = vand.u32 4294901760, %v18096_v16 }
  0x42   : > { %v1293_v31 = vsub.f32 %v18694_v8, %v22081_v13  ;;  %v18731_v3 = vpack.c.bf16 %v445_v24, %v433_v7  ;;  %v439_v2 = vand.u32 4294901760, %v438_v52  ;;  %v422_v4 = vand.u32 4294901760, %v421_v33 }
  0x43   : > { %v18729_v9 = vsub.f32 %v18091_v15, %v22082_v61  ;;  %v451_v45 = vand.u32 4294901760, %v450_v38  ;;  %v18736_v5 = vsub.f32 %v18096_v16, %v22084_v46  ;;  %v18739_v14 = vpack.c.bf16 %v1300_v54, %v1288_v18 }
  0x44   : > { %22083 = vst [vmem:[#allocation66_spill] sm:$0xff] %v18731_v3  ;;  %v1294_v13 = vand.u32 4294901760, %v1293_v31  ;;  %14532 = vmatprep.subr.bf16.mxu0 %v18731_v3  ;;  %v22087_v38 = vand.u32 4294901760, %v18109_v20  ;;  %v22088_v18 = vand.u32 4294901760, %v18115_v22  ;;  %v22092_v33 = vand.u32 4294901760, %v18139_v28  ;;  %423 = vmatmul.mubr.f32.vlgmr.msra.gmra.mrb[0].mxu0 %v422_v4 }
  0x45   : > { %22085 = vst [vmem:[#allocation67_spill] sm:$0xff] %v18739_v14  ;;  %v21656_v1 = vand.u32 4294901760, %v18729_v9  ;;  %v18744_v15 = vpack.c.bf16 %v451_v45, %v439_v2  ;;  %v21659_v52 = vand.u32 4294901760, %v18736_v5  ;;  %14724 = vmatprep.subr.bf16.mxu1 %v18739_v14  ;;  %v22090_v45 = vand.u32 4294901760, %v18120_v23  ;;  %1278 = vmatmul.mubr.f32.vlgmr.msra.gmra.mrb[0].mxu1 %v422_v4 }
  0x46   : > { %v18750_v16 = vsub.f32 %v18109_v20, %v22087_v38  ;;  %v18755_v7 = vsub.f32 %v18115_v22, %v22088_v18  ;;  %v18769_v20 = vsub.f32 %v18139_v28, %v22092_v33  ;;  %v22093_v24 = vand.u32 4294901760, %v18144_v29 }
  0x47   : > { %22086 = vst [vmem:[#allocation68_spill] sm:$0xff] %v18744_v15  ;;  %v1305_v31 = vsub.f32 %v18729_v9, %v21656_v1  ;;  %v18764_v2 = vsub.f32 %v18120_v23, %v22090_v45  ;;  %v456_v54 = vsub.f32 %v18736_v5, %v21659_v52  ;;  %v22095_v46 = vand.u32 4294901760, %v18149_v30  ;;  %14534 = vmatpush1.bf16.msra.mxu0 %v18744_v15 }
  0x48   : > { %22089 = vst [vmem:[#allocation69_spill] sm:$0xff] %v18755_v7  ;;  %v18774_v22 = vsub.f32 %v18144_v29, %v22093_v24  ;;  %v21658_v61 = vand.u32 4294901760, %v18750_v16  ;;  %v21657_v23 = vand.u32 4294901760, %v18755_v7  ;;  %v21665_v18 = vand.u32 4294901760, %v18769_v20 }
  0x49   : > { %22091 = vst [vmem:[#allocation70_spill] sm:$0xff] %v18764_v2  ;;  %v18784_v38 = vsub.f32 %v18149_v30, %v22095_v46  ;;  %v1306_v28 = vand.u32 4294901760, %v1305_v31  ;;  %v21662_v29 = vand.u32 4294901760, %v18764_v2  ;;  %v457_v33 = vand.u32 4294901760, %v456_v54 }
  0x4a   : > { %22094 = vst [vmem:[#allocation71_spill] sm:$0xff] %v18774_v22  ;;  %v21668_v45 = vand.u32 4294901760, %v18774_v22  ;;  %v468_v24 = vsub.f32 %v18750_v16, %v21658_v61  ;;  %v1311_v30 = vsub.f32 %v18755_v7, %v21657_v23  ;;  %v22097_v1 = vmov 0.0  }
  0x4b   : > { %22096 = vst [vmem:[#allocation72_spill] sm:$0xff] %v18784_v38  ;;  %v21669_v46 = vand.u32 4294901760, %v18784_v38  ;;  %653 = vmatprep.mubr.f32.mxu0 %v22097_v1  ;;  %1508 = vmatprep.mubr.f32.mxu1 %v22097_v1  ;;  %v18799_v4 = vpack.c.bf16 %v1306_v28, %v1294_v13  ;;  %v1323_v31 = vsub.f32 %v18764_v2, %v21662_v29  ;;  %v22099_v13 = vand.u32 4294901760, %v18164_v35 }
  0x4c   : > { %v462_v54 = vsub.f32 %v18769_v20, %v21665_v18  ;;  %v474_v23 = vsub.f32 %v18774_v22, %v21668_v45  ;;  %v469_v61 = vand.u32 4294901760, %v468_v24  ;;  %v1312_v52 = vand.u32 4294901760, %v1311_v30 }
  0x4d   : > { %22098 = vst [vmem:[#allocation73_spill] sm:$0xff] %v18799_v4  ;;  %v1317_v15 = vsub.f32 %v18784_v38, %v21669_v46  ;;  %v18816_v28 = vsub.f32 %v18164_v35, %v22099_v13  ;;  %14726 = vmatpush1.bf16.msra.mxu1 %v18799_v4  ;;  %v1324_v29 = vand.u32 4294901760, %v1323_v31  ;;  %v22101_v3 = vand.u32 4294901760, %v18169_v36 }
  0x4e   : > { %v463_v14 = vand.u32 4294901760, %v462_v54  ;;  %v475_v18 = vand.u32 4294901760, %v474_v23  ;;  %v18824_v24 = vpack.c.bf16 %v469_v61, %v457_v33  ;;  %v18830_v35 = vsub.f32 %v18174_v37, %v22103_v40 }
  0x4f   : > { %22100 = vst [vmem:[#allocation74_spill] sm:$0xff] %v18816_v28  ;;  %v18822_v45 = vsub.f32 %v18169_v36, %v22101_v3  ;;  %v1318_v30 = vand.u32 4294901760, %v1317_v15  ;;  %v21672_v46 = vand.u32 4294901760, %v18816_v28  ;;  %v18832_v13 = vpack.c.bf16 %v1324_v29, %v1312_v52 }
  0x50   : > { %22102 = vst [vmem:[#allocation75_spill] sm:$0xff] %v18824_v24  ;;  %v18834_v31 = vpack.c.bf16 %v475_v18, %v463_v14  ;;  %v22106_v54 = vand.u32 4294901760, %v18190_v42  ;;  %14536 = vmatprep.subr.bf16.mxu0 %v18824_v24  ;;  %v21674_v37 = vand.u32 4294901760, %v18830_v35  ;;  %v22107_v40 = vand.u32 4294901760, %v18195_v43 }
  0x51   : > { %22104 = vst [vmem:[#allocation76_spill] sm:$0xff] %v18832_v13  ;;  %v21673_v23 = vand.u32 4294901760, %v18822_v45  ;;  %v1329_v3 = vsub.f32 %v18816_v28, %v21672_v46  ;;  %v22108_v15 = vand.u32 4294901760, %v18200_v44  ;;  %14728 = vmatprep.subr.bf16.mxu1 %v18832_v13  ;;  %v22109_v29 = vand.u32 4294901760, %v18220_v49 }
  0x52   : > { %22105 = vst [vmem:[#allocation77_spill] sm:$0xff] %v18834_v31  ;;  %v18840_v36 = vsub.f32 %v18190_v42, %v22106_v54  ;;  %v18850_v14 = vsub.f32 %v18195_v43, %v22107_v40  ;;  %14538 = vmatpush1.bf16.msra.mxu0 %v18834_v31  ;;  %v22110_v18 = vand.u32 4294901760, %v18225_v50  ;;  %v492_v54 = vsub.f32 %v18830_v35, %v21674_v37 }
  0x53   : > { %v18855_v52 = vsub.f32 %v18200_v44, %v22108_v15  ;;  %v480_v42 = vsub.f32 %v18822_v45, %v21673_v23  ;;  %v18866_v43 = vsub.f32 %v18220_v49, %v22109_v29  ;;  %v1330_v33 = vand.u32 4294901760, %v1329_v3 }
  0x54   : > { %v21675_v61 = vand.u32 4294901760, %v18840_v36  ;;  %v18871_v44 = vsub.f32 %v18225_v50, %v22110_v18  ;;  %v21678_v40 = vand.u32 4294901760, %v18850_v14  ;;  %v493_v3 = vand.u32 4294901760, %v492_v54 }
  0x55   : > { %v21679_v15 = vand.u32 4294901760, %v18855_v52  ;;  %v481_v46 = vand.u32 4294901760, %v480_v42  ;;  %v21682_v29 = vand.u32 4294901760, %v18866_v43  ;;  %v18883_v50 = vpack.c.bf16 %v1330_v33, %v1318_v30 }
  0x56   : > { %v1335_v49 = vsub.f32 %v18840_v36, %v21675_v61  ;;  %v21685_v23 = vand.u32 4294901760, %v18871_v44  ;;  %v1347_v18 = vsub.f32 %v18850_v14, %v21678_v40  ;;  %v22112_v30 = vand.u32 4294901760, %v18230_v51 }
  0x57   : > { %22111 = vst [vmem:[#allocation78_spill] sm:$0xff] %v18883_v50  ;;  %v486_v37 = vsub.f32 %v18855_v52, %v21679_v15  ;;  %v498_v61 = vsub.f32 %v18866_v43, %v21682_v29  ;;  %14730 = vmatpush1.bf16.msra.mxu1 %v18883_v50  ;;  %v18903_v54 = vpack.c.bf16 %v493_v3, %v481_v46  ;;  %v22115_v4 = vand.u32 4294901760, %v18250_v57 }
  0x58   : > { %v1336_v42 = vand.u32 4294901760, %v1335_v49  ;;  %v1341_v31 = vsub.f32 %v18871_v44, %v21685_v23  ;;  %v18900_v33 = vsub.f32 %v18230_v51, %v22112_v30  ;;  %v1348_v40 = vand.u32 4294901760, %v1347_v18 }
  0x59   : > { %22113 = vst [vmem:[#allocation79_spill] sm:$0xff] %v18903_v54  ;;  %v487_v15 = vand.u32 4294901760, %v486_v37  ;;  %v22114_v49 = vand.u32 4294901760, %v18245_v56  ;;  %v499_v29 = vand.u32 4294901760, %v498_v61  ;;  %v18914_v51 = vsub.f32 %v18250_v57, %v22115_v4  ;;  %14540 = vmatprep.subr.bf16.mxu0 %v18903_v54 }
  0x5a   : > { %v1342_v24 = vand.u32 4294901760, %v1341_v31  ;;  %v21689_v23 = vand.u32 4294901760, %v18900_v33  ;;  %v18917_v46 = vpack.c.bf16 %v1348_v40, %v1336_v42  ;;  %v22117_v3 = vand.u32 4294901760, %v18255_v58 }
  0x5b   : > { %v18908_v13 = vsub.f32 %v18245_v56, %v22114_v49  ;;  %v22118_v31 = vand.u32 4294901760, %v18270_v63  ;;  %v18930_v18 = vpack.c.bf16 %v499_v29, %v487_v15  ;;  %v21690_v4 = vand.u32 4294901760, %v18914_v51 }
  0x5c   : > { %22116 = vst [vmem:[#allocation80_spill] sm:$0xff] %v18917_v46  ;;  %v18923_v56 = vsub.f32 %v18255_v58, %v22117_v3  ;;  %v1353_v57 = vsub.f32 %v18900_v33, %v21689_v23  ;;  %v22120_v40 = vand.u32 4294901760, %v18275_v0  ;;  %14732 = vmatprep.subr.bf16.mxu1 %v18917_v46  ;;  %v22121_v29 = vand.u32 4294901760, %v18280_v47 }
  0x5d   : > { %v21688_v37 = vand.u32 4294901760, %v18908_v13  ;;  %v18928_v61 = vsub.f32 %v18270_v63, %v22118_v31  ;;  %22119 = vst [vmem:[#allocation81_spill] sm:$0xff] %v18930_v18  ;;  %14542 = vmatpush1.bf16.msra.mxu0 %v18930_v18  ;;  %v22122_v31 = vand.u32 4294901760, %v18300_v34  ;;  %v22124_v46 = vand.u32 4294901760, %v18305_v53 }
  0x5e   : > { %v18939_v42 = vsub.f32 %v18275_v0, %v22120_v40  ;;  %v21693_v63 = vand.u32 4294901760, %v18923_v56  ;;  %v18950_v30 = vsub.f32 %v18280_v47, %v22121_v29  ;;  %v1354_v49 = vand.u32 4294901760, %v1353_v57 }
  0x5f   : > { %v504_v58 = vsub.f32 %v18908_v13, %v21688_v37  ;;  %v21696_v15 = vand.u32 4294901760, %v18928_v61  ;;  %v516_v0 = vsub.f32 %v18914_v51, %v21690_v4  ;;  %v18960_v40 = vsub.f32 %v18300_v34, %v22122_v31 }
  0x60   : > { %v21698_v3 = vand.u32 4294901760, %v18939_v42  ;;  %v1359_v47 = vsub.f32 %v18923_v56, %v21693_v63  ;;  %v21697_v29 = vand.u32 4294901760, %v18950_v30  ;;  %v18969_v23 = vpack.c.bf16 %v1354_v49, %v1342_v24 }
  0x61   : > { %v505_v37 = vand.u32 4294901760, %v504_v58  ;;  %v1371_v57 = vsub.f32 %v18928_v61, %v21696_v15  ;;  %v517_v4 = vand.u32 4294901760, %v516_v0  ;;  %v21699_v34 = vand.u32 4294901760, %v18960_v40 }
  0x62   : > { %22123 = vst [vmem:[#allocation82_spill] sm:$0xff] %v18969_v23  ;;  %v510_v18 = vsub.f32 %v18939_v42, %v21698_v3  ;;  %v1360_v58 = vand.u32 4294901760, %v1359_v47  ;;  %v522_v63 = vsub.f32 %v18950_v30, %v21697_v29  ;;  %v18981_v15 = vsub.f32 %v18305_v53, %v22124_v46  ;;  %14734 = vmatpush1.bf16.msra.mxu1 %v18969_v23  ;;  %v22143_v23 = vld [vmem:[#allocation26_spill] sm:$0xff] }
  0x63   : > { %v1372_v31 = vand.u32 4294901760, %v1371_v57  ;;  %v18984_v24 = vpack.c.bf16 %v517_v4, %v505_v37  ;;  %v1365_v0 = vsub.f32 %v18960_v40, %v21699_v34  ;;  %v22127_v47 = vand.u32 4294901760, %v18310_v48 }
  0x64   : > { %22125 = vst [vmem:[#allocation83_spill] sm:$0xff] %v18981_v15  ;;  %v511_v49 = vand.u32 4294901760, %v510_v18  ;;  %v523_v3 = vand.u32 4294901760, %v522_v63  ;;  %v21704_v53 = vand.u32 4294901760, %v18981_v15  ;;  %v22129_v46 = vand.u32 4294901760, %v18326_v27 }
  0x65   : > { %22126 = vst [vmem:[#allocation84_spill] sm:$0xff] %v18984_v24  ;;  %v18992_v57 = vsub.f32 %v18310_v48, %v22127_v47  ;;  %v18994_v29 = vpack.c.bf16 %v1372_v31, %v1360_v58  ;;  %14544 = vmatprep.subr.bf16.mxu0 %v18984_v24  ;;  %v1366_v18 = vand.u32 4294901760, %v1365_v0  ;;  %v22130_v34 = vand.u32 4294901760, %v18331_v26  ;;  %v22132_v58 = vld [vmem:[#allocation22_spill] sm:$0xff] }
  0x66   : > { %v19000_v37 = vsub.f32 %v18326_v27, %v22129_v46  ;;  %v22133_v31 = vand.u32 4294901760, %v22132_v58  ;;  %v19015_v47 = vpack.c.bf16 %v523_v3, %v511_v49  ;;  %v1377_v27 = vsub.f32 %v18981_v15, %v21704_v53  ;;  %v22136_v46 = vld [vmem:[#allocation24_spill] sm:$0xff]  ;;  %v22140_v49 = vld [vmem:[#allocation25_spill] sm:$0xff] }
  0x67   : > { %22128 = vst [vmem:[#allocation85_spill] sm:$0xff] %v18994_v29  ;;  %v19007_v48 = vsub.f32 %v18331_v26, %v22130_v34  ;;  %14736 = vmatprep.subr.bf16.mxu1 %v18994_v29  ;;  %v22137_v4 = vand.u32 4294901760, %v22136_v46  ;;  %v22139_v34 = vand.u32 4294901760, %v18992_v57  ;;  %v22141_v29 = vand.u32 4294901760, %v22140_v49 }
  0x68   : > { %v19012_v63 = vsub.f32 %v22132_v58, %v22133_v31  ;;  %22135 = vst [vmem:[#allocation87_spill] sm:$0xff] %v19015_v47  ;;  %v21713_v0 = vand.u32 4294901760, %v19000_v37  ;;  %14546 = vmatpush1.bf16.msra.mxu0 %v19015_v47  ;;  %v1378_v53 = vand.u32 4294901760, %v1377_v27 }
  0x69   : > { %22131 = vst [vmem:[#allocation86_spill] sm:$0xff] %v19007_v48  ;;  %v19024_v26 = vsub.f32 %v22136_v46, %v22137_v4  ;;  %v528_v58 = vsub.f32 %v18992_v57, %v22139_v34  ;;  %v19034_v24 = vsub.f32 %v22140_v49, %v22141_v29  ;;  %v22144_v34 = vand.u32 4294901760, %v22143_v23 }
  0x6a   : > { %22134 = vst [vmem:[#allocation22_spill] sm:$0xff] %v19012_v63  ;;  %v540_v4 = vsub.f32 %v19000_v37, %v21713_v0  ;;  %v22146_v54 = vand.u32 4294901760, %v19007_v48  ;;  %v22147_v49 = vand.u32 4294901760, %v19012_v63  ;;  %v19053_v50 = vpack.c.bf16 %v1378_v53, %v1366_v18 }
  0x6b   : > { %22138 = vst [vmem:[#allocation24_spill] sm:$0xff] %v19024_v26  ;;  %22142 = vst [vmem:[#allocation25_spill] sm:$0xff] %v19034_v24  ;;  %v21720_v46 = vand.u32 4294901760, %v19024_v26  ;;  %v19044_v31 = vsub.f32 %v22143_v23, %v22144_v34  ;;  %v529_v3 = vand.u32 4294901760, %v528_v58  ;;  %v21721_v47 = vand.u32 4294901760, %v19034_v24 }
  0x6c   : > { %v1383_v29 = vsub.f32 %v19007_v48, %v22146_v54  ;;  %v1395_v27 = vsub.f32 %v19012_v63, %v22147_v49  ;;  %22148 = vst [vmem:[#allocation88_spill] sm:$0xff] %v19053_v50  ;;  %v541_v0 = vand.u32 4294901760, %v540_v4  ;;  %v22149_v48 = vld [vmem:[#allocation29_spill] sm:$0xff]  ;;  %14738 = vmatpush1.bf16.msra.mxu1 %v19053_v50 }
  0x6d   : > { %22145 = vst [vmem:[#allocation26_spill] sm:$0xff] %v19044_v31  ;;  %v534_v62 = vsub.f32 %v19024_v26, %v21720_v46  ;;  %v21726_v23 = vand.u32 4294901760, %v19044_v31  ;;  %v546_v54 = vsub.f32 %v19034_v24, %v21721_v47  ;;  %v22150_v15 = vand.u32 4294901760, %v22149_v48 }
  0x6e   : > { %v1384_v58 = vand.u32 4294901760, %v1383_v29  ;;  %v1396_v34 = vand.u32 4294901760, %v1395_v27  ;;  %v19068_v53 = vpack.c.bf16 %v541_v0, %v529_v3  ;;  %v22153_v29 = vld [vmem:[#allocation30_spill] sm:$0xff] }
  0x6f   : > { %v19065_v49 = vsub.f32 %v22149_v48, %v22150_v15  ;;  %v535_v18 = vand.u32 4294901760, %v534_v62  ;;  %v1389_v4 = vsub.f32 %v19044_v31, %v21726_v23  ;;  %v22154_v27 = vand.u32 4294901760, %v22153_v29  ;;  %v22157_v48 = vld [vmem:[#allocation31_spill] sm:$0xff]  ;;  %v22160_v23 = vld [vmem:[#allocation33_spill] sm:$0xff] }
  0x70   : > { %22152 = vst [vmem:[#allocation89_spill] sm:$0xff] %v19068_v53  ;;  %v19078_v47 = vpack.c.bf16 %v1396_v34, %v1384_v58  ;;  %v547_v24 = vand.u32 4294901760, %v546_v54  ;;  %v22158_v26 = vand.u32 4294901760, %v22157_v48  ;;  %14548 = vmatprep.subr.bf16.mxu0 %v19068_v53  ;;  %v22161_v50 = vand.u32 4294901760, %v22160_v23  ;;  %v22163_v58 = vld [vmem:[#allocation34_spill] sm:$0xff] }
  0x71   : > { %22151 = vst [vmem:[#allocation29_spill] sm:$0xff] %v19065_v49  ;;  %v19076_v46 = vsub.f32 %v22153_v29, %v22154_v27  ;;  %v21733_v15 = vand.u32 4294901760, %v19065_v49  ;;  %v1390_v62 = vand.u32 4294901760, %v1389_v4  ;;  %v22164_v34 = vand.u32 4294901760, %v22163_v58 }
  0x72   : > { %22156 = vst [vmem:[#allocation90_spill] sm:$0xff] %v19078_v47  ;;  %v19084_v0 = vsub.f32 %v22157_v48, %v22158_v26  ;;  %v19091_v29 = vsub.f32 %v22160_v23, %v22161_v50  ;;  %14740 = vmatprep.subr.bf16.mxu1 %v19078_v47  ;;  %v19099_v27 = vpack.c.bf16 %v547_v24, %v535_v18  ;;  %v22166_v48 = vld [vmem:[#allocation35_spill] sm:$0xff]  ;;  %v22170_v18 = vld [vmem:[#allocation37_spill] sm:$0xff] }
  0x73   : > { %22155 = vst [vmem:[#allocation30_spill] sm:$0xff] %v19076_v46  ;;  %v19096_v54 = vsub.f32 %v22163_v58, %v22164_v34  ;;  %v1401_v26 = vsub.f32 %v19065_v49, %v21733_v15  ;;  %v22167_v3 = vand.u32 4294901760, %v22166_v48  ;;  %v22169_v23 = vand.u32 4294901760, %v19076_v46  ;;  %v22173_v49 = vld [vmem:[#allocation38_spill] sm:$0xff] }
  0x74   : > { %22159 = vst [vmem:[#allocation31_spill] sm:$0xff] %v19084_v0  ;;  %22162 = vst [vmem:[#allocation33_spill] sm:$0xff] %v19091_v29  ;;  %v21742_v4 = vand.u32 4294901760, %v19084_v0  ;;  %v22171_v47 = vand.u32 4294901760, %v22170_v18  ;;  %14550 = vmatpush1.bf16.msra.mxu0 %v19099_v27 }
  0x75   : > { %22165 = vst [vmem:[#allocation34_spill] sm:$0xff] %v19099_v27  ;;  %v19108_v50 = vsub.f32 %v22166_v48, %v22167_v3  ;;  %v552_v58 = vsub.f32 %v19076_v46, %v22169_v23  ;;  %v1402_v15 = vand.u32 4294901760, %v1401_v26  ;;  %v22174_v23 = vand.u32 4294901760, %v22173_v49 }
  0x76   : > { %v19118_v53 = vsub.f32 %v22170_v18, %v22171_v47  ;;  %v564_v3 = vsub.f32 %v19084_v0, %v21742_v4  ;;  %v22175_v46 = vand.u32 4294901760, %v19091_v29  ;;  %v22176_v18 = vand.u32 4294901760, %v19096_v54 }
  0x77   : > { %22168 = vst [vmem:[#allocation35_spill] sm:$0xff] %v19108_v50  ;;  %v21749_v48 = vand.u32 4294901760, %v19108_v50  ;;  %v19128_v34 = vsub.f32 %v22173_v49, %v22174_v23  ;;  %v553_v24 = vand.u32 4294901760, %v552_v58  ;;  %v19137_v31 = vpack.c.bf16 %v1402_v15, %v1390_v62 }
  0x78   : > { %22172 = vst [vmem:[#allocation37_spill] sm:$0xff] %v19118_v53  ;;  %v1407_v47 = vsub.f32 %v19091_v29, %v22175_v46  ;;  %v1419_v26 = vsub.f32 %v19096_v54, %v22176_v18  ;;  %v21750_v27 = vand.u32 4294901760, %v19118_v53  ;;  %v565_v4 = vand.u32 4294901760, %v564_v3  ;;  %v22178_v29 = vld [vmem:[#allocation39_spill] sm:$0xff] }
  0x79   : > { %22177 = vst [vmem:[#allocation38_spill] sm:$0xff] %v19137_v31  ;;  %v558_v0 = vsub.f32 %v19108_v50, %v21749_v48  ;;  %v21755_v49 = vand.u32 4294901760, %v19128_v34  ;;  %v22179_v63 = vand.u32 4294901760, %v22178_v29  ;;  %14742 = vmatpush1.bf16.msra.mxu1 %v19137_v31 }
  0x7a   : > { %v1408_v58 = vand.u32 4294901760, %v1407_v47  ;;  %v1420_v23 = vand.u32 4294901760, %v1419_v26  ;;  %v570_v46 = vsub.f32 %v19118_v53, %v21750_v27  ;;  %v19152_v15 = vpack.c.bf16 %v565_v4, %v553_v24  ;;  %v22181_v47 = vld [vmem:[#allocation42_spill] sm:$0xff] }
  0x7b   : > { %v19149_v18 = vsub.f32 %v22178_v29, %v22179_v63  ;;  %v559_v62 = vand.u32 4294901760, %v558_v0  ;;  %v1413_v3 = vsub.f32 %v19128_v34, %v21755_v49  ;;  %v22182_v26 = vand.u32 4294901760, %v22181_v47  ;;  %v22184_v29 = vld [vmem:[#allocation43_spill] sm:$0xff] }
  0x7c   : > { %22180 = vst [vmem:[#allocation39_spill] sm:$0xff] %v19152_v15  ;;  %v19162_v27 = vpack.c.bf16 %v1420_v23, %v1408_v58  ;;  %v571_v53 = vand.u32 4294901760, %v570_v46  ;;  %v22185_v50 = vand.u32 4294901760, %v22184_v29  ;;  %14552 = vmatprep.subr.bf16.mxu0 %v19152_v15  ;;  %v22187_v49 = vand.u32 4294901760, %v18471_v21  ;;  %v22189_v58 = vld [vmem:[#allocation45_spill] sm:$0xff] }
  0x7d   : > { %v19160_v48 = vsub.f32 %v22181_v47, %v22182_v26  ;;  %v21758_v63 = vand.u32 4294901760, %v19149_v18  ;;  %v1414_v0 = vand.u32 4294901760, %v1413_v3  ;;  %v22190_v23 = vand.u32 4294901760, %v22189_v58 }
  0x7e   : > { %22183 = vst [vmem:[#allocation42_spill] sm:$0xff] %v19162_v27  ;;  %v19168_v4 = vsub.f32 %v22184_v29, %v22185_v50  ;;  %v19175_v47 = vsub.f32 %v18471_v21, %v22187_v49  ;;  %14744 = vmatprep.subr.bf16.mxu1 %v19162_v27  ;;  %v19183_v26 = vpack.c.bf16 %v571_v53, %v559_v62  ;;  %v22192_v29 = vand.u32 4294901760, %v18490_v17  ;;  %v22193_v62 = vld [vmem:[#allocation46_spill] sm:$0xff] }
  0x7f   : > { %v21759_v24 = vand.u32 4294901760, %v19160_v48  ;;  %v19180_v46 = vsub.f32 %v22189_v58, %v22190_v23  ;;  %v1425_v50 = vsub.f32 %v19149_v18, %v21758_v63  ;;  %v22194_v23 = vand.u32 4294901760, %v22193_v62 }
  0x80   : > { %22186 = vst [vmem:[#allocation43_spill] sm:$0xff] %v19168_v4  ;;  %22188 = vst [vmem:[#allocation91_spill] sm:$0xff] %v19175_v47  ;;  %v21766_v3 = vand.u32 4294901760, %v19168_v4  ;;  %v19192_v21 = vsub.f32 %v18490_v17, %v22192_v29  ;;  %14554 = vmatpush1.bf16.msra.mxu0 %v19183_v26  ;;  %v22197_v15 = vand.u32 4294901760, %v19175_v47 }
  0x81   : > { %22191 = vst [vmem:[#allocation45_spill] sm:$0xff] %v19183_v26  ;;  %v576_v49 = vsub.f32 %v19160_v48, %v21759_v24  ;;  %v19202_v27 = vsub.f32 %v22193_v62, %v22194_v23  ;;  %v1426_v63 = vand.u32 4294901760, %v1425_v50  ;;  %v22196_v24 = vand.u32 4294901760, %v18510_v12 }
  0x82   : > { %v588_v17 = vsub.f32 %v19168_v4, %v21766_v3  ;;  %v21771_v29 = vand.u32 4294901760, %v19192_v21  ;;  %v1431_v62 = vsub.f32 %v19175_v47, %v22197_v15  ;;  %v22198_v23 = vand.u32 4294901760, %v19180_v46 }
  0x83   : > { %22195 = vst [vmem:[#allocation46_spill] sm:$0xff] %v19202_v27  ;;  %v19212_v58 = vsub.f32 %v18510_v12, %v22196_v24  ;;  %v577_v53 = vand.u32 4294901760, %v576_v49  ;;  %v21772_v26 = vand.u32 4294901760, %v19202_v27  ;;  %v19221_v31 = vpack.c.bf16 %v1426_v63, %v1414_v0 }
  0x84   : > { %v1443_v50 = vsub.f32 %v19180_v46, %v22198_v23  ;;  %v589_v3 = vand.u32 4294901760, %v588_v17  ;;  %v582_v4 = vsub.f32 %v19192_v21, %v21771_v29  ;;  %v1432_v24 = vand.u32 4294901760, %v1431_v62  ;;  %v22202_v62 = vld [vmem:[#allocation48_spill] sm:$0xff] }
  0x85   : > { %22199 = vst [vmem:[#allocation92_spill] sm:$0xff] %v19221_v31  ;;  %v21775_v12 = vand.u32 4294901760, %v19212_v58  ;;  %v594_v15 = vsub.f32 %v19202_v27, %v21772_v26  ;;  %v22200_v47 = vand.u32 4294901760, %v18515_v11  ;;  %14746 = vmatpush1.bf16.msra.mxu1 %v19221_v31 }
  0x86   : > { %v1444_v49 = vand.u32 4294901760, %v1443_v50  ;;  %v19236_v63 = vpack.c.bf16 %v589_v3, %v577_v53  ;;  %v583_v0 = vand.u32 4294901760, %v582_v4  ;;  %v22203_v50 = vand.u32 4294901760, %v22202_v62 }
  0x87   : > { %v19233_v23 = vsub.f32 %v18515_v11, %v22200_v47  ;;  %v1437_v17 = vsub.f32 %v19212_v58, %v21775_v12  ;;  %v595_v27 = vand.u32 4294901760, %v594_v15  ;;  %v22205_v47 = vand.u32 4294901760, %v18541_v32 }
  0x88   : > { %22201 = vst [vmem:[#allocation93_spill] sm:$0xff] %v19236_v63  ;;  %v19244_v29 = vsub.f32 %v22202_v62, %v22203_v50  ;;  %v19246_v26 = vpack.c.bf16 %v1444_v49, %v1432_v24  ;;  %14556 = vmatprep.subr.bf16.mxu0 %v19236_v63  ;;  %v22206_v12 = vand.u32 4294901760, %v18546_v10  ;;  %v22208_v24 = vand.u32 4294901760, %v18561_v59  ;;  %v22210_v50 = vld [vmem:[#allocation52_spill] sm:$0xff] }
  0x89   : > { %v21776_v11 = vand.u32 4294901760, %v19233_v23  ;;  %v19252_v3 = vsub.f32 %v18541_v32, %v22205_v47  ;;  %v1438_v4 = vand.u32 4294901760, %v1437_v17  ;;  %v19267_v15 = vpack.c.bf16 %v595_v27, %v583_v0 }
  0x8a   : > { %22204 = vst [vmem:[#allocation48_spill] sm:$0xff] %v19246_v26  ;;  %v21777_v53 = vand.u32 4294901760, %v19244_v29  ;;  %v19259_v62 = vsub.f32 %v18546_v10, %v22206_v12  ;;  %v19264_v49 = vsub.f32 %v18561_v59, %v22208_v24  ;;  %14748 = vmatprep.subr.bf16.mxu1 %v19246_v26  ;;  %v22211_v47 = vand.u32 4294901760, %v22210_v50 }
  0x8b   : > { %22209 = vst [vmem:[#allocation95_spill] sm:$0xff] %v19267_v15  ;;  %v1449_v32 = vsub.f32 %v19233_v23, %v21776_v11  ;;  %v21784_v17 = vand.u32 4294901760, %v19252_v3  ;;  %v22212_v0 = vand.u32 4294901760, %v18571_v60  ;;  %14558 = vmatpush1.bf16.msra.mxu0 %v19267_v15 }
  0x8c   : > { %22207 = vst [vmem:[#allocation94_spill] sm:$0xff] %v19259_v62  ;;  %v19276_v10 = vsub.f32 %v22210_v50, %v22211_v47  ;;  %v600_v59 = vsub.f32 %v19244_v29, %v21777_v53  ;;  %v22213_v53 = vand.u32 4294901760, %v18585_v19  ;;  %v22214_v26 = vand.u32 4294901760, %v19259_v62 }
  0x8d   : > { %v19286_v24 = vsub.f32 %v18571_v60, %v22212_v0  ;;  %v1450_v11 = vand.u32 4294901760, %v1449_v32  ;;  %v612_v50 = vsub.f32 %v19252_v3, %v21784_v17  ;;  %v22215_v0 = vand.u32 4294901760, %v19264_v49 }
  0x8e   : > { %v21789_v47 = vand.u32 4294901760, %v19276_v10  ;;  %v19296_v12 = vsub.f32 %v18585_v19, %v22213_v53  ;;  %v601_v27 = vand.u32 4294901760, %v600_v59  ;;  %v1455_v60 = vsub.f32 %v19259_v62, %v22214_v26 }
  0x8f   : > { %v1467_v32 = vsub.f32 %v19264_v49, %v22215_v0  ;;  %v21790_v15 = vand.u32 4294901760, %v19286_v24  ;;  %v19305_v63 = vpack.c.bf16 %v1450_v11, %v1438_v4  ;;  %v613_v17 = vand.u32 4294901760, %v612_v50 }
  0x90   : > { %v606_v31 = vsub.f32 %v19276_v10, %v21789_v47  ;;  %v21792_v19 = vand.u32 4294901760, %v19296_v12  ;;  %v1456_v53 = vand.u32 4294901760, %v1455_v60  ;;  %v22217_v62 = vand.u32 4294901760, %v18590_v41 }
  0x91   : > { %22216 = vst [vmem:[#allocation52_spill] sm:$0xff] %v19305_v63  ;;  %v1468_v59 = vand.u32 4294901760, %v1467_v32  ;;  %v618_v26 = vsub.f32 %v19286_v24, %v21790_v15  ;;  %14750 = vmatpush1.bf16.msra.mxu1 %v19305_v63  ;;  %v19320_v11 = vpack.c.bf16 %v613_v17, %v601_v27  ;;  %v19345_v27 = vpack.c.bf16 %v18764_v2, %v18755_v7 }
  0x92   : > { %v19317_v0 = vsub.f32 %v18590_v41, %v22217_v62  ;;  %v607_v4 = vand.u32 4294901760, %v606_v31  ;;  %v1461_v50 = vsub.f32 %v19296_v12, %v21792_v19  ;;  %v19331_v41 = vpack.c.bf16 %v18647_v25, %v18630_v39 }
  0x93   : > { %22218 = vst [vmem:[#allocation96_spill] sm:$0xff] %v19320_v11  ;;  %v19325_v60 = vpack.c.bf16 %v1468_v59, %v1456_v53  ;;  %v619_v32 = vand.u32 4294901760, %v618_v26  ;;  %14560 = vmatprep.subr.bf16.mxu0 %v19320_v11  ;;  %v19335_v62 = vpack.c.bf16 %v18750_v16, %v18736_v5  ;;  %22223 = vst [vmem:[#allocation101_spill] sm:$0xff] %v19345_v27  ;;  %v22232_v11 = vld [vmem:[#allocation62_spill] sm:$0xff]  ;;  %v22246_v2 = vand.u32 4294901760, %v18850_v14 }
  0x94   : > { %v21791_v47 = vand.u32 4294901760, %v19317_v0  ;;  %v1462_v15 = vand.u32 4294901760, %v1461_v50  ;;  %22220 = vst [vmem:[#allocation98_spill] sm:$0xff] %v19331_v41  ;;  %v19349_v53 = vpack.c.bf16 %v18774_v22, %v18769_v20  ;;  %v19353_v59 = vpack.c.bf16 %v18816_v28, %v18784_v38  ;;  %v22235_v38 = vld [vmem:[#allocation63_spill] sm:$0xff] }
  0x95   : > { %22219 = vst [vmem:[#allocation97_spill] sm:$0xff] %v19325_v60  ;;  %22221 = vst [vmem:[#allocation99_spill] sm:$0xff] %v19335_v62  ;;  %14752 = vmatprep.subr.bf16.mxu1 %v19325_v60  ;;  %v19338_v31 = vpack.c.bf16 %v619_v32, %v607_v4  ;;  %v19357_v26 = vpack.c.bf16 %v18830_v35, %v18822_v45  ;;  %v19361_v4 = vpack.c.bf16 %v18850_v14, %v18840_v36  ;;  %v22231_v60 = vld [vmem:[#allocation60_spill] sm:$0xff] }
  0x96   : > { %v1473_v17 = vsub.f32 %v19317_v0, %v21791_v47  ;;  %22224 = vst [vmem:[#allocation102_spill] sm:$0xff] %v19349_v53  ;;  %22225 = vst [vmem:[#allocation103_spill] sm:$0xff] %v19353_v59  ;;  %v19365_v50 = vpack.c.bf16 %v18866_v43, %v18855_v52  ;;  %v19370_v47 = vpack.c.bf16 %v18681_v6, %v18676_v55  ;;  %v22257_v14 = vand.u32 4294901760, %v18923_v56 }
  0x97   : > { %22222 = vst [vmem:[#allocation100_spill] sm:$0xff] %v19338_v31  ;;  %22226 = vst [vmem:[#allocation104_spill] sm:$0xff] %v19357_v26  ;;  %14562 = vmatpush1.bf16.msra.mxu0 %v19338_v31  ;;  %v19374_v19 = vpack.c.bf16 %v18900_v33, %v18871_v44  ;;  %v19379_v63 = vpack.c.bf16 %v22232_v11, %v22231_v60 }
  0x98   : > { %22227 = vst [vmem:[#allocation105_spill] sm:$0xff] %v19361_v4  ;;  %22228 = vst [vmem:[#allocation106_spill] sm:$0xff] %v19365_v50  ;;  %v1474_v32 = vand.u32 4294901760, %v1473_v17  ;;  %14564 = vmatprep.subr.bf16.mxu0 %v19331_v41  ;;  %v19388_v17 = vpack.c.bf16 %v18729_v9, %v18694_v8  ;;  %v19394_v41 = vpack.c.bf16 %v19317_v0, %v19296_v12 }
  0x99   : > { %22229 = vst [vmem:[#allocation107_spill] sm:$0xff] %v19370_v47  ;;  %22230 = vst [vmem:[#allocation108_spill] sm:$0xff] %v19374_v19 }
  0x9a   : > { %22233 = vst [vmem:[#allocation60_spill] sm:$0xff] %v19379_v63  ;;  %v19381_v28 = vpack.c.bf16 %v1474_v32, %v1462_v15  ;;  %655 = vmatmul.mubr.f32.vlgmr.msra.gmra.mrb[0].mxu0 %v22235_v38  ;;  %22236 = vst [vmem:[#allocation109_spill] sm:$0xff] %v19388_v17  ;;  %v19400_v15 = vpack.c.bf16 %v18914_v51, %v18908_v13  ;;  %v19404_v32 = vpack.c.bf16 %v18928_v61, %v18923_v56 }
  0x9b   : > { %14566 = vmatpush1.bf16.msra.mxu0 %v19370_v47  ;;  %22237 = vst [vmem:[#allocation110_spill] sm:$0xff] %v19394_v41  ;;  %789 = vmatprep.mubr.f32.mxu0 %v22097_v1  ;;  %v19408_v47 = vpack.c.bf16 %v18950_v30, %v18939_v42  ;;  %v22268_v56 = vand.u32 4294901760, %v19000_v37 }
  0x9c   : > { %22234 = vst [vmem:[#allocation62_spill] sm:$0xff] %v19381_v28  ;;  %14754 = vmatpush1.bf16.msra.mxu1 %v19381_v28  ;;  %14568 = vmatprep.subr.bf16.mxu0 %v19335_v62  ;;  %22238 = vst [vmem:[#allocation111_spill] sm:$0xff] %v19400_v15  ;;  %v19414_v62 = vpack.c.bf16 %v19000_v37, %v18992_v57  ;;  %v22243_v28 = vand.u32 4294901760, %v18830_v35  ;;  %v22285_v37 = vld [vmem:[#allocation30_spill] sm:$0xff] }
  0x9d   : > { %14756 = vmatprep.subr.bf16.mxu1 %v19379_v63  ;;  %22239 = vst [vmem:[#allocation112_spill] sm:$0xff] %v19404_v32  ;;  %22240 = vst [vmem:[#allocation113_spill] sm:$0xff] %v19408_v47  ;;  %v22242_v63 = vand.u32 4294901760, %v18822_v45  ;;  %v22251_v45 = vand.u32 4294901760, %v18871_v44  ;;  %v22260_v44 = vand.u32 4294901760, %v18939_v42 }
  0x9e   : > { %22241 = vst [vmem:[#allocation114_spill] sm:$0xff] %v19414_v62 }
  0x9f   : > { %1510 = vmatmul.mubr.f32.vlgmr.msra.gmra.mrb[0].mxu1 %v22235_v38  ;;  %14570 = vmatpush1.bf16.msra.mxu0 %v19349_v53  ;;  %v19420_v31 = vpack.c.bf16 %v22243_v28, %v22242_v63  ;;  %v22245_v38 = vand.u32 4294901760, %v18840_v36  ;;  %v22248_v53 = vand.u32 4294901760, %v18855_v52  ;;  %v22252_v28 = vand.u32 4294901760, %v18900_v33 }
  0xa0   : > { %14758 = vmatpush1.bf16.msra.mxu1 %v19388_v17  ;;  %14572 = vmatprep.subr.bf16.mxu0 %v19357_v26  ;;  %v22249_v17 = vand.u32 4294901760, %v18866_v43  ;;  %v22254_v36 = vand.u32 4294901760, %v18908_v13  ;;  %v22258_v52 = vand.u32 4294901760, %v18928_v61  ;;  %v22261_v33 = vand.u32 4294901760, %v18950_v30  ;;  %v22270_v61 = vld [vmem:[#allocation86_spill] sm:$0xff]  ;;  %v22275_v30 = vld [vmem:[#allocation24_spill] sm:$0xff] }
  0xa1   : > { %22244 = vst [vmem:[#allocation115_spill] sm:$0xff] %v19420_v31  ;;  %v19426_v7 = vpack.c.bf16 %v22246_v2, %v22245_v38  ;;  %14760 = vmatprep.subr.bf16.mxu1 %v19345_v27  ;;  %v19440_v35 = vpack.c.bf16 %v22252_v28, %v22251_v45  ;;  %v22255_v2 = vand.u32 4294901760, %v18914_v51  ;;  %1644 = vmatprep.mubr.f32.mxu1 %v22097_v1  ;;  %v22263_v13 = vand.u32 4294901760, %v18960_v40  ;;  %v22282_v27 = vld [vmem:[#allocation29_spill] sm:$0xff] }
  0xa2   : > { %v19434_v22 = vpack.c.bf16 %v22249_v17, %v22248_v53  ;;  %v19453_v43 = vpack.c.bf16 %v22258_v52, %v22257_v14  ;;  %v19459_v63 = vpack.c.bf16 %v22261_v33, %v22260_v44  ;;  %v22264_v53 = vld [vmem:[#allocation83_spill] sm:$0xff]  ;;  %v22267_v45 = vand.u32 4294901760, %v18992_v57  ;;  %v22277_v44 = vld [vmem:[#allocation25_spill] sm:$0xff] }
  0xa3   : > { %22247 = vst [vmem:[#allocation116_spill] sm:$0xff] %v19426_v7  ;;  %22253 = vst [vmem:[#allocation118_spill] sm:$0xff] %v19440_v35  ;;  %v19446_v38 = vpack.c.bf16 %v22255_v2, %v22254_v36  ;;  %v22265_v51 = vand.u32 4294901760, %v22264_v53  ;;  %v22271_v36 = vand.u32 4294901760, %v22270_v61  ;;  %v22272_v2 = vld [vmem:[#allocation22_spill] sm:$0xff]  ;;  %v22276_v52 = vand.u32 4294901760, %v22275_v30  ;;  %14574 = vmatpush1.bf16.msra.mxu0 %v19365_v50 }
  0xa4   : > { %22250 = vst [vmem:[#allocation117_spill] sm:$0xff] %v19434_v22  ;;  %22259 = vst [vmem:[#allocation120_spill] sm:$0xff] %v19453_v43  ;;  %v19471_v28 = vpack.c.bf16 %v22268_v56, %v22267_v45  ;;  %v22273_v42 = vand.u32 4294901760, %v22272_v2  ;;  %v22278_v33 = vand.u32 4294901760, %v22277_v44  ;;  %v22283_v57 = vand.u32 4294901760, %v22282_v27  ;;  %v22287_v56 = vld [vmem:[#allocation31_spill] sm:$0xff]  ;;  %14762 = vmatpush1.bf16.msra.mxu1 %v19353_v59  ;;  %14576 = vmatprep.subr.bf16.mxu0 %v19400_v15 }
  0xa5   : > { %22256 = vst [vmem:[#allocation119_spill] sm:$0xff] %v19446_v38  ;;  %22262 = vst [vmem:[#allocation121_spill] sm:$0xff] %v19459_v63  ;;  %v19465_v17 = vpack.c.bf16 %v22265_v51, %v22263_v13  ;;  %v22280_v13 = vld [vmem:[#allocation26_spill] sm:$0xff]  ;;  %v22286_v45 = vand.u32 4294901760, %v22285_v37  ;;  %v22299_v63 = vand.u32 4294901760, %v19128_v34  ;;  %14764 = vmatprep.subr.bf16.mxu1 %v19361_v4  ;;  %v22302_v50 = vand.u32 4294901760, %v19160_v48 }
  0xa6   : > { %22269 = vst [vmem:[#allocation122_spill] sm:$0xff] %v19471_v28  ;;  %v19477_v14 = vpack.c.bf16 %v22273_v42, %v22271_v36  ;;  %v19483_v26 = vpack.c.bf16 %v22278_v33, %v22276_v52  ;;  %v22281_v51 = vand.u32 4294901760, %v22280_v13  ;;  %v22288_v28 = vand.u32 4294901760, %v22287_v56  ;;  %v22290_v36 = vld [vmem:[#allocation33_spill] sm:$0xff] }
  0xa7   : > { %22266 = vst [vmem:[#allocation83_spill] sm:$0xff] %v19465_v17  ;;  %v22291_v42 = vand.u32 4294901760, %v22290_v36  ;;  %v22292_v52 = vand.u32 4294901760, %v19096_v54  ;;  %v22314_v15 = vand.u32 4294901760, %v19212_v58  ;;  %v22315_v4 = vand.u32 4294901760, %v19233_v23  ;;  %14578 = vmatpush1.bf16.msra.mxu0 %v19408_v47 }
  0xa8   : > { %22274 = vst [vmem:[#allocation86_spill] sm:$0xff] %v19477_v14  ;;  %22279 = vst [vmem:[#allocation22_spill] sm:$0xff] %v19483_v26  ;;  %v19489_v17 = vpack.c.bf16 %v22283_v57, %v22281_v51  ;;  %v19495_v43 = vpack.c.bf16 %v22288_v28, %v22286_v45  ;;  %v22294_v14 = vld [vmem:[#allocation35_spill] sm:$0xff]  ;;  %v22296_v51 = vld [vmem:[#allocation37_spill] sm:$0xff]  ;;  %v22300_v28 = vand.u32 4294901760, %v19149_v18  ;;  %14766 = vmatpush1.bf16.msra.mxu1 %v19374_v19  ;;  %14580 = vmatprep.subr.bf16.mxu0 %v19414_v62 }
  0xa9   : > { %v19503_v33 = vpack.c.bf16 %v22292_v52, %v22291_v42  ;;  %v22295_v26 = vand.u32 4294901760, %v22294_v14  ;;  %v22297_v57 = vand.u32 4294901760, %v22296_v51  ;;  %v22303_v42 = vld [vmem:[#allocation43_spill] sm:$0xff]  ;;  %v19541_v35 = vpack.c.bf16 %v22315_v4, %v22314_v15  ;;  %14768 = vmatprep.subr.bf16.mxu1 %v19404_v32 }
  0xaa   : > { %22284 = vst [vmem:[#allocation24_spill] sm:$0xff] %v19489_v17  ;;  %22289 = vst [vmem:[#allocation25_spill] sm:$0xff] %v19495_v43  ;;  %v19515_v45 = vpack.c.bf16 %v22300_v28, %v22299_v63  ;;  %v22304_v52 = vand.u32 4294901760, %v22303_v42  ;;  %v22311_v63 = vld [vmem:[#allocation46_spill] sm:$0xff]  ;;  %v22327_v4 = vand.u32 4294901760, %v19296_v12  ;;  %v22328_v15 = vand.u32 4294901760, %v19317_v0 }
  0xab   : > { %22293 = vst [vmem:[#allocation26_spill] sm:$0xff] %v19503_v33  ;;  %v19509_v17 = vpack.c.bf16 %v22297_v57, %v22295_v26  ;;  %v22306_v33 = vld [vmem:[#allocation91_spill] sm:$0xff]  ;;  %v22308_v26 = vand.u32 4294901760, %v19180_v46  ;;  %v22312_v28 = vand.u32 4294901760, %v22311_v63  ;;  %22316 = vst [vmem:[#allocation37_spill] sm:$0xff] %v19541_v35  ;;  %v19581_v12 = vpack.c.bf16 %v22272_v2, %v22270_v61 }
  0xac   : > { %22301 = vst [vmem:[#allocation30_spill] sm:$0xff] %v19515_v45  ;;  %v19523_v59 = vpack.c.bf16 %v22304_v52, %v22302_v50  ;;  %v22307_v43 = vand.u32 4294901760, %v22306_v33  ;;  %v22317_v50 = vand.u32 4294901760, %v19244_v29  ;;  %v22318_v52 = vand.u32 4294901760, %v19252_v3 }
  0xad   : > { %22298 = vst [vmem:[#allocation29_spill] sm:$0xff] %v19509_v17  ;;  %v22310_v17 = vand.u32 4294901760, %v19192_v21  ;;  %v19565_v35 = vpack.c.bf16 %v22328_v15, %v22327_v4  ;;  %22332 = vst [vmem:[#allocation125_spill] sm:$0xff] %v19581_v12  ;;  %v19585_v0 = vpack.c.bf16 %v22287_v56, %v22285_v37  ;;  %v19601_v61 = vpack.c.bf16 %v19096_v54, %v22290_v36  ;;  %v22356_v37 = vld [vmem:[#allocation19_spill] sm:$0xff]  ;;  %v22358_v36 = vld [vmem:[#allocation21_spill] sm:$0xff] }
  0xae   : > { %22305 = vst [vmem:[#allocation31_spill] sm:$0xff] %v19523_v59  ;;  %v19529_v57 = vpack.c.bf16 %v22308_v26, %v22307_v43  ;;  %v19547_v59 = vpack.c.bf16 %v22318_v52, %v22317_v50  ;;  %v22320_v43 = vld [vmem:[#allocation94_spill] sm:$0xff]  ;;  %v19575_v50 = vpack.c.bf16 %v22277_v44, %v22275_v30  ;;  %v19605_v2 = vpack.c.bf16 %v22303_v42, %v19160_v48  ;;  %v22354_v44 = vld [vmem:[#allocation17_spill] sm:$0xff]  ;;  %v22357_v56 = vld [vmem:[#allocation23_spill] sm:$0xff] }
  0xaf   : > { %v19535_v45 = vpack.c.bf16 %v22312_v28, %v22310_v17  ;;  %v22321_v26 = vand.u32 4294901760, %v22320_v43  ;;  %v22324_v17 = vand.u32 4294901760, %v19276_v10  ;;  %v22325_v28 = vand.u32 4294901760, %v19286_v24  ;;  %22329 = vst [vmem:[#allocation94_spill] sm:$0xff] %v19565_v35  ;;  %22333 = vst [vmem:[#allocation126_spill] sm:$0xff] %v19585_v0  ;;  %v22353_v30 = vld [vmem:[#allocation18_spill] sm:$0xff] }
  0xb0   : > { %22309 = vst [vmem:[#allocation33_spill] sm:$0xff] %v19529_v57  ;;  %22319 = vst [vmem:[#allocation43_spill] sm:$0xff] %v19547_v59  ;;  %v22322_v57 = vand.u32 4294901760, %v19264_v49  ;;  %14582 = vmatpush1.bf16.msra.mxu0 %v19575_v50  ;;  %v19621_v54 = vpack.c.bf16 %v19180_v46, %v22306_v33  ;;  %v19625_v48 = vpack.c.bf16 %v19252_v3, %v19244_v29  ;;  %v22347_v29 = vld [vmem:[#allocation12_spill] sm:$0xff]  ;;  %v22349_v3 = vld [vmem:[#allocation14_spill] sm:$0xff] }
  0xb1   : > { %22313 = vst [vmem:[#allocation35_spill] sm:$0xff] %v19535_v45  ;;  %v19559_v45 = vpack.c.bf16 %v22325_v28, %v22324_v17  ;;  %22331 = vst [vmem:[#allocation124_spill] sm:$0xff] %v19575_v50  ;;  %14584 = vmatprep.subr.bf16.mxu0 %v19585_v0  ;;  %v19641_v46 = vpack.c.bf16 %v19264_v49, %v22320_v43  ;;  %v22350_v49 = vld [vmem:[#allocation13_spill] sm:$0xff]  ;;  %v22359_v33 = vld [vmem:[#allocation28_spill] sm:$0xff] }
  0xb2   : > { %v19553_v38 = vpack.c.bf16 %v22322_v57, %v22321_v26  ;;  %v19571_v57 = vpack.c.bf16 %v22264_v53, %v18960_v40  ;;  %v19591_v40 = vpack.c.bf16 %v22282_v27, %v22280_v13  ;;  %v19595_v53 = vpack.c.bf16 %v22296_v51, %v22294_v14  ;;  %22336 = vst [vmem:[#allocation129_spill] sm:$0xff] %v19601_v61  ;;  %v22355_v13 = vld [vmem:[#allocation20_spill] sm:$0xff]  ;;  %v22360_v51 = vld [vmem:[#allocation27_spill] sm:$0xff]  ;;  %v22363_v52 = vld [vmem:[#allocation41_spill] sm:$0xff] }
  0xb3   : > { %22326 = vst [vmem:[#allocation46_spill] sm:$0xff] %v19559_v45  ;;  %22337 = vst [vmem:[#allocation130_spill] sm:$0xff] %v19605_v2  ;;  %v19611_v27 = vpack.c.bf16 %v19149_v18, %v19128_v34  ;;  %v19615_v14 = vpack.c.bf16 %v22311_v63, %v19192_v21  ;;  %v19631_v34 = vpack.c.bf16 %v19233_v23, %v19212_v58  ;;  %v22345_v21 = vld [vmem:[#allocation10_spill] sm:$0xff]  ;;  %v22346_v58 = vld [vmem:[#allocation64_spill] sm:$0xff] }
  0xb4   : > { %22323 = vst [vmem:[#allocation91_spill] sm:$0xff] %v19553_v38  ;;  %22330 = vst [vmem:[#allocation123_spill] sm:$0xff] %v19571_v57  ;;  %14770 = vmatpush1.bf16.msra.mxu1 %v19571_v57  ;;  %14586 = vmatpush1.bf16.msra.mxu0 %v19595_v53  ;;  %v19635_v18 = vpack.c.bf16 %v19286_v24, %v19276_v10  ;;  %v22348_v23 = vld [vmem:[#allocation11_spill] sm:$0xff]  ;;  %v22351_v10 = vld [vmem:[#allocation16_spill] sm:$0xff] }
  0xb5   : > { %22334 = vst [vmem:[#allocation127_spill] sm:$0xff] %v19591_v40  ;;  %22335 = vst [vmem:[#allocation128_spill] sm:$0xff] %v19595_v53  ;;  %14772 = vmatprep.subr.bf16.mxu1 %v19581_v12  ;;  %14588 = vmatprep.subr.bf16.mxu0 %v19605_v2  ;;  %v22352_v24 = vld [vmem:[#allocation15_spill] sm:$0xff]  ;;  %v22361_v42 = vld [vmem:[#allocation36_spill] sm:$0xff]  ;;  %v22380_v53 = vand.u32 4294901760, %v18681_v6 }
  0xb6   : > { %22338 = vst [vmem:[#allocation131_spill] sm:$0xff] %v19611_v27  ;;  %22339 = vst [vmem:[#allocation132_spill] sm:$0xff] %v19615_v14  ;;  %v22362_v63 = vld [vmem:[#allocation32_spill] sm:$0xff]  ;;  %v22365_v26 = vld [vmem:[#allocation47_spill] sm:$0xff] }
  0xb7   : > { %22340 = vst [vmem:[#allocation133_spill] sm:$0xff] %v19621_v54  ;;  %22341 = vst [vmem:[#allocation134_spill] sm:$0xff] %v19625_v48  ;;  %v22364_v43 = vld [vmem:[#allocation40_spill] sm:$0xff]  ;;  %v22367_v28 = vld [vmem:[#allocation50_spill] sm:$0xff] }
  0xb8   : > { %14774 = vmatpush1.bf16.msra.mxu1 %v19591_v40  ;;  %14590 = vmatpush1.bf16.msra.mxu0 %v19615_v14  ;;  %22342 = vst [vmem:[#allocation135_spill] sm:$0xff] %v19631_v34  ;;  %22343 = vst [vmem:[#allocation136_spill] sm:$0xff] %v19635_v18  ;;  %v22366_v17 = vld [vmem:[#allocation44_spill] sm:$0xff]  ;;  %v22368_v4 = vld [vmem:[#allocation49_spill] sm:$0xff]  ;;  %v22387_v40 = vand.u32 4294901760, %v18750_v16 }
  0xb9   : > { %14776 = vmatprep.subr.bf16.mxu1 %v19601_v61  ;;  %14592 = vmatprep.subr.bf16.mxu0 %v19625_v48  ;;  %22344 = vst [vmem:[#allocation137_spill] sm:$0xff] %v19641_v46  ;;  %v22369_v15 = vld [vmem:[#allocation53_spill] sm:$0xff]  ;;  %v22374_v48 = vand.u32 4294901760, %v18630_v39  ;;  %v22378_v2 = vld [vmem:[#allocation59_spill] sm:$0xff]  ;;  %v22382_v0 = vld [vmem:[#allocation58_spill] sm:$0xff]  ;;  %v22383_v39 = vand.u32 4294901760, %v22231_v60 }
  0xba   : > { %v22390_v6 = vld [vmem:[#allocation61_spill] sm:$0xff]  ;;  %v22392_v60 = vand.u32 4294901760, %v18729_v9 }
  0xbb   : > { %v22398_v16 = vld [vmem:[#allocation69_spill] sm:$0xff] }
  0xbc   : > { %14778 = vmatpush1.bf16.msra.mxu1 %v19611_v27  ;;  %14594 = vmatpush1.bf16.msra.mxu0 %v19635_v18  ;;  %v22372_v18 = vld [vmem:[#allocation54_spill] sm:$0xff]  ;;  %v22379_v27 = vand.u32 4294901760, %v18676_v55  ;;  %v22389_v55 = vld [vmem:[#allocation65_spill] sm:$0xff] }
  0xbd   : > { %14780 = vmatprep.subr.bf16.mxu1 %v19621_v54  ;;  %14596 = vmatprep.subr.bf16.mxu0 %v22345_v21  ;;  %v22377_v54 = vld [vmem:[#allocation56_spill] sm:$0xff] }
  0xbe   : > { %v19691_v61 = vpack.c.bf16 %v22380_v53, %v22379_v27  ;;  %v22391_v53 = vand.u32 4294901760, %v18694_v8  ;;  %v22403_v8 = vld [vmem:[#allocation72_spill] sm:$0xff] }
  0xbf   : > { %792 = vmatmul.mubr.f32.vlgmr.msra.gmra.mrb[0].mxu0 %v22346_v58  ;;  %v22404_v9 = vand.u32 4294901760, %v22403_v8  ;;  %v22416_v8 = vld [vmem:[#allocation25_spill] sm:$0xff] }
  0xc0   : > { %14782 = vmatpush1.bf16.msra.mxu1 %v19631_v34  ;;  %14598 = vmatpush1.bf16.msra.mxu0 %v22347_v29  ;;  %v22375_v34 = vand.u32 4294901760, %v18647_v25  ;;  %22381 = vst [vmem:[#allocation64_spill] sm:$0xff] %v19691_v61  ;;  %v22384_v25 = vand.u32 4294901760, %v22232_v11  ;;  %v19714_v27 = vpack.c.bf16 %v22392_v60, %v22391_v53  ;;  %v22394_v11 = vand.u32 4294901760, %v18769_v20  ;;  %v22405_v20 = vld [vmem:[#allocation74_spill] sm:$0xff] }
  0xc1   : > { %14784 = vmatprep.subr.bf16.mxu1 %v19641_v46  ;;  %14600 = vmatprep.subr.bf16.mxu0 %v22349_v3  ;;  %v22373_v46 = vld [vmem:[#allocation57_spill] sm:$0xff]  ;;  %v22406_v53 = vand.u32 4294901760, %v22405_v20 }
  0xc2   : > { %894 = vmatprep.mubr.f32.mxu0 %v22097_v1  ;;  %v19683_v14 = vpack.c.bf16 %v22375_v34, %v22374_v48  ;;  %v19699_v48 = vpack.c.bf16 %v22384_v25, %v22383_v39  ;;  %v22386_v34 = vand.u32 4294901760, %v18736_v5  ;;  %22393 = vst [vmem:[#allocation14_spill] sm:$0xff] %v19714_v27  ;;  %v22395_v39 = vld [vmem:[#allocation71_spill] sm:$0xff]  ;;  %v22418_v20 = vld [vmem:[#allocation29_spill] sm:$0xff] }
  0xc3   : > { %v22396_v5 = vand.u32 4294901760, %v22395_v39  ;;  %v19738_v60 = vpack.c.bf16 %v22406_v53, %v22404_v9  ;;  %v22411_v39 = vld [vmem:[#allocation120_spill] sm:$0xff]  ;;  %v22419_v53 = vld [vmem:[#allocation26_spill] sm:$0xff] }
  0xc4   : > { %14786 = vmatpush1.bf16.msra.mxu1 %v19394_v41  ;;  %14602 = vmatpush1.bf16.msra.mxu0 %v22351_v10  ;;  %v22371_v41 = vld [vmem:[#allocation55_spill] sm:$0xff]  ;;  %22376 = vst [vmem:[#allocation10_spill] sm:$0xff] %v19683_v14  ;;  %22385 = vst [vmem:[#allocation12_spill] sm:$0xff] %v19699_v48  ;;  %v19705_v50 = vpack.c.bf16 %v22387_v40, %v22386_v34  ;;  %v22399_v40 = vand.u32 4294901760, %v22398_v16  ;;  %v22400_v34 = vld [vmem:[#allocation70_spill] sm:$0xff] }
  0xc5   : > { %14788 = vmatprep.subr.bf16.mxu1 %v22348_v23  ;;  %14604 = vmatprep.subr.bf16.mxu0 %v22353_v30  ;;  %v19720_v25 = vpack.c.bf16 %v22396_v5, %v22394_v11  ;;  %22407 = vst [vmem:[#allocation15_spill] sm:$0xff] %v19738_v60  ;;  %v22410_v11 = vld [vmem:[#allocation121_spill] sm:$0xff]  ;;  %v22412_v5 = vld [vmem:[#allocation122_spill] sm:$0xff]  ;;  %v22413_v16 = vld [vmem:[#allocation83_spill] sm:$0xff] }
  0xc6   : > { %22388 = vst [vmem:[#allocation11_spill] sm:$0xff] %v19705_v50  ;;  %v22417_v9 = vld [vmem:[#allocation24_spill] sm:$0xff] }
  0xc7   : > { %1647 = vmatmul.mubr.f32.vlgmr.msra.gmra.mrb[0].mxu1 %v22346_v58  ;;  %v22370_v58 = vld [vmem:[#allocation51_spill] sm:$0xff]  ;;  %22397 = vst [vmem:[#allocation13_spill] sm:$0xff] %v19720_v25 }
  0xc8   : > { %14790 = vmatpush1.bf16.msra.mxu1 %v22350_v49  ;;  %1749 = vmatprep.mubr.f32.mxu1 %v22097_v1 }
  0xc9   : > { %14792 = vmatprep.subr.bf16.mxu1 %v22352_v24  ;;  %14606 = vmatpush1.bf16.msra.mxu0 %v22355_v13 }
  0xca   : > { %14608 = vmatprep.subr.bf16.mxu0 %v22357_v56 }
  0xcc   : > { %14794 = vmatpush1.bf16.msra.mxu1 %v22354_v44 }
  0xcd   : > { %14796 = vmatprep.subr.bf16.mxu1 %v22356_v37  ;;  %14610 = vmatpush1.bf16.msra.mxu0 %v22359_v33 }
  0xce   : > { %14612 = vmatprep.subr.bf16.mxu0 %v22361_v42 }
  0xd0   : > { %14798 = vmatpush1.bf16.msra.mxu1 %v22358_v36 }
  0xd1   : > { %14800 = vmatprep.subr.bf16.mxu1 %v22360_v51  ;;  %14614 = vmatpush1.bf16.msra.mxu0 %v22363_v52 }
  0xd2   : > { %14616 = vmatprep.subr.bf16.mxu0 %v22365_v26 }
  0xd4   : > { %14802 = vmatpush1.bf16.msra.mxu1 %v22362_v63 }
  0xd5   : > { %14804 = vmatprep.subr.bf16.mxu1 %v22364_v43  ;;  %14618 = vmatpush1.bf16.msra.mxu0 %v22367_v28 }
  0xd6   : > { %14620 = vmatprep.subr.bf16.mxu0 %v22369_v15 }
  0xd8   : > { %14806 = vmatpush1.bf16.msra.mxu1 %v22366_v17 }
  0xd9   : > { %14808 = vmatprep.subr.bf16.mxu1 %v22368_v4  ;;  %14622 = vmatpush1.bf16.msra.mxu0 %v22371_v41 }
  0xda   : > { %14624 = vmatprep.subr.bf16.mxu0 %v22373_v46 }
  0xdc   : > { %14810 = vmatpush1.bf16.msra.mxu1 %v22370_v58 }
  0xdd   : > { %14812 = vmatprep.subr.bf16.mxu1 %v22372_v18  ;;  %14626 = vmatpush1.bf16.msra.mxu0 %v22378_v2 }
  0xde   : > { %14628 = vmatprep.subr.bf16.mxu0 %v19683_v14 }
  0xe0   : > { %14814 = vmatpush1.bf16.msra.mxu1 %v22377_v54  ;;  %898 = vmatmul.mubr.f32.vlgmr.msra.gmra.mrb[0].mxu0 %v22389_v55 }
  0xe1   : > { %14816 = vmatprep.subr.bf16.mxu1 %v22382_v0  ;;  %14630 = vmatpush1.bf16.msra.mxu0 %v19691_v61  ;;  %v22401_v61 = vand.u32 4294901760, %v22400_v34  ;;  %v22415_v34 = vld [vmem:[#allocation86_spill] sm:$0xff] }
  0xe2   : > { %14632 = vmatprep.subr.bf16.mxu0 %v19705_v50  ;;  %1064 = vmatprep.mubr.f32.mxu0 %v22097_v1 }
  0xe3   : > { %v19728_v14 = vpack.c.bf16 %v22401_v61, %v22399_v40  ;;  %v22408_v61 = vld [vmem:[#allocation119_spill] sm:$0xff]  ;;  %v22414_v40 = vld [vmem:[#allocation22_spill] sm:$0xff] }
  0xe4   : > { %14818 = vmatpush1.bf16.msra.mxu1 %v22390_v6 }
  0xe5   : > { %14820 = vmatprep.subr.bf16.mxu1 %v19699_v48  ;;  %22402 = vst [vmem:[#allocation16_spill] sm:$0xff] %v19728_v14  ;;  %14634 = vmatpush1.bf16.msra.mxu0 %v19720_v25 }
  0xe6   : > { %14636 = vmatprep.subr.bf16.mxu0 %v19420_v31 }
  0xe7   : > { %1753 = vmatmul.mubr.f32.vlgmr.msra.gmra.mrb[0].mxu1 %v22389_v55  ;;  %v22409_v55 = vld [vmem:[#allocation118_spill] sm:$0xff] }
  0xe8   : > { %14822 = vmatpush1.bf16.msra.mxu1 %v19714_v27  ;;  %1919 = vmatprep.mubr.f32.mxu1 %v22097_v1 }
  0xe9   : > { %14824 = vmatprep.subr.bf16.mxu1 %v19728_v14  ;;  %14638 = vmatpush1.bf16.msra.mxu0 %v19434_v22 }
  0xea   : > { %14640 = vmatprep.subr.bf16.mxu0 %v22408_v61  ;;  %v22420_v61 = vld [vmem:[#allocation31_spill] sm:$0xff] }
  0xec   : > { %14826 = vmatpush1.bf16.msra.mxu1 %v19738_v60 }
  0xed   : > { %14828 = vmatprep.subr.bf16.mxu1 %v19426_v7  ;;  %14642 = vmatpush1.bf16.msra.mxu0 %v22410_v11  ;;  %v22421_v11 = vld [vmem:[#allocation30_spill] sm:$0xff] }
  0xee   : > { %14644 = vmatprep.subr.bf16.mxu0 %v22412_v5  ;;  %v22423_v5 = vld [vmem:[#allocation33_spill] sm:$0xff] }
  0xf0   : > { %14830 = vmatpush1.bf16.msra.mxu1 %v22409_v55 }
  0xf1   : > { %14832 = vmatprep.subr.bf16.mxu1 %v22411_v39  ;;  %14646 = vmatpush1.bf16.msra.mxu0 %v22414_v40  ;;  %v22422_v39 = vld [vmem:[#allocation35_spill] sm:$0xff]  ;;  %v22424_v40 = vld [vmem:[#allocation37_spill] sm:$0xff] }
  0xf2   : > { %14648 = vmatprep.subr.bf16.mxu0 %v22416_v8  ;;  %v320_v8 = vld [vmem:[%s18037_s25 + $0x18] sm:$0xff] }
  0xf4   : > { %14834 = vmatpush1.bf16.msra.mxu1 %v22413_v16 }
  0xf5   : > { %14836 = vmatprep.subr.bf16.mxu1 %v22415_v34  ;;  %14650 = vmatpush1.bf16.msra.mxu0 %v22418_v20  ;;  %v22425_v20 = vld [vmem:[#allocation63_spill] sm:$0xff] }
  0xf6   : > { %14652 = vmatprep.subr.bf16.mxu0 %v22420_v61 }
  0xf8   : > { %14838 = vmatpush1.bf16.msra.mxu1 %v22417_v9 }
  0xf9   : > { %14840 = vmatprep.subr.bf16.mxu1 %v22419_v53  ;;  %14654 = vmatpush1.bf16.msra.mxu0 %v22422_v39 }
  0xfa   : > { %14656 = vmatprep.subr.bf16.mxu0 %v19547_v59 }
  0xfc   : > { %14842 = vmatpush1.bf16.msra.mxu1 %v22421_v11 }
  0xfd   : > { %14844 = vmatprep.subr.bf16.mxu1 %v22423_v5  ;;  %14658 = vmatpush1.bf16.msra.mxu0 %v19559_v45  ;;  %v317_v45 = vld [vmem:[%s18037_s25] sm:$0xff] }
  0xfe   : > { %14660 = vmatprep.subr.bf16.mxu0 %v22345_v21 }
 0x100   : > { %14846 = vmatpush1.bf16.msra.mxu1 %v22424_v40  ;;  %1066 = vmatmul.mubr.f32.vlgmr.msra.gmra.mrb[0].mxu0 %v22425_v20 }
 0x101   : > { %14848 = vmatprep.subr.bf16.mxu1 %v19553_v38  ;;  %14662 = vmatpush1.bf16.msra.mxu0 %v22347_v29  ;;  %v318_v38 = vld [vmem:[%s18037_s25 + $0x8] sm:$0xff] }
 0x102   : > { %14664 = vmatprep.subr.bf16.mxu0 %v22349_v3  ;;  %1168 = vmatprep.mubr.f32.mxu0 %v22097_v1 }
 0x104   : > { %14850 = vmatpush1.bf16.msra.mxu1 %v19565_v35  ;;  %v22427_v35 = vld [vmem:[#allocation67_spill] sm:$0xff] }
 0x105   : > { %14852 = vmatprep.subr.bf16.mxu1 %v22348_v23  ;;  %14666 = vmatpush1.bf16.msra.mxu0 %v22351_v10 }
 0x106   : > { %14668 = vmatprep.subr.bf16.mxu0 %v22353_v30 }
 0x107   : > { %1921 = vmatmul.mubr.f32.vlgmr.msra.gmra.mrb[0].mxu1 %v22425_v20 }
 0x108   : > { %14854 = vmatpush1.bf16.msra.mxu1 %v22350_v49  ;;  %2023 = vmatprep.mubr.f32.mxu1 %v22097_v1 }
 0x109   : > { %14856 = vmatprep.subr.bf16.mxu1 %v22352_v24  ;;  %14670 = vmatpush1.bf16.msra.mxu0 %v22355_v13 }
 0x10a   : > { %14672 = vmatprep.subr.bf16.mxu0 %v22357_v56 }
 0x10c   : > { %14858 = vmatpush1.bf16.msra.mxu1 %v22354_v44 }
 0x10d   : > { %14860 = vmatprep.subr.bf16.mxu1 %v22356_v37  ;;  %14674 = vmatpush1.bf16.msra.mxu0 %v22359_v33 }
 0x10e   : > { %14676 = vmatprep.subr.bf16.mxu0 %v22361_v42 }
 0x110   : > { %14862 = vmatpush1.bf16.msra.mxu1 %v22358_v36 }
 0x111   : > { %14864 = vmatprep.subr.bf16.mxu1 %v22360_v51  ;;  %14678 = vmatpush1.bf16.msra.mxu0 %v22363_v52 }
 0x112   : > { %14680 = vmatprep.subr.bf16.mxu0 %v22365_v26 }
 0x114   : > { %14866 = vmatpush1.bf16.msra.mxu1 %v22362_v63 }
 0x115   : > { %14868 = vmatprep.subr.bf16.mxu1 %v22364_v43  ;;  %14682 = vmatpush1.bf16.msra.mxu0 %v22367_v28 }
 0x116   : > { %14684 = vmatprep.subr.bf16.mxu0 %v22369_v15 }
 0x118   : > { %14870 = vmatpush1.bf16.msra.mxu1 %v22366_v17 }
 0x119   : > { %14872 = vmatprep.subr.bf16.mxu1 %v22368_v4  ;;  %14686 = vmatpush1.bf16.msra.mxu0 %v22371_v41 }
 0x11a   : > { %14688 = vmatprep.subr.bf16.mxu0 %v22373_v46 }
 0x11c   : > { %14874 = vmatpush1.bf16.msra.mxu1 %v22370_v58 }
 0x11d   : > { %14876 = vmatprep.subr.bf16.mxu1 %v22372_v18  ;;  %14690 = vmatpush1.bf16.msra.mxu0 %v22378_v2 }
 0x11e   : > { %14884 = vmatprep.subr.bf16.mxu0 %v22345_v21 }
 0x120   : > { %14878 = vmatpush1.bf16.msra.mxu1 %v22377_v54  ;;  %1170 = vmatmul.mubr.f32.vlgmr.msra.gmra.mrb[0].mxu0 %v22425_v20 }
 0x121   : > { %14880 = vmatprep.subr.bf16.mxu1 %v22382_v0  ;;  %14886 = vmatpush1.bf16.msra.mxu0 %v22347_v29 }
 0x122   : > { %14888 = vmatprep.subr.bf16.mxu0 %v22349_v3  ;;  %2161 = vmatprep.mubr.f32.mxu0 %v22097_v1 }
 0x124   : > { %14882 = vmatpush1.bf16.msra.mxu1 %v22390_v6 }
 0x125   : > { %15076 = vmatprep.subr.bf16.mxu1 %v22348_v23  ;;  %14890 = vmatpush1.bf16.msra.mxu0 %v22351_v10 }
 0x126   : > { %14892 = vmatprep.subr.bf16.mxu0 %v22353_v30 }
 0x127   : > { %2025 = vmatmul.mubr.f32.vlgmr.msra.gmra.mrb[0].mxu1 %v22425_v20  ;;  %v22426_v20 = vld [vmem:[#allocation66_spill] sm:$0xff] }
 0x128   : > { %15078 = vmatpush1.bf16.msra.mxu1 %v22350_v49  ;;  %3016 = vmatprep.mubr.f32.mxu1 %v22097_v1 }
 0x129   : > { %15080 = vmatprep.subr.bf16.mxu1 %v22352_v24  ;;  %14894 = vmatpush1.bf16.msra.mxu0 %v22355_v13 }
 0x12a   : > { %14896 = vmatprep.subr.bf16.mxu0 %v22357_v56 }
 0x12c   : > { %15082 = vmatpush1.bf16.msra.mxu1 %v22354_v44 }
 0x12d   : > { %15084 = vmatprep.subr.bf16.mxu1 %v22356_v37  ;;  %14898 = vmatpush1.bf16.msra.mxu0 %v22359_v33 }
 0x12e   : > { %14900 = vmatprep.subr.bf16.mxu0 %v22361_v42 }
 0x130   : > { %15086 = vmatpush1.bf16.msra.mxu1 %v22358_v36 }
 0x131   : > { %15088 = vmatprep.subr.bf16.mxu1 %v22360_v51  ;;  %14902 = vmatpush1.bf16.msra.mxu0 %v22363_v52 }
 0x132   : > { %14904 = vmatprep.subr.bf16.mxu0 %v22365_v26 }
 0x134   : > { %15090 = vmatpush1.bf16.msra.mxu1 %v22362_v63 }
 0x135   : > { %15092 = vmatprep.subr.bf16.mxu1 %v22364_v43  ;;  %14906 = vmatpush1.bf16.msra.mxu0 %v22367_v28 }
 0x136   : > { %14908 = vmatprep.subr.bf16.mxu0 %v22369_v15 }
 0x138   : > { %15094 = vmatpush1.bf16.msra.mxu1 %v22366_v17 }
 0x139   : > { %15096 = vmatprep.subr.bf16.mxu1 %v22368_v4  ;;  %14910 = vmatpush1.bf16.msra.mxu0 %v22371_v41 }
 0x13a   : > { %14912 = vmatprep.subr.bf16.mxu0 %v22373_v46 }
 0x13c   : > { %15098 = vmatpush1.bf16.msra.mxu1 %v22370_v58 }
 0x13d   : > { %15100 = vmatprep.subr.bf16.mxu1 %v22372_v18  ;;  %14914 = vmatpush1.bf16.msra.mxu0 %v22378_v2 }
 0x13e   : > { %14916 = vmatprep.subr.bf16.mxu0 %v22426_v20  ;;  %v319_v20 = vld [vmem:[%s18037_s25 + $0x10] sm:$0xff] }
 0x140   : > { %15102 = vmatpush1.bf16.msra.mxu1 %v22377_v54 }
 0x141   : > { %15104 = vmatprep.subr.bf16.mxu1 %v22382_v0 }
 0x144   : > { %15106 = vmatpush1.bf16.msra.mxu1 %v22390_v6 }
 0x145   : > { %15108 = vmatprep.subr.bf16.mxu1 %v22427_v35 }
 0x1f3   : > { %v1171_v59 = vpop.f32.mrb[0].mxu0 }
 0x1f4   : > { %v2031_v40 = vadd.f32 %v1171_v59, %v317_v45  ;;  %v1173_v39 = vpop.f32.mrb[1].mxu0  ;;  %v316_v45 = vld [vmem:[#allocation3] sm:$0xff] }
 0x1f5   : > { %v2032_v5 = vadd.f32 %v1173_v39, %v318_v38 }
 0x1f6   : > { %v14432_v61 = vmul.f32 -1.442695, %v2031_v40 }
 0x1f7   : > { %v14433_v53 = vmul.f32 -1.442695, %v2032_v5 }
 0x1f8   : > { %17771 = vpow2.f32 %v14432_v61 }
 0x1f9   : > { %17773 = vpow2.f32 %v14433_v53  ;;  %v22428_v53 = vld [vmem:[#allocation68_spill] sm:$0xff] }
 0x1fa   : > { %v2026_v11 = vpop.f32.mrb[0].mxu1 }
 0x1fb   : > { %v2028_v9 = vpop.f32.mrb[1].mxu1  ;;  %v2033_v55 = vadd.f32 %v2026_v11, %v319_v20  ;;  %v22429_v20 = vld [vmem:[#allocation73_spill] sm:$0xff] }
 0x1fc   : > { %v2034_v34 = vadd.f32 %v2028_v9, %v320_v8 }
 0x1fe   : > { %v14434_v16 = vmul.f32 -1.442695, %v2034_v34 }
 0x200   : > { %17775 = vpow2.f32 %v14434_v16 }
 0x201   : > { %17777 = vtanh.f32 %v2033_v55 }
 0x202   : > { %v17772_v22 = vpop.eup %17771 }
 0x203   : > { %v17774_v7 = vpop.eup %17773  ;;  %v2038_v35 = vadd.f32 1.0, %v17772_v22 }
 0x204   : > { %v2044_v31 = vadd.f32 1.0, %v17774_v7 }
 0x205   : > { %17779 = vrcp.f32 %v2038_v35 }
 0x206   : > { %17781 = vrcp.f32 %v2044_v31 }
 0x20a   : > { %v17776_v59 = vpop.eup %17775 }
 0x20b   : > { %v17778_v38 = vpop.eup %17777  ;;  %v2051_v40 = vadd.f32 1.0, %v17776_v59  ;;  %v22430_v59 = vld [vmem:[#allocation75_spill] sm:$0xff] }
 0x20d   : > { %17783 = vrcp.f32 %v2051_v40  ;;  %v22436_v40 = vld [vmem:[#allocation81_spill] sm:$0xff] }
 0x20f   : > { %v17780_v61 = vpop.eup %17779 }
 0x210   : > { %v17782_v39 = vpop.eup %17781  ;;  %v2055_v5 = vmul.f32 %v17780_v61, %v17778_v38  ;;  %v22431_v38 = vld [vmem:[#allocation76_spill] sm:$0xff]  ;;  %v22433_v61 = vld [vmem:[#allocation78_spill] sm:$0xff] }
 0x211   : > { %v2054_v8 = vmul.f32 %v17782_v39, %v316_v45  ;;  %v22432_v45 = vld [vmem:[#allocation77_spill] sm:$0xff]  ;;  %v22434_v39 = vld [vmem:[#allocation79_spill] sm:$0xff] }
 0x213   : > { %v19845_v9 = vadd.f32 %v2055_v5, %v2054_v8  ;;  %v22435_v5 = vld [vmem:[#allocation80_spill] sm:$0xff]  ;;  %v22437_v8 = vld [vmem:[#allocation82_spill] sm:$0xff] }
 0x215   : > { %17785 = vtanh.f32 %v19845_v9 }
 0x217   : > { %v17784_v22 = vpop.eup %17783 }
 0x21f   : > { %v17786_v11 = vpop.eup %17785 }
 0x220   : > { %v2058_v55 = vmul.f32 %v17786_v11, %v17784_v22  ;;  %v22438_v22 = vld [vmem:[#allocation84_spill] sm:$0xff]  ;;  %v22439_v11 = vld [vmem:[#allocation85_spill] sm:$0xff] }
 0x222   : > { %2059 = vst [vmem:[%s18042_s28] sm:$0xff] %v2058_v55  ;;  %v19849_v7 = vand.u32 4294901760, %v2058_v55 }
 0x224   : > { %v19852_v31 = vsub.f32 %v2058_v55, %v19849_v7  ;;  %v22440_v55 = vld [vmem:[#allocation87_spill] sm:$0xff] }
 0x226   : > { %v19855_v35 = vand.u32 4294901760, %v19852_v31 }
 0x228   : > { %v2165_v16 = vsub.f32 %v19852_v31, %v19855_v35 }
 0x22a   : > { %v2166_v34 = vand.u32 4294901760, %v2165_v16  ;;  %v22441_v16 = vld [vmem:[#allocation88_spill] sm:$0xff] }
 0x22c   : > { %2167 = vmatmul.mubr.f32.vlgmr.msra.gmra.mrb[2].mxu0 %v2166_v34  ;;  %3022 = vmatmul.mubr.f32.vlgmr.msra.gmra.mrb[2].mxu1 %v2166_v34  ;;  %v22442_v34 = vld [vmem:[#allocation89_spill] sm:$0xff] }
 0x22d   : > { %14918 = vmatpush1.bf16.msra.mxu0 %v22428_v53  ;;  %15110 = vmatpush1.bf16.msra.mxu1 %v22429_v20 }
 0x22e   : > { %14920 = vmatprep.subr.bf16.mxu0 %v22430_v59  ;;  %15112 = vmatprep.subr.bf16.mxu1 %v22431_v38 }
 0x22f   : > { %2397 = vmatprep.mubr.f32.mxu0 %v22097_v1  ;;  %3252 = vmatprep.mubr.f32.mxu1 %v22097_v1 }
 0x231   : > { %14922 = vmatpush1.bf16.msra.mxu0 %v22432_v45  ;;  %15114 = vmatpush1.bf16.msra.mxu1 %v22433_v61  ;;  %v22443_v45 = vld [vmem:[#allocation90_spill] sm:$0xff] }
 0x232   : > { %14924 = vmatprep.subr.bf16.mxu0 %v22434_v39  ;;  %15116 = vmatprep.subr.bf16.mxu1 %v22435_v5  ;;  %v22444_v61 = vld [vmem:[#allocation34_spill] sm:$0xff]  ;;  %v22446_v5 = vld [vmem:[#allocation39_spill] sm:$0xff] }
 0x233   : > { %v22445_v39 = vld [vmem:[#allocation38_spill] sm:$0xff] }
 0x235   : > { %14926 = vmatpush1.bf16.msra.mxu0 %v22436_v40  ;;  %15118 = vmatpush1.bf16.msra.mxu1 %v22437_v8  ;;  %v22447_v40 = vld [vmem:[#allocation42_spill] sm:$0xff]  ;;  %v22448_v8 = vld [vmem:[#allocation45_spill] sm:$0xff] }
 0x236   : > { %14928 = vmatprep.subr.bf16.mxu0 %v22438_v22  ;;  %15120 = vmatprep.subr.bf16.mxu1 %v22439_v11  ;;  %v22449_v22 = vld [vmem:[#allocation92_spill] sm:$0xff]  ;;  %v22450_v11 = vld [vmem:[#allocation93_spill] sm:$0xff] }
 0x239   : > { %14930 = vmatpush1.bf16.msra.mxu0 %v22440_v55  ;;  %15122 = vmatpush1.bf16.msra.mxu1 %v22441_v16  ;;  %v22451_v55 = vld [vmem:[#allocation48_spill] sm:$0xff]  ;;  %v22452_v16 = vld [vmem:[#allocation95_spill] sm:$0xff] }
 0x23a   : > { %14932 = vmatprep.subr.bf16.mxu0 %v22442_v34  ;;  %15124 = vmatprep.subr.bf16.mxu1 %v22443_v45  ;;  %v22453_v34 = vld [vmem:[#allocation52_spill] sm:$0xff] }
 0x23b   : > { %v22454_v45 = vld [vmem:[#allocation96_spill] sm:$0xff] }
 0x23d   : > { %14934 = vmatpush1.bf16.msra.mxu0 %v22444_v61  ;;  %15126 = vmatpush1.bf16.msra.mxu1 %v22445_v39  ;;  %v22455_v61 = vld [vmem:[#allocation97_spill] sm:$0xff]  ;;  %v22456_v39 = vld [vmem:[#allocation100_spill] sm:$0xff] }
 0x23e   : > { %14936 = vmatprep.subr.bf16.mxu0 %v22446_v5  ;;  %15128 = vmatprep.subr.bf16.mxu1 %v22447_v40  ;;  %v22457_v5 = vld [vmem:[#allocation62_spill] sm:$0xff] }
 0x23f   : > { %v22458_v40 = vld [vmem:[#allocation98_spill] sm:$0xff] }
 0x241   : > { %14938 = vmatpush1.bf16.msra.mxu0 %v22448_v8  ;;  %15130 = vmatpush1.bf16.msra.mxu1 %v22449_v22  ;;  %v22459_v8 = vld [vmem:[#allocation60_spill] sm:$0xff] }
 0x242   : > { %14940 = vmatprep.subr.bf16.mxu0 %v22450_v11  ;;  %15132 = vmatprep.subr.bf16.mxu1 %v22451_v55  ;;  %v22460_v55 = vld [vmem:[#allocation107_spill] sm:$0xff] }
 0x245   : > { %14942 = vmatpush1.bf16.msra.mxu0 %v22452_v16  ;;  %15134 = vmatpush1.bf16.msra.mxu1 %v22453_v34  ;;  %v22461_v16 = vld [vmem:[#allocation109_spill] sm:$0xff]  ;;  %v22462_v34 = vld [vmem:[#allocation99_spill] sm:$0xff] }
 0x246   : > { %14944 = vmatprep.subr.bf16.mxu0 %v22454_v45  ;;  %15136 = vmatprep.subr.bf16.mxu1 %v22455_v61  ;;  %v22463_v45 = vld [vmem:[#allocation101_spill] sm:$0xff]  ;;  %v22468_v61 = vld [vmem:[#allocation106_spill] sm:$0xff] }
 0x249   : > { %14946 = vmatpush1.bf16.msra.mxu0 %v22456_v39  ;;  %15138 = vmatpush1.bf16.msra.mxu1 %v22457_v5  ;;  %v22464_v5 = vld [vmem:[#allocation102_spill] sm:$0xff]  ;;  %v22467_v39 = vld [vmem:[#allocation105_spill] sm:$0xff] }
 0x24a   : > { %14948 = vmatprep.subr.bf16.mxu0 %v22458_v40  ;;  %15140 = vmatprep.subr.bf16.mxu1 %v22459_v8  ;;  %v22465_v40 = vld [vmem:[#allocation103_spill] sm:$0xff]  ;;  %v22466_v8 = vld [vmem:[#allocation104_spill] sm:$0xff] }
 0x24c   : > { %2399 = vmatmul.mubr.f32.vlgmr.msra.gmra.mrb[2].mxu0 %v19849_v7  ;;  %3254 = vmatmul.mubr.f32.vlgmr.msra.gmra.mrb[2].mxu1 %v19849_v7 }
 0x24d   : > { %14950 = vmatpush1.bf16.msra.mxu0 %v22460_v55  ;;  %15142 = vmatpush1.bf16.msra.mxu1 %v22461_v16  ;;  %v22469_v16 = vld [vmem:[#allocation111_spill] sm:$0xff] }
 0x24e   : > { %14952 = vmatprep.subr.bf16.mxu0 %v22462_v34  ;;  %15144 = vmatprep.subr.bf16.mxu1 %v22463_v45 }
 0x24f   : > { %2533 = vmatprep.mubr.f32.mxu0 %v22097_v1  ;;  %3388 = vmatprep.mubr.f32.mxu1 %v22097_v1 }
 0x251   : > { %14954 = vmatpush1.bf16.msra.mxu0 %v22464_v5  ;;  %15146 = vmatpush1.bf16.msra.mxu1 %v22465_v40  ;;  %v22470_v40 = vld [vmem:[#allocation124_spill] sm:$0xff] }
 0x252   : > { %14956 = vmatprep.subr.bf16.mxu0 %v22466_v8  ;;  %15148 = vmatprep.subr.bf16.mxu1 %v22467_v39  ;;  %v22471_v8 = vld [vmem:[#allocation127_spill] sm:$0xff]  ;;  %v22472_v39 = vld [vmem:[#allocation126_spill] sm:$0xff] }
 0x255   : > { %14958 = vmatpush1.bf16.msra.mxu0 %v22468_v61  ;;  %15150 = vmatpush1.bf16.msra.mxu1 %v19374_v19  ;;  %v22473_v61 = vld [vmem:[#allocation129_spill] sm:$0xff]  ;;  %v22474_v19 = vld [vmem:[#allocation128_spill] sm:$0xff] }
 0x256   : > { %14960 = vmatprep.subr.bf16.mxu0 %v22469_v16  ;;  %15152 = vmatprep.subr.bf16.mxu1 %v19404_v32  ;;  %v22475_v16 = vld [vmem:[#allocation131_spill] sm:$0xff]  ;;  %v22476_v32 = vld [vmem:[#allocation130_spill] sm:$0xff] }
 0x259   : > { %14962 = vmatpush1.bf16.msra.mxu0 %v19408_v47  ;;  %15154 = vmatpush1.bf16.msra.mxu1 %v19571_v57  ;;  %v22477_v47 = vld [vmem:[#allocation133_spill] sm:$0xff]  ;;  %v22478_v57 = vld [vmem:[#allocation132_spill] sm:$0xff] }
 0x25a   : > { %14964 = vmatprep.subr.bf16.mxu0 %v19414_v62  ;;  %15156 = vmatprep.subr.bf16.mxu1 %v19581_v12  ;;  %v22479_v62 = vld [vmem:[#allocation135_spill] sm:$0xff]  ;;  %v22480_v12 = vld [vmem:[#allocation134_spill] sm:$0xff] }
 0x25d   : > { %14966 = vmatpush1.bf16.msra.mxu0 %v22470_v40  ;;  %15158 = vmatpush1.bf16.msra.mxu1 %v22471_v8  ;;  %v22481_v40 = vld [vmem:[#allocation137_spill] sm:$0xff]  ;;  %v22482_v8 = vld [vmem:[#allocation136_spill] sm:$0xff] }
 0x25e   : > { %14968 = vmatprep.subr.bf16.mxu0 %v22472_v39  ;;  %15160 = vmatprep.subr.bf16.mxu1 %v22473_v61  ;;  %v22483_v39 = vld [vmem:[#allocation110_spill] sm:$0xff] }
 0x261   : > { %14970 = vmatpush1.bf16.msra.mxu0 %v22474_v19  ;;  %15162 = vmatpush1.bf16.msra.mxu1 %v22475_v16 }
 0x262   : > { %14972 = vmatprep.subr.bf16.mxu0 %v22476_v32  ;;  %15164 = vmatprep.subr.bf16.mxu1 %v22477_v47 }
 0x265   : > { %14974 = vmatpush1.bf16.msra.mxu0 %v22478_v57  ;;  %15166 = vmatpush1.bf16.msra.mxu1 %v22479_v62 }
 0x266   : > { %14976 = vmatprep.subr.bf16.mxu0 %v22480_v12  ;;  %15168 = vmatprep.subr.bf16.mxu1 %v22481_v40  ;;  %v22494_v40 = vld [vmem:[#allocation122_spill] sm:$0xff] }
 0x269   : > { %14978 = vmatpush1.bf16.msra.mxu0 %v22482_v8  ;;  %15170 = vmatpush1.bf16.msra.mxu1 %v22483_v39  ;;  %v22485_v39 = vld [vmem:[#allocation64_spill] sm:$0xff]  ;;  %v22493_v8 = vld [vmem:[#allocation83_spill] sm:$0xff] }
 0x26a   : > { %14980 = vmatprep.subr.bf16.mxu0 %v22345_v21  ;;  %15172 = vmatprep.subr.bf16.mxu1 %v22348_v23 }
 0x26c   : > { %2536 = vmatmul.mubr.f32.vlgmr.msra.gmra.mrb[2].mxu0 %v19852_v31  ;;  %3391 = vmatmul.mubr.f32.vlgmr.msra.gmra.mrb[2].mxu1 %v19852_v31  ;;  %v22484_v31 = vld [vmem:[#allocation10_spill] sm:$0xff] }
 0x26d   : > { %14982 = vmatpush1.bf16.msra.mxu0 %v22347_v29  ;;  %15174 = vmatpush1.bf16.msra.mxu1 %v22350_v49 }
 0x26e   : > { %14984 = vmatprep.subr.bf16.mxu0 %v22349_v3  ;;  %15176 = vmatprep.subr.bf16.mxu1 %v22352_v24 }
 0x26f   : > { %2638 = vmatprep.mubr.f32.mxu0 %v22097_v1  ;;  %3493 = vmatprep.mubr.f32.mxu1 %v22097_v1 }
 0x271   : > { %14986 = vmatpush1.bf16.msra.mxu0 %v22351_v10  ;;  %15178 = vmatpush1.bf16.msra.mxu1 %v22354_v44 }
 0x272   : > { %14988 = vmatprep.subr.bf16.mxu0 %v22353_v30  ;;  %15180 = vmatprep.subr.bf16.mxu1 %v22356_v37 }
 0x275   : > { %14990 = vmatpush1.bf16.msra.mxu0 %v22355_v13  ;;  %15182 = vmatpush1.bf16.msra.mxu1 %v22358_v36 }
 0x276   : > { %14992 = vmatprep.subr.bf16.mxu0 %v22357_v56  ;;  %15184 = vmatprep.subr.bf16.mxu1 %v22360_v51 }
 0x279   : > { %14994 = vmatpush1.bf16.msra.mxu0 %v22359_v33  ;;  %15186 = vmatpush1.bf16.msra.mxu1 %v22362_v63 }
 0x27a   : > { %14996 = vmatprep.subr.bf16.mxu0 %v22361_v42  ;;  %15188 = vmatprep.subr.bf16.mxu1 %v22364_v43 }
 0x27d   : > { %14998 = vmatpush1.bf16.msra.mxu0 %v22363_v52  ;;  %15190 = vmatpush1.bf16.msra.mxu1 %v22366_v17 }
 0x27e   : > { %15000 = vmatprep.subr.bf16.mxu0 %v22365_v26  ;;  %15192 = vmatprep.subr.bf16.mxu1 %v22368_v4 }
 0x281   : > { %15002 = vmatpush1.bf16.msra.mxu0 %v22367_v28  ;;  %15194 = vmatpush1.bf16.msra.mxu1 %v22370_v58 }
 0x282   : > { %15004 = vmatprep.subr.bf16.mxu0 %v22369_v15  ;;  %15196 = vmatprep.subr.bf16.mxu1 %v22372_v18 }
 0x285   : > { %15006 = vmatpush1.bf16.msra.mxu0 %v22371_v41  ;;  %15198 = vmatpush1.bf16.msra.mxu1 %v22377_v54 }
 0x286   : > { %15008 = vmatprep.subr.bf16.mxu0 %v22373_v46  ;;  %15200 = vmatprep.subr.bf16.mxu1 %v22382_v0 }
 0x289   : > { %15010 = vmatpush1.bf16.msra.mxu0 %v22378_v2  ;;  %15202 = vmatpush1.bf16.msra.mxu1 %v22390_v6 }
 0x28a   : > { %15012 = vmatprep.subr.bf16.mxu0 %v22484_v31  ;;  %15204 = vmatprep.subr.bf16.mxu1 %v19699_v48  ;;  %v22486_v48 = vld [vmem:[#allocation115_spill] sm:$0xff]  ;;  %v22487_v31 = vld [vmem:[#allocation116_spill] sm:$0xff] }
 0x28c   : > { %2642 = vmatmul.mubr.f32.vlgmr.msra.gmra.mrb[2].mxu0 %v19855_v35  ;;  %3497 = vmatmul.mubr.f32.vlgmr.msra.gmra.mrb[2].mxu1 %v19855_v35  ;;  %v22488_v35 = vld [vmem:[#allocation117_spill] sm:$0xff] }
 0x28d   : > { %15014 = vmatpush1.bf16.msra.mxu0 %v22485_v39  ;;  %15206 = vmatpush1.bf16.msra.mxu1 %v19714_v27  ;;  %v22489_v39 = vld [vmem:[#allocation118_spill] sm:$0xff]  ;;  %v22490_v27 = vld [vmem:[#allocation119_spill] sm:$0xff] }
 0x28e   : > { %15016 = vmatprep.subr.bf16.mxu0 %v19705_v50  ;;  %15208 = vmatprep.subr.bf16.mxu1 %v19728_v14  ;;  %v22491_v50 = vld [vmem:[#allocation120_spill] sm:$0xff]  ;;  %v22492_v14 = vld [vmem:[#allocation121_spill] sm:$0xff] }
 0x28f   : > { %2808 = vmatprep.mubr.f32.mxu0 %v22097_v1  ;;  %3663 = vmatprep.mubr.f32.mxu1 %v22097_v1 }
 0x291   : > { %15018 = vmatpush1.bf16.msra.mxu0 %v19720_v25  ;;  %15210 = vmatpush1.bf16.msra.mxu1 %v19738_v60  ;;  %v22495_v25 = vld [vmem:[#allocation86_spill] sm:$0xff] }
 0x292   : > { %15020 = vmatprep.subr.bf16.mxu0 %v22486_v48  ;;  %15212 = vmatprep.subr.bf16.mxu1 %v22487_v31  ;;  %v22496_v60 = vld [vmem:[#allocation22_spill] sm:$0xff]  ;;  %v22497_v48 = vld [vmem:[#allocation24_spill] sm:$0xff]  ;;  %v22498_v31 = vld [vmem:[#allocation25_spill] sm:$0xff] }
 0x295   : > { %15022 = vmatpush1.bf16.msra.mxu0 %v22488_v35  ;;  %15214 = vmatpush1.bf16.msra.mxu1 %v22489_v39  ;;  %v22499_v35 = vld [vmem:[#allocation26_spill] sm:$0xff]  ;;  %v22500_v39 = vld [vmem:[#allocation29_spill] sm:$0xff] }
 0x296   : > { %15024 = vmatprep.subr.bf16.mxu0 %v22490_v27  ;;  %15216 = vmatprep.subr.bf16.mxu1 %v22491_v50  ;;  %v22501_v27 = vld [vmem:[#allocation30_spill] sm:$0xff]  ;;  %v22502_v50 = vld [vmem:[#allocation31_spill] sm:$0xff] }
 0x299   : > { %15026 = vmatpush1.bf16.msra.mxu0 %v22492_v14  ;;  %15218 = vmatpush1.bf16.msra.mxu1 %v22493_v8  ;;  %v22503_v14 = vld [vmem:[#allocation33_spill] sm:$0xff]  ;;  %v22504_v8 = vld [vmem:[#allocation35_spill] sm:$0xff] }
 0x29a   : > { %15028 = vmatprep.subr.bf16.mxu0 %v22494_v40  ;;  %15220 = vmatprep.subr.bf16.mxu1 %v22495_v25  ;;  %v22505_v40 = vld [vmem:[#allocation37_spill] sm:$0xff]  ;;  %v22506_v25 = vld [vmem:[#allocation43_spill] sm:$0xff] }
 0x29d   : > { %15030 = vmatpush1.bf16.msra.mxu0 %v22496_v60  ;;  %15222 = vmatpush1.bf16.msra.mxu1 %v22497_v48  ;;  %v22507_v60 = vld [vmem:[#allocation91_spill] sm:$0xff]  ;;  %v22508_v48 = vld [vmem:[#allocation46_spill] sm:$0xff] }
 0x29e   : > { %15032 = vmatprep.subr.bf16.mxu0 %v22498_v31  ;;  %15224 = vmatprep.subr.bf16.mxu1 %v22499_v35  ;;  %v22509_v31 = vld [vmem:[#allocation94_spill] sm:$0xff] }
 0x2a1   : > { %15034 = vmatpush1.bf16.msra.mxu0 %v22500_v39  ;;  %15226 = vmatpush1.bf16.msra.mxu1 %v22501_v27 }
 0x2a2   : > { %15036 = vmatprep.subr.bf16.mxu0 %v22502_v50  ;;  %15228 = vmatprep.subr.bf16.mxu1 %v22503_v14 }
 0x2a5   : > { %15038 = vmatpush1.bf16.msra.mxu0 %v22504_v8  ;;  %15230 = vmatpush1.bf16.msra.mxu1 %v22505_v40 }
 0x2a6   : > { %15040 = vmatprep.subr.bf16.mxu0 %v22506_v25  ;;  %15232 = vmatprep.subr.bf16.mxu1 %v22507_v60  ;;  %v14436_v60 = vld [vmem:[%s18037_s25 + $0x28] sm:$0xff] }
 0x2a9   : > { %15042 = vmatpush1.bf16.msra.mxu0 %v22508_v48  ;;  %15234 = vmatpush1.bf16.msra.mxu1 %v22509_v31  ;;  %v22511_v31 = vld [vmem:[#allocation67_spill] sm:$0xff]  ;;  %v14435_v48 = vld [vmem:[%s18037_s25 + $0x20] sm:$0xff] }
 0x2aa   : > { %15044 = vmatprep.subr.bf16.mxu0 %v22345_v21  ;;  %15236 = vmatprep.subr.bf16.mxu1 %v22348_v23 }
 0x2ac   : > { %2810 = vmatmul.mubr.f32.vlgmr.msra.gmra.mrb[2].mxu0 %v19849_v7  ;;  %3665 = vmatmul.mubr.f32.vlgmr.msra.gmra.mrb[2].mxu1 %v19849_v7 }
 0x2ad   : > { %15046 = vmatpush1.bf16.msra.mxu0 %v22347_v29  ;;  %15238 = vmatpush1.bf16.msra.mxu1 %v22350_v49 }
 0x2ae   : > { %15048 = vmatprep.subr.bf16.mxu0 %v22349_v3  ;;  %15240 = vmatprep.subr.bf16.mxu1 %v22352_v24 }
 0x2af   : > { %2912 = vmatprep.mubr.f32.mxu0 %v22097_v1  ;;  %3767 = vmatprep.mubr.f32.mxu1 %v22097_v1 }
 0x2b1   : > { %15050 = vmatpush1.bf16.msra.mxu0 %v22351_v10  ;;  %15242 = vmatpush1.bf16.msra.mxu1 %v22354_v44 }
 0x2b2   : > { %15052 = vmatprep.subr.bf16.mxu0 %v22353_v30  ;;  %15244 = vmatprep.subr.bf16.mxu1 %v22356_v37 }
 0x2b5   : > { %15054 = vmatpush1.bf16.msra.mxu0 %v22355_v13  ;;  %15246 = vmatpush1.bf16.msra.mxu1 %v22358_v36 }
 0x2b6   : > { %15056 = vmatprep.subr.bf16.mxu0 %v22357_v56  ;;  %15248 = vmatprep.subr.bf16.mxu1 %v22360_v51 }
 0x2b9   : > { %15058 = vmatpush1.bf16.msra.mxu0 %v22359_v33  ;;  %15250 = vmatpush1.bf16.msra.mxu1 %v22362_v63 }
 0x2ba   : > { %15060 = vmatprep.subr.bf16.mxu0 %v22361_v42  ;;  %15252 = vmatprep.subr.bf16.mxu1 %v22364_v43 }
 0x2bd   : > { %15062 = vmatpush1.bf16.msra.mxu0 %v22363_v52  ;;  %15254 = vmatpush1.bf16.msra.mxu1 %v22366_v17 }
 0x2be   : > { %15064 = vmatprep.subr.bf16.mxu0 %v22365_v26  ;;  %15256 = vmatprep.subr.bf16.mxu1 %v22368_v4 }
 0x2c1   : > { %15066 = vmatpush1.bf16.msra.mxu0 %v22367_v28  ;;  %15258 = vmatpush1.bf16.msra.mxu1 %v22370_v58 }
 0x2c2   : > { %15068 = vmatprep.subr.bf16.mxu0 %v22369_v15  ;;  %15260 = vmatprep.subr.bf16.mxu1 %v22372_v18 }
 0x2c5   : > { %15070 = vmatpush1.bf16.msra.mxu0 %v22371_v41  ;;  %15262 = vmatpush1.bf16.msra.mxu1 %v22377_v54 }
 0x2c6   : > { %15072 = vmatprep.subr.bf16.mxu0 %v22373_v46  ;;  %15264 = vmatprep.subr.bf16.mxu1 %v22382_v0 }
 0x2c9   : > { %15074 = vmatpush1.bf16.msra.mxu0 %v22378_v2  ;;  %15266 = vmatpush1.bf16.msra.mxu1 %v22390_v6 }
 0x2ca   : > { %15268 = vmatprep.subr.bf16.mxu0 %v22345_v21  ;;  %15460 = vmatprep.subr.bf16.mxu1 %v22348_v23 }
 0x2cc   : > { %2914 = vmatmul.mubr.f32.vlgmr.msra.gmra.mrb[2].mxu0 %v19849_v7  ;;  %3769 = vmatmul.mubr.f32.vlgmr.msra.gmra.mrb[2].mxu1 %v19849_v7  ;;  %v22510_v7 = vld [vmem:[#allocation66_spill] sm:$0xff] }
 0x2cd   : > { %15270 = vmatpush1.bf16.msra.mxu0 %v22347_v29  ;;  %15462 = vmatpush1.bf16.msra.mxu1 %v22350_v49 }
 0x2ce   : > { %15272 = vmatprep.subr.bf16.mxu0 %v22349_v3  ;;  %15464 = vmatprep.subr.bf16.mxu1 %v22352_v24 }
 0x2cf   : > { %3906 = vmatprep.mubr.f32.mxu0 %v22097_v1  ;;  %4761 = vmatprep.mubr.f32.mxu1 %v22097_v1 }
 0x2d1   : > { %15274 = vmatpush1.bf16.msra.mxu0 %v22351_v10  ;;  %15466 = vmatpush1.bf16.msra.mxu1 %v22354_v44 }
 0x2d2   : > { %15276 = vmatprep.subr.bf16.mxu0 %v22353_v30  ;;  %15468 = vmatprep.subr.bf16.mxu1 %v22356_v37 }
 0x2d5   : > { %15278 = vmatpush1.bf16.msra.mxu0 %v22355_v13  ;;  %15470 = vmatpush1.bf16.msra.mxu1 %v22358_v36 }
 0x2d6   : > { %15280 = vmatprep.subr.bf16.mxu0 %v22357_v56  ;;  %15472 = vmatprep.subr.bf16.mxu1 %v22360_v51 }
 0x2d9   : > { %15282 = vmatpush1.bf16.msra.mxu0 %v22359_v33  ;;  %15474 = vmatpush1.bf16.msra.mxu1 %v22362_v63 }
 0x2da   : > { %15284 = vmatprep.subr.bf16.mxu0 %v22361_v42  ;;  %15476 = vmatprep.subr.bf16.mxu1 %v22364_v43 }
 0x2dd   : > { %15286 = vmatpush1.bf16.msra.mxu0 %v22363_v52  ;;  %15478 = vmatpush1.bf16.msra.mxu1 %v22366_v17 }
 0x2de   : > { %15288 = vmatprep.subr.bf16.mxu0 %v22365_v26  ;;  %15480 = vmatprep.subr.bf16.mxu1 %v22368_v4 }
 0x2e1   : > { %15290 = vmatpush1.bf16.msra.mxu0 %v22367_v28  ;;  %15482 = vmatpush1.bf16.msra.mxu1 %v22370_v58 }
 0x2e2   : > { %15292 = vmatprep.subr.bf16.mxu0 %v22369_v15  ;;  %15484 = vmatprep.subr.bf16.mxu1 %v22372_v18 }
 0x2e5   : > { %15294 = vmatpush1.bf16.msra.mxu0 %v22371_v41  ;;  %15486 = vmatpush1.bf16.msra.mxu1 %v22377_v54 }
 0x2e6   : > { %15296 = vmatprep.subr.bf16.mxu0 %v22373_v46  ;;  %15488 = vmatprep.subr.bf16.mxu1 %v22382_v0  ;;  %v14438_v0 = vld [vmem:[%s18037_s25 + $0x38] sm:$0xff] }
 0x2e9   : > { %15298 = vmatpush1.bf16.msra.mxu0 %v22378_v2  ;;  %15490 = vmatpush1.bf16.msra.mxu1 %v22390_v6  ;;  %v14437_v6 = vld [vmem:[%s18037_s25 + $0x30] sm:$0xff] }
 0x2ea   : > { %15300 = vmatprep.subr.bf16.mxu0 %v22510_v7  ;;  %15492 = vmatprep.subr.bf16.mxu1 %v22511_v31 }
 0x39f   : > { %v2915_v25 = vpop.f32.mrb[2].mxu0  ;;  %v3770_v40 = vpop.f32.mrb[2].mxu1 }
 0x3a0   : > { %v3775_v8 = vadd.f32 %v14435_v48, %v2915_v25  ;;  %v2917_v14 = vpop.f32.mrb[3].mxu0  ;;  %v3772_v50 = vpop.f32.mrb[3].mxu1  ;;  %v3777_v7 = vadd.f32 %v14437_v6, %v3770_v40 }
 0x3a1   : > { %v3776_v27 = vadd.f32 %v14436_v60, %v2917_v14  ;;  %v3778_v2 = vadd.f32 %v14438_v0, %v3772_v50 }
 0x3a2   : > { %v14439_v39 = vmul.f32 -1.442695, %v3775_v8  ;;  %v22512_v8 = vld [vmem:[#allocation77_spill] sm:$0xff] }
 0x3a3   : > { %v14440_v35 = vmul.f32 -1.442695, %v3776_v27  ;;  %v14441_v46 = vmul.f32 -1.442695, %v3778_v2 }
 0x3a4   : > { %17787 = vpow2.f32 %v14439_v39 }
 0x3a5   : > { %17789 = vpow2.f32 %v14440_v35  ;;  %v22514_v35 = vld [vmem:[#allocation79_spill] sm:$0xff] }
 0x3a6   : > { %17791 = vpow2.f32 %v14441_v46 }
 0x3a7   : > { %17793 = vtanh.f32 %v3777_v7  ;;  %v22515_v7 = vld [vmem:[#allocation80_spill] sm:$0xff] }
 0x3ae   : > { %v17788_v54 = vpop.eup %17787 }
 0x3af   : > { %v17790_v41 = vpop.eup %17789  ;;  %v3782_v31 = vadd.f32 1.0, %v17788_v54 }
 0x3b0   : > { %v3788_v18 = vadd.f32 1.0, %v17790_v41  ;;  %v17792_v48 = vpop.eup %17791 }
 0x3b1   : > { %17795 = vrcp.f32 %v3782_v31  ;;  %v17794_v14 = vpop.eup %17793  ;;  %v3795_v39 = vadd.f32 1.0, %v17792_v48  ;;  %v22513_v31 = vld [vmem:[#allocation78_spill] sm:$0xff]  ;;  %v22516_v48 = vld [vmem:[#allocation81_spill] sm:$0xff] }
 0x3b2   : > { %17797 = vrcp.f32 %v3788_v18 }
 0x3b3   : > { %17799 = vrcp.f32 %v3795_v39  ;;  %v22521_v39 = vld [vmem:[#allocation88_spill] sm:$0xff] }
 0x3bb   : > { %v17796_v25 = vpop.eup %17795 }
 0x3bc   : > { %v17798_v27 = vpop.eup %17797  ;;  %v3799_v60 = vmul.f32 %v17796_v25, %v17794_v14  ;;  %v22517_v14 = vld [vmem:[#allocation82_spill] sm:$0xff]  ;;  %v22518_v25 = vld [vmem:[#allocation84_spill] sm:$0xff] }
 0x3bd   : > { %v3798_v50 = vmul.f32 %v17798_v27, %v19845_v9  ;;  %v17800_v2 = vpop.eup %17799  ;;  %v22519_v27 = vld [vmem:[#allocation85_spill] sm:$0xff] }
 0x3bf   : > { %v20078_v0 = vadd.f32 %v3799_v60, %v3798_v50  ;;  %v22520_v60 = vld [vmem:[#allocation87_spill] sm:$0xff]  ;;  %v22522_v50 = vld [vmem:[#allocation89_spill] sm:$0xff] }
 0x3c1   : > { %17801 = vtanh.f32 %v20078_v0 }
 0x3cb   : > { %v17802_v54 = vpop.eup %17801 }
 0x3cc   : > { %v3802_v46 = vmul.f32 %v17802_v54, %v17800_v2  ;;  %v22523_v2 = vld [vmem:[#allocation90_spill] sm:$0xff] }
 0x3cd   : > { %v22524_v54 = vld [vmem:[#allocation34_spill] sm:$0xff] }
 0x3ce   : > { %14442 = vst [vmem:[%s18042_s28 + $0x8] sm:$0xff] %v3802_v46  ;;  %v20082_v41 = vand.u32 4294901760, %v3802_v46 }
 0x3d0   : > { %v20085_v18 = vsub.f32 %v3802_v46, %v20082_v41  ;;  %v22525_v46 = vld [vmem:[#allocation38_spill] sm:$0xff] }
 0x3d2   : > { %v20088_v6 = vand.u32 4294901760, %v20085_v18 }
 0x3d4   : > { %v3910_v9 = vsub.f32 %v20085_v18, %v20088_v6 }
 0x3d6   : > { %v3911_v40 = vand.u32 4294901760, %v3910_v9  ;;  %v22526_v9 = vld [vmem:[#allocation39_spill] sm:$0xff] }
 0x3d8   : > { %3912 = vmatmul.mubr.f32.vlgmr.msra.gmra.mrb[4].mxu0 %v3911_v40  ;;  %4767 = vmatmul.mubr.f32.vlgmr.msra.gmra.mrb[4].mxu1 %v3911_v40  ;;  %v22527_v40 = vld [vmem:[#allocation42_spill] sm:$0xff] }
 0x3d9   : > { %15302 = vmatpush1.bf16.msra.mxu0 %v22428_v53  ;;  %15494 = vmatpush1.bf16.msra.mxu1 %v22429_v20 }
 0x3da   : > { %15304 = vmatprep.subr.bf16.mxu0 %v22430_v59  ;;  %15496 = vmatprep.subr.bf16.mxu1 %v22431_v38 }
 0x3db   : > { %4142 = vmatprep.mubr.f32.mxu0 %v22097_v1  ;;  %4997 = vmatprep.mubr.f32.mxu1 %v22097_v1 }
 0x3dd   : > { %15306 = vmatpush1.bf16.msra.mxu0 %v22512_v8  ;;  %15498 = vmatpush1.bf16.msra.mxu1 %v22513_v31 }
 0x3de   : > { %15308 = vmatprep.subr.bf16.mxu0 %v22514_v35  ;;  %15500 = vmatprep.subr.bf16.mxu1 %v22515_v7 }
 0x3e1   : > { %15310 = vmatpush1.bf16.msra.mxu0 %v22516_v48  ;;  %15502 = vmatpush1.bf16.msra.mxu1 %v22517_v14  ;;  %v22528_v14 = vld [vmem:[#allocation45_spill] sm:$0xff] }
 0x3e2   : > { %15312 = vmatprep.subr.bf16.mxu0 %v22518_v25  ;;  %15504 = vmatprep.subr.bf16.mxu1 %v22519_v27 }
 0x3e5   : > { %15314 = vmatpush1.bf16.msra.mxu0 %v22520_v60  ;;  %15506 = vmatpush1.bf16.msra.mxu1 %v22521_v39  ;;  %v22529_v60 = vld [vmem:[#allocation48_spill] sm:$0xff]  ;;  %v22530_v39 = vld [vmem:[#allocation95_spill] sm:$0xff] }
 0x3e6   : > { %15316 = vmatprep.subr.bf16.mxu0 %v22522_v50  ;;  %15508 = vmatprep.subr.bf16.mxu1 %v22523_v2  ;;  %v22531_v50 = vld [vmem:[#allocation52_spill] sm:$0xff] }
 0x3e7   : > { %v22532_v2 = vld [vmem:[#allocation96_spill] sm:$0xff] }
 0x3e9   : > { %15318 = vmatpush1.bf16.msra.mxu0 %v22524_v54  ;;  %15510 = vmatpush1.bf16.msra.mxu1 %v22525_v46  ;;  %v22533_v54 = vld [vmem:[#allocation97_spill] sm:$0xff]  ;;  %v22534_v46 = vld [vmem:[#allocation100_spill] sm:$0xff] }
 0x3ea   : > { %15320 = vmatprep.subr.bf16.mxu0 %v22526_v9  ;;  %15512 = vmatprep.subr.bf16.mxu1 %v22527_v40  ;;  %v22535_v9 = vld [vmem:[#allocation62_spill] sm:$0xff] }
 0x3eb   : > { %v22536_v40 = vld [vmem:[#allocation98_spill] sm:$0xff] }
 0x3ed   : > { %15322 = vmatpush1.bf16.msra.mxu0 %v22528_v14  ;;  %15514 = vmatpush1.bf16.msra.mxu1 %v22449_v22  ;;  %v22537_v14 = vld [vmem:[#allocation60_spill] sm:$0xff] }
 0x3ee   : > { %15324 = vmatprep.subr.bf16.mxu0 %v22450_v11  ;;  %15516 = vmatprep.subr.bf16.mxu1 %v22529_v60 }
 0x3f1   : > { %15326 = vmatpush1.bf16.msra.mxu0 %v22530_v39  ;;  %15518 = vmatpush1.bf16.msra.mxu1 %v22531_v50  ;;  %v22538_v39 = vld [vmem:[#allocation109_spill] sm:$0xff] }
 0x3f2   : > { %15328 = vmatprep.subr.bf16.mxu0 %v22532_v2  ;;  %15520 = vmatprep.subr.bf16.mxu1 %v22533_v54  ;;  %v22547_v54 = vld [vmem:[#allocation123_spill] sm:$0xff]  ;;  %v22548_v2 = vld [vmem:[#allocation114_spill] sm:$0xff] }
 0x3f5   : > { %15330 = vmatpush1.bf16.msra.mxu0 %v22534_v46  ;;  %15522 = vmatpush1.bf16.msra.mxu1 %v22535_v9  ;;  %v22541_v9 = vld [vmem:[#allocation105_spill] sm:$0xff]  ;;  %v22542_v46 = vld [vmem:[#allocation106_spill] sm:$0xff] }
 0x3f6   : > { %15332 = vmatprep.subr.bf16.mxu0 %v22536_v40  ;;  %15524 = vmatprep.subr.bf16.mxu1 %v22537_v14  ;;  %v22539_v40 = vld [vmem:[#allocation103_spill] sm:$0xff]  ;;  %v22540_v14 = vld [vmem:[#allocation104_spill] sm:$0xff] }
 0x3f8   : > { %4144 = vmatmul.mubr.f32.vlgmr.msra.gmra.mrb[4].mxu0 %v20082_v41  ;;  %4999 = vmatmul.mubr.f32.vlgmr.msra.gmra.mrb[4].mxu1 %v20082_v41 }
 0x3f9   : > { %15334 = vmatpush1.bf16.msra.mxu0 %v22460_v55  ;;  %15526 = vmatpush1.bf16.msra.mxu1 %v22538_v39  ;;  %v22543_v55 = vld [vmem:[#allocation108_spill] sm:$0xff]  ;;  %v22544_v39 = vld [vmem:[#allocation111_spill] sm:$0xff] }
 0x3fa   : > { %15336 = vmatprep.subr.bf16.mxu0 %v22462_v34  ;;  %15528 = vmatprep.subr.bf16.mxu1 %v22463_v45  ;;  %v22545_v34 = vld [vmem:[#allocation112_spill] sm:$0xff]  ;;  %v22546_v45 = vld [vmem:[#allocation113_spill] sm:$0xff] }
 0x3fb   : > { %4278 = vmatprep.mubr.f32.mxu0 %v22097_v1  ;;  %5133 = vmatprep.mubr.f32.mxu1 %v22097_v1 }
 0x3fd   : > { %15338 = vmatpush1.bf16.msra.mxu0 %v22464_v5  ;;  %15530 = vmatpush1.bf16.msra.mxu1 %v22539_v40  ;;  %v22549_v5 = vld [vmem:[#allocation125_spill] sm:$0xff]  ;;  %v22550_v40 = vld [vmem:[#allocation124_spill] sm:$0xff] }
 0x3fe   : > { %15340 = vmatprep.subr.bf16.mxu0 %v22540_v14  ;;  %15532 = vmatprep.subr.bf16.mxu1 %v22541_v9  ;;  %v22551_v14 = vld [vmem:[#allocation127_spill] sm:$0xff]  ;;  %v22552_v9 = vld [vmem:[#allocation126_spill] sm:$0xff] }
 0x401   : > { %15342 = vmatpush1.bf16.msra.mxu0 %v22542_v46  ;;  %15534 = vmatpush1.bf16.msra.mxu1 %v22543_v55 }
 0x402   : > { %15344 = vmatprep.subr.bf16.mxu0 %v22544_v39  ;;  %15536 = vmatprep.subr.bf16.mxu1 %v22545_v34  ;;  %v22579_v34 = vld [vmem:[#allocation122_spill] sm:$0xff] }
 0x405   : > { %15346 = vmatpush1.bf16.msra.mxu0 %v22546_v45  ;;  %15538 = vmatpush1.bf16.msra.mxu1 %v22547_v54  ;;  %v22572_v54 = vld [vmem:[#allocation116_spill] sm:$0xff]  ;;  %v22578_v45 = vld [vmem:[#allocation83_spill] sm:$0xff] }
 0x406   : > { %15348 = vmatprep.subr.bf16.mxu0 %v22548_v2  ;;  %15540 = vmatprep.subr.bf16.mxu1 %v22549_v5  ;;  %v22568_v5 = vld [vmem:[#allocation16_spill] sm:$0xff]  ;;  %v22569_v2 = vld [vmem:[#allocation13_spill] sm:$0xff] }
 0x409   : > { %15350 = vmatpush1.bf16.msra.mxu0 %v22550_v40  ;;  %15542 = vmatpush1.bf16.msra.mxu1 %v22551_v14  ;;  %v22553_v40 = vld [vmem:[#allocation137_spill] sm:$0xff]  ;;  %v22554_v14 = vld [vmem:[#allocation136_spill] sm:$0xff] }
 0x40a   : > { %15352 = vmatprep.subr.bf16.mxu0 %v22552_v9  ;;  %15544 = vmatprep.subr.bf16.mxu1 %v22473_v61  ;;  %v22555_v9 = vld [vmem:[#allocation110_spill] sm:$0xff]  ;;  %v22567_v61 = vld [vmem:[#allocation11_spill] sm:$0xff] }
 0x40d   : > { %15354 = vmatpush1.bf16.msra.mxu0 %v22474_v19  ;;  %15546 = vmatpush1.bf16.msra.mxu1 %v22475_v16  ;;  %v22565_v16 = vld [vmem:[#allocation64_spill] sm:$0xff]  ;;  %v22566_v19 = vld [vmem:[#allocation14_spill] sm:$0xff] }
 0x40e   : > { %15356 = vmatprep.subr.bf16.mxu0 %v22476_v32  ;;  %15548 = vmatprep.subr.bf16.mxu1 %v22477_v47  ;;  %v22563_v47 = vld [vmem:[#allocation10_spill] sm:$0xff]  ;;  %v22564_v32 = vld [vmem:[#allocation12_spill] sm:$0xff] }
 0x411   : > { %15358 = vmatpush1.bf16.msra.mxu0 %v22478_v57  ;;  %15550 = vmatpush1.bf16.msra.mxu1 %v22479_v62  ;;  %v22561_v62 = vld [vmem:[#allocation59_spill] sm:$0xff]  ;;  %v22562_v57 = vld [vmem:[#allocation61_spill] sm:$0xff] }
 0x412   : > { %15360 = vmatprep.subr.bf16.mxu0 %v22480_v12  ;;  %15552 = vmatprep.subr.bf16.mxu1 %v22553_v40  ;;  %v22559_v40 = vld [vmem:[#allocation57_spill] sm:$0xff]  ;;  %v22560_v12 = vld [vmem:[#allocation58_spill] sm:$0xff] }
 0x415   : > { %15362 = vmatpush1.bf16.msra.mxu0 %v22554_v14  ;;  %15554 = vmatpush1.bf16.msra.mxu1 %v22555_v9  ;;  %v22557_v9 = vld [vmem:[#allocation55_spill] sm:$0xff]  ;;  %v22558_v14 = vld [vmem:[#allocation56_spill] sm:$0xff] }
 0x416   : > { %15364 = vmatprep.subr.bf16.mxu0 %v22345_v21  ;;  %15556 = vmatprep.subr.bf16.mxu1 %v22348_v23 }
 0x418   : > { %4281 = vmatmul.mubr.f32.vlgmr.msra.gmra.mrb[4].mxu0 %v20085_v18  ;;  %5136 = vmatmul.mubr.f32.vlgmr.msra.gmra.mrb[4].mxu1 %v20085_v18  ;;  %v22556_v18 = vld [vmem:[#allocation54_spill] sm:$0xff] }
 0x419   : > { %15366 = vmatpush1.bf16.msra.mxu0 %v22347_v29  ;;  %15558 = vmatpush1.bf16.msra.mxu1 %v22350_v49 }
 0x41a   : > { %15368 = vmatprep.subr.bf16.mxu0 %v22349_v3  ;;  %15560 = vmatprep.subr.bf16.mxu1 %v22352_v24 }
 0x41b   : > { %4383 = vmatprep.mubr.f32.mxu0 %v22097_v1  ;;  %5238 = vmatprep.mubr.f32.mxu1 %v22097_v1 }
 0x41d   : > { %15370 = vmatpush1.bf16.msra.mxu0 %v22351_v10  ;;  %15562 = vmatpush1.bf16.msra.mxu1 %v22354_v44 }
 0x41e   : > { %15372 = vmatprep.subr.bf16.mxu0 %v22353_v30  ;;  %15564 = vmatprep.subr.bf16.mxu1 %v22356_v37 }
 0x421   : > { %15374 = vmatpush1.bf16.msra.mxu0 %v22355_v13  ;;  %15566 = vmatpush1.bf16.msra.mxu1 %v22358_v36 }
 0x422   : > { %15376 = vmatprep.subr.bf16.mxu0 %v22357_v56  ;;  %15568 = vmatprep.subr.bf16.mxu1 %v22360_v51 }
 0x425   : > { %15378 = vmatpush1.bf16.msra.mxu0 %v22359_v33  ;;  %15570 = vmatpush1.bf16.msra.mxu1 %v22362_v63 }
 0x426   : > { %15380 = vmatprep.subr.bf16.mxu0 %v22361_v42  ;;  %15572 = vmatprep.subr.bf16.mxu1 %v22364_v43 }
 0x429   : > { %15382 = vmatpush1.bf16.msra.mxu0 %v22363_v52  ;;  %15574 = vmatpush1.bf16.msra.mxu1 %v22366_v17 }
 0x42a   : > { %15384 = vmatprep.subr.bf16.mxu0 %v22365_v26  ;;  %15576 = vmatprep.subr.bf16.mxu1 %v22368_v4 }
 0x42d   : > { %15386 = vmatpush1.bf16.msra.mxu0 %v22367_v28  ;;  %15578 = vmatpush1.bf16.msra.mxu1 %v22370_v58 }
 0x42e   : > { %15388 = vmatprep.subr.bf16.mxu0 %v22369_v15  ;;  %15580 = vmatprep.subr.bf16.mxu1 %v22556_v18 }
 0x431   : > { %15390 = vmatpush1.bf16.msra.mxu0 %v22557_v9  ;;  %15582 = vmatpush1.bf16.msra.mxu1 %v22558_v14 }
 0x432   : > { %15392 = vmatprep.subr.bf16.mxu0 %v22559_v40  ;;  %15584 = vmatprep.subr.bf16.mxu1 %v22560_v12 }
 0x435   : > { %15394 = vmatpush1.bf16.msra.mxu0 %v22561_v62  ;;  %15586 = vmatpush1.bf16.msra.mxu1 %v22562_v57 }
 0x436   : > { %15396 = vmatprep.subr.bf16.mxu0 %v22563_v47  ;;  %15588 = vmatprep.subr.bf16.mxu1 %v22564_v32  ;;  %v22570_v47 = vld [vmem:[#allocation15_spill] sm:$0xff] }
 0x437   : > { %v22571_v32 = vld [vmem:[#allocation115_spill] sm:$0xff] }
 0x438   : > { %4387 = vmatmul.mubr.f32.vlgmr.msra.gmra.mrb[4].mxu0 %v20088_v6  ;;  %5242 = vmatmul.mubr.f32.vlgmr.msra.gmra.mrb[4].mxu1 %v20088_v6  ;;  %v22573_v6 = vld [vmem:[#allocation117_spill] sm:$0xff] }
 0x439   : > { %15398 = vmatpush1.bf16.msra.mxu0 %v22565_v16  ;;  %15590 = vmatpush1.bf16.msra.mxu1 %v22566_v19  ;;  %v22574_v16 = vld [vmem:[#allocation118_spill] sm:$0xff]  ;;  %v22575_v19 = vld [vmem:[#allocation119_spill] sm:$0xff] }
 0x43a   : > { %15400 = vmatprep.subr.bf16.mxu0 %v22567_v61  ;;  %15592 = vmatprep.subr.bf16.mxu1 %v22568_v5  ;;  %v22576_v61 = vld [vmem:[#allocation120_spill] sm:$0xff]  ;;  %v22577_v5 = vld [vmem:[#allocation121_spill] sm:$0xff] }
 0x43b   : > { %4553 = vmatprep.mubr.f32.mxu0 %v22097_v1  ;;  %5408 = vmatprep.mubr.f32.mxu1 %v22097_v1 }
 0x43d   : > { %15402 = vmatpush1.bf16.msra.mxu0 %v22569_v2  ;;  %15594 = vmatpush1.bf16.msra.mxu1 %v22570_v47  ;;  %v22580_v2 = vld [vmem:[#allocation86_spill] sm:$0xff] }
 0x43e   : > { %15404 = vmatprep.subr.bf16.mxu0 %v22571_v32  ;;  %15596 = vmatprep.subr.bf16.mxu1 %v22572_v54  ;;  %v22581_v47 = vld [vmem:[#allocation22_spill] sm:$0xff]  ;;  %v22582_v32 = vld [vmem:[#allocation24_spill] sm:$0xff]  ;;  %v22583_v54 = vld [vmem:[#allocation25_spill] sm:$0xff] }
 0x441   : > { %15406 = vmatpush1.bf16.msra.mxu0 %v22573_v6  ;;  %15598 = vmatpush1.bf16.msra.mxu1 %v22574_v16  ;;  %v22584_v6 = vld [vmem:[#allocation26_spill] sm:$0xff]  ;;  %v22585_v16 = vld [vmem:[#allocation29_spill] sm:$0xff] }
 0x442   : > { %15408 = vmatprep.subr.bf16.mxu0 %v22575_v19  ;;  %15600 = vmatprep.subr.bf16.mxu1 %v22576_v61  ;;  %v22586_v19 = vld [vmem:[#allocation30_spill] sm:$0xff]  ;;  %v22587_v61 = vld [vmem:[#allocation31_spill] sm:$0xff] }
 0x445   : > { %15410 = vmatpush1.bf16.msra.mxu0 %v22577_v5  ;;  %15602 = vmatpush1.bf16.msra.mxu1 %v22578_v45  ;;  %v22588_v5 = vld [vmem:[#allocation33_spill] sm:$0xff]  ;;  %v22589_v45 = vld [vmem:[#allocation35_spill] sm:$0xff] }
 0x446   : > { %15412 = vmatprep.subr.bf16.mxu0 %v22579_v34  ;;  %15604 = vmatprep.subr.bf16.mxu1 %v22580_v2  ;;  %v22590_v34 = vld [vmem:[#allocation37_spill] sm:$0xff]  ;;  %v22591_v2 = vld [vmem:[#allocation43_spill] sm:$0xff] }
 0x449   : > { %15414 = vmatpush1.bf16.msra.mxu0 %v22581_v47  ;;  %15606 = vmatpush1.bf16.msra.mxu1 %v22582_v32  ;;  %v22592_v47 = vld [vmem:[#allocation91_spill] sm:$0xff]  ;;  %v22593_v32 = vld [vmem:[#allocation46_spill] sm:$0xff] }
 0x44a   : > { %15416 = vmatprep.subr.bf16.mxu0 %v22583_v54  ;;  %15608 = vmatprep.subr.bf16.mxu1 %v22584_v6  ;;  %v22594_v54 = vld [vmem:[#allocation94_spill] sm:$0xff] }
 0x44d   : > { %15418 = vmatpush1.bf16.msra.mxu0 %v22585_v16  ;;  %15610 = vmatpush1.bf16.msra.mxu1 %v22586_v19 }
 0x44e   : > { %15420 = vmatprep.subr.bf16.mxu0 %v22587_v61  ;;  %15612 = vmatprep.subr.bf16.mxu1 %v22588_v5 }
 0x451   : > { %15422 = vmatpush1.bf16.msra.mxu0 %v22589_v45  ;;  %15614 = vmatpush1.bf16.msra.mxu1 %v22590_v34 }
 0x452   : > { %15424 = vmatprep.subr.bf16.mxu0 %v22591_v2  ;;  %15616 = vmatprep.subr.bf16.mxu1 %v22592_v47  ;;  %v14444_v47 = vld [vmem:[%s18037_s25 + $0x48] sm:$0xff] }
 0x455   : > { %15426 = vmatpush1.bf16.msra.mxu0 %v22593_v32  ;;  %15618 = vmatpush1.bf16.msra.mxu1 %v22594_v54  ;;  %v22596_v54 = vld [vmem:[#allocation67_spill] sm:$0xff]  ;;  %v14443_v32 = vld [vmem:[%s18037_s25 + $0x40] sm:$0xff] }
 0x456   : > { %15428 = vmatprep.subr.bf16.mxu0 %v22345_v21  ;;  %15620 = vmatprep.subr.bf16.mxu1 %v22348_v23 }
 0x458   : > { %4555 = vmatmul.mubr.f32.vlgmr.msra.gmra.mrb[4].mxu0 %v20082_v41  ;;  %5410 = vmatmul.mubr.f32.vlgmr.msra.gmra.mrb[4].mxu1 %v20082_v41 }
 0x459   : > { %15430 = vmatpush1.bf16.msra.mxu0 %v22347_v29  ;;  %15622 = vmatpush1.bf16.msra.mxu1 %v22350_v49 }
 0x45a   : > { %15432 = vmatprep.subr.bf16.mxu0 %v22349_v3  ;;  %15624 = vmatprep.subr.bf16.mxu1 %v22352_v24 }
 0x45b   : > { %4657 = vmatprep.mubr.f32.mxu0 %v22097_v1  ;;  %5512 = vmatprep.mubr.f32.mxu1 %v22097_v1 }
 0x45d   : > { %15434 = vmatpush1.bf16.msra.mxu0 %v22351_v10  ;;  %15626 = vmatpush1.bf16.msra.mxu1 %v22354_v44 }
 0x45e   : > { %15436 = vmatprep.subr.bf16.mxu0 %v22353_v30  ;;  %15628 = vmatprep.subr.bf16.mxu1 %v22356_v37 }
 0x461   : > { %15438 = vmatpush1.bf16.msra.mxu0 %v22355_v13  ;;  %15630 = vmatpush1.bf16.msra.mxu1 %v22358_v36 }
 0x462   : > { %15440 = vmatprep.subr.bf16.mxu0 %v22357_v56  ;;  %15632 = vmatprep.subr.bf16.mxu1 %v22360_v51 }
 0x465   : > { %15442 = vmatpush1.bf16.msra.mxu0 %v22359_v33  ;;  %15634 = vmatpush1.bf16.msra.mxu1 %v22362_v63 }
 0x466   : > { %15444 = vmatprep.subr.bf16.mxu0 %v22361_v42  ;;  %15636 = vmatprep.subr.bf16.mxu1 %v22364_v43 }
 0x469   : > { %15446 = vmatpush1.bf16.msra.mxu0 %v22363_v52  ;;  %15638 = vmatpush1.bf16.msra.mxu1 %v22366_v17 }
 0x46a   : > { %15448 = vmatprep.subr.bf16.mxu0 %v22365_v26  ;;  %15640 = vmatprep.subr.bf16.mxu1 %v22368_v4 }
 0x46d   : > { %15450 = vmatpush1.bf16.msra.mxu0 %v22367_v28  ;;  %15642 = vmatpush1.bf16.msra.mxu1 %v22370_v58 }
 0x46e   : > { %15452 = vmatprep.subr.bf16.mxu0 %v22369_v15  ;;  %15644 = vmatprep.subr.bf16.mxu1 %v22556_v18 }
 0x471   : > { %15454 = vmatpush1.bf16.msra.mxu0 %v22557_v9  ;;  %15646 = vmatpush1.bf16.msra.mxu1 %v22558_v14 }
 0x472   : > { %15456 = vmatprep.subr.bf16.mxu0 %v22559_v40  ;;  %15648 = vmatprep.subr.bf16.mxu1 %v22560_v12 }
 0x475   : > { %15458 = vmatpush1.bf16.msra.mxu0 %v22561_v62  ;;  %15650 = vmatpush1.bf16.msra.mxu1 %v22562_v57 }
 0x476   : > { %15652 = vmatprep.subr.bf16.mxu0 %v22345_v21  ;;  %15844 = vmatprep.subr.bf16.mxu1 %v22348_v23 }
 0x478   : > { %4659 = vmatmul.mubr.f32.vlgmr.msra.gmra.mrb[4].mxu0 %v20082_v41  ;;  %5514 = vmatmul.mubr.f32.vlgmr.msra.gmra.mrb[4].mxu1 %v20082_v41  ;;  %v22595_v41 = vld [vmem:[#allocation66_spill] sm:$0xff] }
 0x479   : > { %15654 = vmatpush1.bf16.msra.mxu0 %v22347_v29  ;;  %15846 = vmatpush1.bf16.msra.mxu1 %v22350_v49 }
 0x47a   : > { %15656 = vmatprep.subr.bf16.mxu0 %v22349_v3  ;;  %15848 = vmatprep.subr.bf16.mxu1 %v22352_v24 }
 0x47b   : > { %5651 = vmatprep.mubr.f32.mxu0 %v22097_v1  ;;  %6506 = vmatprep.mubr.f32.mxu1 %v22097_v1 }
 0x47d   : > { %15658 = vmatpush1.bf16.msra.mxu0 %v22351_v10  ;;  %15850 = vmatpush1.bf16.msra.mxu1 %v22354_v44 }
 0x47e   : > { %15660 = vmatprep.subr.bf16.mxu0 %v22353_v30  ;;  %15852 = vmatprep.subr.bf16.mxu1 %v22356_v37 }
 0x481   : > { %15662 = vmatpush1.bf16.msra.mxu0 %v22355_v13  ;;  %15854 = vmatpush1.bf16.msra.mxu1 %v22358_v36 }
 0x482   : > { %15664 = vmatprep.subr.bf16.mxu0 %v22357_v56  ;;  %15856 = vmatprep.subr.bf16.mxu1 %v22360_v51 }
 0x485   : > { %15666 = vmatpush1.bf16.msra.mxu0 %v22359_v33  ;;  %15858 = vmatpush1.bf16.msra.mxu1 %v22362_v63 }
 0x486   : > { %15668 = vmatprep.subr.bf16.mxu0 %v22361_v42  ;;  %15860 = vmatprep.subr.bf16.mxu1 %v22364_v43 }
 0x489   : > { %15670 = vmatpush1.bf16.msra.mxu0 %v22363_v52  ;;  %15862 = vmatpush1.bf16.msra.mxu1 %v22366_v17 }
 0x48a   : > { %15672 = vmatprep.subr.bf16.mxu0 %v22365_v26  ;;  %15864 = vmatprep.subr.bf16.mxu1 %v22368_v4 }
 0x48d   : > { %15674 = vmatpush1.bf16.msra.mxu0 %v22367_v28  ;;  %15866 = vmatpush1.bf16.msra.mxu1 %v22370_v58 }
 0x48e   : > { %15676 = vmatprep.subr.bf16.mxu0 %v22369_v15  ;;  %15868 = vmatprep.subr.bf16.mxu1 %v22556_v18 }
 0x491   : > { %15678 = vmatpush1.bf16.msra.mxu0 %v22557_v9  ;;  %15870 = vmatpush1.bf16.msra.mxu1 %v22558_v14 }
 0x492   : > { %15680 = vmatprep.subr.bf16.mxu0 %v22559_v40  ;;  %15872 = vmatprep.subr.bf16.mxu1 %v22560_v12  ;;  %v14446_v12 = vld [vmem:[%s18037_s25 + $0x58] sm:$0xff] }
 0x495   : > { %15682 = vmatpush1.bf16.msra.mxu0 %v22561_v62  ;;  %15874 = vmatpush1.bf16.msra.mxu1 %v22562_v57  ;;  %v14445_v57 = vld [vmem:[%s18037_s25 + $0x50] sm:$0xff] }
 0x496   : > { %15684 = vmatprep.subr.bf16.mxu0 %v22595_v41  ;;  %15876 = vmatprep.subr.bf16.mxu1 %v22596_v54 }
 0x54b   : > { %v4660_v2 = vpop.f32.mrb[4].mxu0  ;;  %v5515_v34 = vpop.f32.mrb[4].mxu1 }
 0x54c   : > { %v5520_v45 = vadd.f32 %v14443_v32, %v4660_v2  ;;  %v4662_v5 = vpop.f32.mrb[5].mxu0  ;;  %v5517_v61 = vpop.f32.mrb[5].mxu1  ;;  %v5522_v41 = vadd.f32 %v14445_v57, %v5515_v34 }
 0x54d   : > { %v5521_v19 = vadd.f32 %v14444_v47, %v4662_v5  ;;  %v5523_v62 = vadd.f32 %v14446_v12, %v5517_v61 }
 0x54e   : > { %v14447_v16 = vmul.f32 -1.442695, %v5520_v45 }
 0x54f   : > { %v14448_v6 = vmul.f32 -1.442695, %v5521_v19  ;;  %v14449_v40 = vmul.f32 -1.442695, %v5523_v62 }
 0x550   : > { %17803 = vpow2.f32 %v14447_v16 }
 0x551   : > { %17805 = vpow2.f32 %v14448_v6  ;;  %v22599_v6 = vld [vmem:[#allocation88_spill] sm:$0xff] }
 0x552   : > { %17807 = vpow2.f32 %v14449_v40  ;;  %v22597_v40 = vld [vmem:[#allocation82_spill] sm:$0xff] }
 0x553   : > { %17809 = vtanh.f32 %v5522_v41  ;;  %v22600_v41 = vld [vmem:[#allocation89_spill] sm:$0xff] }
 0x55a   : > { %v17804_v14 = vpop.eup %17803 }
 0x55b   : > { %v17806_v9 = vpop.eup %17805  ;;  %v5527_v54 = vadd.f32 1.0, %v17804_v14 }
 0x55c   : > { %v5533_v18 = vadd.f32 1.0, %v17806_v9  ;;  %v17808_v32 = vpop.eup %17807 }
 0x55d   : > { %17811 = vrcp.f32 %v5527_v54  ;;  %v17810_v47 = vpop.eup %17809  ;;  %v5540_v16 = vadd.f32 1.0, %v17808_v32  ;;  %v22601_v32 = vld [vmem:[#allocation90_spill] sm:$0xff] }
 0x55e   : > { %17813 = vrcp.f32 %v5533_v18  ;;  %v22598_v18 = vld [vmem:[#allocation87_spill] sm:$0xff] }
 0x55f   : > { %17815 = vrcp.f32 %v5540_v16  ;;  %v22606_v16 = vld [vmem:[#allocation45_spill] sm:$0xff] }
 0x567   : > { %v17812_v45 = vpop.eup %17811 }
 0x568   : > { %v17814_v19 = vpop.eup %17813  ;;  %v5544_v5 = vmul.f32 %v17812_v45, %v17810_v47  ;;  %v22602_v47 = vld [vmem:[#allocation34_spill] sm:$0xff] }
 0x569   : > { %v5543_v12 = vmul.f32 %v17814_v19, %v20078_v0  ;;  %v17816_v62 = vpop.eup %17815  ;;  %v22603_v45 = vld [vmem:[#allocation38_spill] sm:$0xff]  ;;  %v22604_v19 = vld [vmem:[#allocation39_spill] sm:$0xff] }
 0x56b   : > { %v20311_v61 = vadd.f32 %v5544_v5, %v5543_v12  ;;  %v22605_v5 = vld [vmem:[#allocation42_spill] sm:$0xff]  ;;  %v22607_v12 = vld [vmem:[#allocation95_spill] sm:$0xff] }
 0x56d   : > { %17817 = vtanh.f32 %v20311_v61 }
 0x577   : > { %v17818_v57 = vpop.eup %17817 }
 0x578   : > { %v5547_v34 = vmul.f32 %v17818_v57, %v17816_v62  ;;  %v22608_v62 = vld [vmem:[#allocation96_spill] sm:$0xff]  ;;  %v22609_v57 = vld [vmem:[#allocation97_spill] sm:$0xff] }
 0x57a   : > { %14450 = vst [vmem:[%s18042_s28 + $0x10] sm:$0xff] %v5547_v34  ;;  %v20315_v14 = vand.u32 4294901760, %v5547_v34 }
 0x57c   : > { %v20318_v2 = vsub.f32 %v5547_v34, %v20315_v14  ;;  %v22610_v34 = vld [vmem:[#allocation100_spill] sm:$0xff] }
 0x57e   : > { %v20321_v54 = vand.u32 4294901760, %v20318_v2 }
 0x580   : > { %v5655_v0 = vsub.f32 %v20318_v2, %v20321_v54 }
 0x582   : > { %v5656_v9 = vand.u32 4294901760, %v5655_v0  ;;  %v22611_v0 = vld [vmem:[#allocation62_spill] sm:$0xff] }
 0x584   : > { %5657 = vmatmul.mubr.f32.vlgmr.msra.gmra.mrb[6].mxu0 %v5656_v9  ;;  %6512 = vmatmul.mubr.f32.vlgmr.msra.gmra.mrb[6].mxu1 %v5656_v9  ;;  %v22612_v9 = vld [vmem:[#allocation98_spill] sm:$0xff] }
 0x585   : > { %15686 = vmatpush1.bf16.msra.mxu0 %v22428_v53  ;;  %15878 = vmatpush1.bf16.msra.mxu1 %v22429_v20 }
 0x586   : > { %15688 = vmatprep.subr.bf16.mxu0 %v22430_v59  ;;  %15880 = vmatprep.subr.bf16.mxu1 %v22431_v38 }
 0x587   : > { %5887 = vmatprep.mubr.f32.mxu0 %v22097_v1  ;;  %6742 = vmatprep.mubr.f32.mxu1 %v22097_v1 }
 0x589   : > { %15690 = vmatpush1.bf16.msra.mxu0 %v22512_v8  ;;  %15882 = vmatpush1.bf16.msra.mxu1 %v22513_v31 }
 0x58a   : > { %15692 = vmatprep.subr.bf16.mxu0 %v22514_v35  ;;  %15884 = vmatprep.subr.bf16.mxu1 %v22515_v7 }
 0x58d   : > { %15694 = vmatpush1.bf16.msra.mxu0 %v22516_v48  ;;  %15886 = vmatpush1.bf16.msra.mxu1 %v22597_v40 }
 0x58e   : > { %15696 = vmatprep.subr.bf16.mxu0 %v22518_v25  ;;  %15888 = vmatprep.subr.bf16.mxu1 %v22519_v27 }
 0x591   : > { %15698 = vmatpush1.bf16.msra.mxu0 %v22598_v18  ;;  %15890 = vmatpush1.bf16.msra.mxu1 %v22599_v6 }
 0x592   : > { %15700 = vmatprep.subr.bf16.mxu0 %v22600_v41  ;;  %15892 = vmatprep.subr.bf16.mxu1 %v22601_v32 }
 0x595   : > { %15702 = vmatpush1.bf16.msra.mxu0 %v22602_v47  ;;  %15894 = vmatpush1.bf16.msra.mxu1 %v22603_v45 }
 0x596   : > { %15704 = vmatprep.subr.bf16.mxu0 %v22604_v19  ;;  %15896 = vmatprep.subr.bf16.mxu1 %v22605_v5  ;;  %v22663_v5 = vld [vmem:[#allocation83_spill] sm:$0xff]  ;;  %v22664_v19 = vld [vmem:[#allocation122_spill] sm:$0xff] }
 0x599   : > { %15706 = vmatpush1.bf16.msra.mxu0 %v22606_v16  ;;  %15898 = vmatpush1.bf16.msra.mxu1 %v22449_v22  ;;  %v22613_v16 = vld [vmem:[#allocation60_spill] sm:$0xff] }
 0x59a   : > { %15708 = vmatprep.subr.bf16.mxu0 %v22450_v11  ;;  %15900 = vmatprep.subr.bf16.mxu1 %v22529_v60  ;;  %v22614_v60 = vld [vmem:[#allocation107_spill] sm:$0xff]  ;;  %v22654_v11 = vld [vmem:[#allocation13_spill] sm:$0xff]  ;;  %v22657_v22 = vld [vmem:[#allocation116_spill] sm:$0xff] }
 0x59d   : > { %15710 = vmatpush1.bf16.msra.mxu0 %v22607_v12  ;;  %15902 = vmatpush1.bf16.msra.mxu1 %v22531_v50  ;;  %v22615_v12 = vld [vmem:[#allocation109_spill] sm:$0xff]  ;;  %v22616_v50 = vld [vmem:[#allocation99_spill] sm:$0xff] }
 0x59e   : > { %15712 = vmatprep.subr.bf16.mxu0 %v22608_v62  ;;  %15904 = vmatprep.subr.bf16.mxu1 %v22609_v57  ;;  %v22617_v62 = vld [vmem:[#allocation101_spill] sm:$0xff]  ;;  %v22653_v57 = vld [vmem:[#allocation16_spill] sm:$0xff] }
 0x5a1   : > { %15714 = vmatpush1.bf16.msra.mxu0 %v22610_v34  ;;  %15906 = vmatpush1.bf16.msra.mxu1 %v22611_v0  ;;  %v22618_v0 = vld [vmem:[#allocation102_spill] sm:$0xff]  ;;  %v22621_v34 = vld [vmem:[#allocation105_spill] sm:$0xff] }
 0x5a2   : > { %15716 = vmatprep.subr.bf16.mxu0 %v22612_v9  ;;  %15908 = vmatprep.subr.bf16.mxu1 %v22613_v16  ;;  %v22619_v9 = vld [vmem:[#allocation103_spill] sm:$0xff]  ;;  %v22620_v16 = vld [vmem:[#allocation104_spill] sm:$0xff] }
 0x5a4   : > { %5889 = vmatmul.mubr.f32.vlgmr.msra.gmra.mrb[6].mxu0 %v20315_v14  ;;  %6744 = vmatmul.mubr.f32.vlgmr.msra.gmra.mrb[6].mxu1 %v20315_v14 }
 0x5a5   : > { %15718 = vmatpush1.bf16.msra.mxu0 %v22614_v60  ;;  %15910 = vmatpush1.bf16.msra.mxu1 %v22615_v12  ;;  %v22624_v12 = vld [vmem:[#allocation123_spill] sm:$0xff]  ;;  %v22625_v60 = vld [vmem:[#allocation114_spill] sm:$0xff] }
 0x5a6   : > { %15720 = vmatprep.subr.bf16.mxu0 %v22616_v50  ;;  %15912 = vmatprep.subr.bf16.mxu1 %v22617_v62  ;;  %v22622_v50 = vld [vmem:[#allocation112_spill] sm:$0xff]  ;;  %v22623_v62 = vld [vmem:[#allocation113_spill] sm:$0xff] }
 0x5a7   : > { %6023 = vmatprep.mubr.f32.mxu0 %v22097_v1  ;;  %6878 = vmatprep.mubr.f32.mxu1 %v22097_v1 }
 0x5a9   : > { %15722 = vmatpush1.bf16.msra.mxu0 %v22618_v0  ;;  %15914 = vmatpush1.bf16.msra.mxu1 %v22619_v9  ;;  %v22626_v0 = vld [vmem:[#allocation125_spill] sm:$0xff]  ;;  %v22627_v9 = vld [vmem:[#allocation124_spill] sm:$0xff] }
 0x5aa   : > { %15724 = vmatprep.subr.bf16.mxu0 %v22620_v16  ;;  %15916 = vmatprep.subr.bf16.mxu1 %v22621_v34  ;;  %v22628_v16 = vld [vmem:[#allocation127_spill] sm:$0xff]  ;;  %v22629_v34 = vld [vmem:[#allocation126_spill] sm:$0xff] }
 0x5ad   : > { %15726 = vmatpush1.bf16.msra.mxu0 %v22542_v46  ;;  %15918 = vmatpush1.bf16.msra.mxu1 %v22543_v55  ;;  %v22630_v46 = vld [vmem:[#allocation129_spill] sm:$0xff]  ;;  %v22631_v55 = vld [vmem:[#allocation128_spill] sm:$0xff] }
 0x5ae   : > { %15728 = vmatprep.subr.bf16.mxu0 %v22544_v39  ;;  %15920 = vmatprep.subr.bf16.mxu1 %v22622_v50  ;;  %v22632_v39 = vld [vmem:[#allocation131_spill] sm:$0xff]  ;;  %v22633_v50 = vld [vmem:[#allocation130_spill] sm:$0xff] }
 0x5b1   : > { %15730 = vmatpush1.bf16.msra.mxu0 %v22623_v62  ;;  %15922 = vmatpush1.bf16.msra.mxu1 %v22624_v12  ;;  %v22634_v62 = vld [vmem:[#allocation133_spill] sm:$0xff]  ;;  %v22635_v12 = vld [vmem:[#allocation132_spill] sm:$0xff] }
 0x5b2   : > { %15732 = vmatprep.subr.bf16.mxu0 %v22625_v60  ;;  %15924 = vmatprep.subr.bf16.mxu1 %v22626_v0  ;;  %v22636_v60 = vld [vmem:[#allocation135_spill] sm:$0xff]  ;;  %v22637_v0 = vld [vmem:[#allocation134_spill] sm:$0xff] }
 0x5b5   : > { %15734 = vmatpush1.bf16.msra.mxu0 %v22627_v9  ;;  %15926 = vmatpush1.bf16.msra.mxu1 %v22628_v16  ;;  %v22638_v9 = vld [vmem:[#allocation137_spill] sm:$0xff]  ;;  %v22639_v16 = vld [vmem:[#allocation136_spill] sm:$0xff] }
 0x5b6   : > { %15736 = vmatprep.subr.bf16.mxu0 %v22629_v34  ;;  %15928 = vmatprep.subr.bf16.mxu1 %v22630_v46  ;;  %v22640_v34 = vld [vmem:[#allocation110_spill] sm:$0xff]  ;;  %v22652_v46 = vld [vmem:[#allocation11_spill] sm:$0xff] }
 0x5b9   : > { %15738 = vmatpush1.bf16.msra.mxu0 %v22631_v55  ;;  %15930 = vmatpush1.bf16.msra.mxu1 %v22632_v39  ;;  %v22650_v39 = vld [vmem:[#allocation64_spill] sm:$0xff]  ;;  %v22651_v55 = vld [vmem:[#allocation14_spill] sm:$0xff] }
 0x5ba   : > { %15740 = vmatprep.subr.bf16.mxu0 %v22633_v50  ;;  %15932 = vmatprep.subr.bf16.mxu1 %v22634_v62  ;;  %v22648_v62 = vld [vmem:[#allocation10_spill] sm:$0xff]  ;;  %v22649_v50 = vld [vmem:[#allocation12_spill] sm:$0xff] }
 0x5bd   : > { %15742 = vmatpush1.bf16.msra.mxu0 %v22635_v12  ;;  %15934 = vmatpush1.bf16.msra.mxu1 %v22636_v60  ;;  %v22646_v60 = vld [vmem:[#allocation59_spill] sm:$0xff]  ;;  %v22647_v12 = vld [vmem:[#allocation61_spill] sm:$0xff] }
 0x5be   : > { %15744 = vmatprep.subr.bf16.mxu0 %v22637_v0  ;;  %15936 = vmatprep.subr.bf16.mxu1 %v22638_v9  ;;  %v22644_v9 = vld [vmem:[#allocation57_spill] sm:$0xff]  ;;  %v22645_v0 = vld [vmem:[#allocation58_spill] sm:$0xff] }
 0x5c1   : > { %15746 = vmatpush1.bf16.msra.mxu0 %v22639_v16  ;;  %15938 = vmatpush1.bf16.msra.mxu1 %v22640_v34  ;;  %v22642_v34 = vld [vmem:[#allocation55_spill] sm:$0xff]  ;;  %v22643_v16 = vld [vmem:[#allocation56_spill] sm:$0xff] }
 0x5c2   : > { %15748 = vmatprep.subr.bf16.mxu0 %v22345_v21  ;;  %15940 = vmatprep.subr.bf16.mxu1 %v22348_v23 }
 0x5c4   : > { %6026 = vmatmul.mubr.f32.vlgmr.msra.gmra.mrb[6].mxu0 %v20318_v2  ;;  %6881 = vmatmul.mubr.f32.vlgmr.msra.gmra.mrb[6].mxu1 %v20318_v2  ;;  %v22641_v2 = vld [vmem:[#allocation54_spill] sm:$0xff] }
 0x5c5   : > { %15750 = vmatpush1.bf16.msra.mxu0 %v22347_v29  ;;  %15942 = vmatpush1.bf16.msra.mxu1 %v22350_v49 }
 0x5c6   : > { %15752 = vmatprep.subr.bf16.mxu0 %v22349_v3  ;;  %15944 = vmatprep.subr.bf16.mxu1 %v22352_v24 }
 0x5c7   : > { %6128 = vmatprep.mubr.f32.mxu0 %v22097_v1  ;;  %6983 = vmatprep.mubr.f32.mxu1 %v22097_v1 }
 0x5c9   : > { %15754 = vmatpush1.bf16.msra.mxu0 %v22351_v10  ;;  %15946 = vmatpush1.bf16.msra.mxu1 %v22354_v44 }
 0x5ca   : > { %15756 = vmatprep.subr.bf16.mxu0 %v22353_v30  ;;  %15948 = vmatprep.subr.bf16.mxu1 %v22356_v37 }
 0x5cd   : > { %15758 = vmatpush1.bf16.msra.mxu0 %v22355_v13  ;;  %15950 = vmatpush1.bf16.msra.mxu1 %v22358_v36 }
 0x5ce   : > { %15760 = vmatprep.subr.bf16.mxu0 %v22357_v56  ;;  %15952 = vmatprep.subr.bf16.mxu1 %v22360_v51 }
 0x5d1   : > { %15762 = vmatpush1.bf16.msra.mxu0 %v22359_v33  ;;  %15954 = vmatpush1.bf16.msra.mxu1 %v22362_v63 }
 0x5d2   : > { %15764 = vmatprep.subr.bf16.mxu0 %v22361_v42  ;;  %15956 = vmatprep.subr.bf16.mxu1 %v22364_v43 }
 0x5d5   : > { %15766 = vmatpush1.bf16.msra.mxu0 %v22363_v52  ;;  %15958 = vmatpush1.bf16.msra.mxu1 %v22366_v17 }
 0x5d6   : > { %15768 = vmatprep.subr.bf16.mxu0 %v22365_v26  ;;  %15960 = vmatprep.subr.bf16.mxu1 %v22368_v4 }
 0x5d9   : > { %15770 = vmatpush1.bf16.msra.mxu0 %v22367_v28  ;;  %15962 = vmatpush1.bf16.msra.mxu1 %v22370_v58 }
 0x5da   : > { %15772 = vmatprep.subr.bf16.mxu0 %v22369_v15  ;;  %15964 = vmatprep.subr.bf16.mxu1 %v22641_v2 }
 0x5dd   : > { %15774 = vmatpush1.bf16.msra.mxu0 %v22642_v34  ;;  %15966 = vmatpush1.bf16.msra.mxu1 %v22643_v16 }
 0x5de   : > { %15776 = vmatprep.subr.bf16.mxu0 %v22644_v9  ;;  %15968 = vmatprep.subr.bf16.mxu1 %v22645_v0 }
 0x5e1   : > { %15778 = vmatpush1.bf16.msra.mxu0 %v22646_v60  ;;  %15970 = vmatpush1.bf16.msra.mxu1 %v22647_v12 }
 0x5e2   : > { %15780 = vmatprep.subr.bf16.mxu0 %v22648_v62  ;;  %15972 = vmatprep.subr.bf16.mxu1 %v22649_v50  ;;  %v22655_v62 = vld [vmem:[#allocation15_spill] sm:$0xff] }
 0x5e3   : > { %v22656_v50 = vld [vmem:[#allocation115_spill] sm:$0xff] }
 0x5e4   : > { %6132 = vmatmul.mubr.f32.vlgmr.msra.gmra.mrb[6].mxu0 %v20321_v54  ;;  %6987 = vmatmul.mubr.f32.vlgmr.msra.gmra.mrb[6].mxu1 %v20321_v54  ;;  %v22658_v54 = vld [vmem:[#allocation117_spill] sm:$0xff] }
 0x5e5   : > { %15782 = vmatpush1.bf16.msra.mxu0 %v22650_v39  ;;  %15974 = vmatpush1.bf16.msra.mxu1 %v22651_v55  ;;  %v22659_v39 = vld [vmem:[#allocation118_spill] sm:$0xff]  ;;  %v22660_v55 = vld [vmem:[#allocation119_spill] sm:$0xff] }
 0x5e6   : > { %15784 = vmatprep.subr.bf16.mxu0 %v22652_v46  ;;  %15976 = vmatprep.subr.bf16.mxu1 %v22653_v57  ;;  %v22661_v46 = vld [vmem:[#allocation120_spill] sm:$0xff]  ;;  %v22662_v57 = vld [vmem:[#allocation121_spill] sm:$0xff] }
 0x5e7   : > { %6298 = vmatprep.mubr.f32.mxu0 %v22097_v1  ;;  %7153 = vmatprep.mubr.f32.mxu1 %v22097_v1 }
 0x5e9   : > { %15786 = vmatpush1.bf16.msra.mxu0 %v22654_v11  ;;  %15978 = vmatpush1.bf16.msra.mxu1 %v22655_v62  ;;  %v22665_v11 = vld [vmem:[#allocation86_spill] sm:$0xff] }
 0x5ea   : > { %15788 = vmatprep.subr.bf16.mxu0 %v22656_v50  ;;  %15980 = vmatprep.subr.bf16.mxu1 %v22657_v22  ;;  %v22666_v62 = vld [vmem:[#allocation22_spill] sm:$0xff]  ;;  %v22667_v50 = vld [vmem:[#allocation24_spill] sm:$0xff]  ;;  %v22668_v22 = vld [vmem:[#allocation25_spill] sm:$0xff] }
 0x5ed   : > { %15790 = vmatpush1.bf16.msra.mxu0 %v22658_v54  ;;  %15982 = vmatpush1.bf16.msra.mxu1 %v22659_v39  ;;  %v22669_v54 = vld [vmem:[#allocation26_spill] sm:$0xff]  ;;  %v22670_v39 = vld [vmem:[#allocation29_spill] sm:$0xff] }
 0x5ee   : > { %15792 = vmatprep.subr.bf16.mxu0 %v22660_v55  ;;  %15984 = vmatprep.subr.bf16.mxu1 %v22661_v46  ;;  %v22671_v55 = vld [vmem:[#allocation30_spill] sm:$0xff]  ;;  %v22672_v46 = vld [vmem:[#allocation31_spill] sm:$0xff] }
 0x5f1   : > { %15794 = vmatpush1.bf16.msra.mxu0 %v22662_v57  ;;  %15986 = vmatpush1.bf16.msra.mxu1 %v22663_v5  ;;  %v22673_v57 = vld [vmem:[#allocation33_spill] sm:$0xff]  ;;  %v22674_v5 = vld [vmem:[#allocation35_spill] sm:$0xff] }
 0x5f2   : > { %15796 = vmatprep.subr.bf16.mxu0 %v22664_v19  ;;  %15988 = vmatprep.subr.bf16.mxu1 %v22665_v11  ;;  %v22675_v19 = vld [vmem:[#allocation37_spill] sm:$0xff]  ;;  %v22676_v11 = vld [vmem:[#allocation43_spill] sm:$0xff] }
 0x5f5   : > { %15798 = vmatpush1.bf16.msra.mxu0 %v22666_v62  ;;  %15990 = vmatpush1.bf16.msra.mxu1 %v22667_v50  ;;  %v22677_v62 = vld [vmem:[#allocation91_spill] sm:$0xff]  ;;  %v22678_v50 = vld [vmem:[#allocation46_spill] sm:$0xff] }
 0x5f6   : > { %15800 = vmatprep.subr.bf16.mxu0 %v22668_v22  ;;  %15992 = vmatprep.subr.bf16.mxu1 %v22669_v54  ;;  %v22679_v22 = vld [vmem:[#allocation94_spill] sm:$0xff] }
 0x5f9   : > { %15802 = vmatpush1.bf16.msra.mxu0 %v22670_v39  ;;  %15994 = vmatpush1.bf16.msra.mxu1 %v22671_v55 }
 0x5fa   : > { %15804 = vmatprep.subr.bf16.mxu0 %v22672_v46  ;;  %15996 = vmatprep.subr.bf16.mxu1 %v22673_v57 }
 0x5fd   : > { %15806 = vmatpush1.bf16.msra.mxu0 %v22674_v5  ;;  %15998 = vmatpush1.bf16.msra.mxu1 %v22675_v19 }
 0x5fe   : > { %15808 = vmatprep.subr.bf16.mxu0 %v22676_v11  ;;  %16000 = vmatprep.subr.bf16.mxu1 %v22677_v62  ;;  %v14452_v62 = vld [vmem:[%s18037_s25 + $0x68] sm:$0xff] }
 0x601   : > { %15810 = vmatpush1.bf16.msra.mxu0 %v22678_v50  ;;  %16002 = vmatpush1.bf16.msra.mxu1 %v22679_v22  ;;  %v22681_v22 = vld [vmem:[#allocation67_spill] sm:$0xff]  ;;  %v14451_v50 = vld [vmem:[%s18037_s25 + $0x60] sm:$0xff] }
 0x602   : > { %15812 = vmatprep.subr.bf16.mxu0 %v22345_v21  ;;  %16004 = vmatprep.subr.bf16.mxu1 %v22348_v23 }
 0x604   : > { %6300 = vmatmul.mubr.f32.vlgmr.msra.gmra.mrb[6].mxu0 %v20315_v14  ;;  %7155 = vmatmul.mubr.f32.vlgmr.msra.gmra.mrb[6].mxu1 %v20315_v14 }
 0x605   : > { %15814 = vmatpush1.bf16.msra.mxu0 %v22347_v29  ;;  %16006 = vmatpush1.bf16.msra.mxu1 %v22350_v49 }
 0x606   : > { %15816 = vmatprep.subr.bf16.mxu0 %v22349_v3  ;;  %16008 = vmatprep.subr.bf16.mxu1 %v22352_v24 }
 0x607   : > { %6402 = vmatprep.mubr.f32.mxu0 %v22097_v1  ;;  %7257 = vmatprep.mubr.f32.mxu1 %v22097_v1 }
 0x609   : > { %15818 = vmatpush1.bf16.msra.mxu0 %v22351_v10  ;;  %16010 = vmatpush1.bf16.msra.mxu1 %v22354_v44 }
 0x60a   : > { %15820 = vmatprep.subr.bf16.mxu0 %v22353_v30  ;;  %16012 = vmatprep.subr.bf16.mxu1 %v22356_v37 }
 0x60d   : > { %15822 = vmatpush1.bf16.msra.mxu0 %v22355_v13  ;;  %16014 = vmatpush1.bf16.msra.mxu1 %v22358_v36 }
 0x60e   : > { %15824 = vmatprep.subr.bf16.mxu0 %v22357_v56  ;;  %16016 = vmatprep.subr.bf16.mxu1 %v22360_v51 }
 0x611   : > { %15826 = vmatpush1.bf16.msra.mxu0 %v22359_v33  ;;  %16018 = vmatpush1.bf16.msra.mxu1 %v22362_v63 }
 0x612   : > { %15828 = vmatprep.subr.bf16.mxu0 %v22361_v42  ;;  %16020 = vmatprep.subr.bf16.mxu1 %v22364_v43 }
 0x615   : > { %15830 = vmatpush1.bf16.msra.mxu0 %v22363_v52  ;;  %16022 = vmatpush1.bf16.msra.mxu1 %v22366_v17 }
 0x616   : > { %15832 = vmatprep.subr.bf16.mxu0 %v22365_v26  ;;  %16024 = vmatprep.subr.bf16.mxu1 %v22368_v4 }
 0x619   : > { %15834 = vmatpush1.bf16.msra.mxu0 %v22367_v28  ;;  %16026 = vmatpush1.bf16.msra.mxu1 %v22370_v58 }
 0x61a   : > { %15836 = vmatprep.subr.bf16.mxu0 %v22369_v15  ;;  %16028 = vmatprep.subr.bf16.mxu1 %v22641_v2 }
 0x61d   : > { %15838 = vmatpush1.bf16.msra.mxu0 %v22642_v34  ;;  %16030 = vmatpush1.bf16.msra.mxu1 %v22643_v16 }
 0x61e   : > { %15840 = vmatprep.subr.bf16.mxu0 %v22644_v9  ;;  %16032 = vmatprep.subr.bf16.mxu1 %v22645_v0 }
 0x621   : > { %15842 = vmatpush1.bf16.msra.mxu0 %v22646_v60  ;;  %16034 = vmatpush1.bf16.msra.mxu1 %v22647_v12 }
 0x622   : > { %16036 = vmatprep.subr.bf16.mxu0 %v22345_v21  ;;  %16228 = vmatprep.subr.bf16.mxu1 %v22348_v23 }
 0x624   : > { %6404 = vmatmul.mubr.f32.vlgmr.msra.gmra.mrb[6].mxu0 %v20315_v14  ;;  %7259 = vmatmul.mubr.f32.vlgmr.msra.gmra.mrb[6].mxu1 %v20315_v14  ;;  %v22680_v14 = vld [vmem:[#allocation66_spill] sm:$0xff] }
 0x625   : > { %16038 = vmatpush1.bf16.msra.mxu0 %v22347_v29  ;;  %16230 = vmatpush1.bf16.msra.mxu1 %v22350_v49 }
 0x626   : > { %16040 = vmatprep.subr.bf16.mxu0 %v22349_v3  ;;  %16232 = vmatprep.subr.bf16.mxu1 %v22352_v24 }
 0x627   : > { %7396 = vmatprep.mubr.f32.mxu0 %v22097_v1  ;;  %8251 = vmatprep.mubr.f32.mxu1 %v22097_v1 }
 0x629   : > { %16042 = vmatpush1.bf16.msra.mxu0 %v22351_v10  ;;  %16234 = vmatpush1.bf16.msra.mxu1 %v22354_v44 }
 0x62a   : > { %16044 = vmatprep.subr.bf16.mxu0 %v22353_v30  ;;  %16236 = vmatprep.subr.bf16.mxu1 %v22356_v37 }
 0x62d   : > { %16046 = vmatpush1.bf16.msra.mxu0 %v22355_v13  ;;  %16238 = vmatpush1.bf16.msra.mxu1 %v22358_v36 }
 0x62e   : > { %16048 = vmatprep.subr.bf16.mxu0 %v22357_v56  ;;  %16240 = vmatprep.subr.bf16.mxu1 %v22360_v51 }
 0x631   : > { %16050 = vmatpush1.bf16.msra.mxu0 %v22359_v33  ;;  %16242 = vmatpush1.bf16.msra.mxu1 %v22362_v63 }
 0x632   : > { %16052 = vmatprep.subr.bf16.mxu0 %v22361_v42  ;;  %16244 = vmatprep.subr.bf16.mxu1 %v22364_v43 }
 0x635   : > { %16054 = vmatpush1.bf16.msra.mxu0 %v22363_v52  ;;  %16246 = vmatpush1.bf16.msra.mxu1 %v22366_v17 }
 0x636   : > { %16056 = vmatprep.subr.bf16.mxu0 %v22365_v26  ;;  %16248 = vmatprep.subr.bf16.mxu1 %v22368_v4 }
 0x639   : > { %16058 = vmatpush1.bf16.msra.mxu0 %v22367_v28  ;;  %16250 = vmatpush1.bf16.msra.mxu1 %v22370_v58 }
 0x63a   : > { %16060 = vmatprep.subr.bf16.mxu0 %v22369_v15  ;;  %16252 = vmatprep.subr.bf16.mxu1 %v22641_v2 }
 0x63d   : > { %16062 = vmatpush1.bf16.msra.mxu0 %v22642_v34  ;;  %16254 = vmatpush1.bf16.msra.mxu1 %v22643_v16 }
 0x63e   : > { %16064 = vmatprep.subr.bf16.mxu0 %v22644_v9  ;;  %16256 = vmatprep.subr.bf16.mxu1 %v22645_v0  ;;  %v14454_v0 = vld [vmem:[%s18037_s25 + $0x78] sm:$0xff] }
 0x641   : > { %16066 = vmatpush1.bf16.msra.mxu0 %v22646_v60  ;;  %16258 = vmatpush1.bf16.msra.mxu1 %v22647_v12  ;;  %v14453_v12 = vld [vmem:[%s18037_s25 + $0x70] sm:$0xff] }
 0x642   : > { %16068 = vmatprep.subr.bf16.mxu0 %v22680_v14  ;;  %16260 = vmatprep.subr.bf16.mxu1 %v22681_v22 }
 0x6f7   : > { %v6405_v11 = vpop.f32.mrb[6].mxu0  ;;  %v7260_v19 = vpop.f32.mrb[6].mxu1 }
 0x6f8   : > { %v7265_v5 = vadd.f32 %v14451_v50, %v6405_v11  ;;  %v6407_v57 = vpop.f32.mrb[7].mxu0  ;;  %v7262_v46 = vpop.f32.mrb[7].mxu1  ;;  %v7267_v14 = vadd.f32 %v14453_v12, %v7260_v19 }
 0x6f9   : > { %v7266_v55 = vadd.f32 %v14452_v62, %v6407_v57  ;;  %v7268_v60 = vadd.f32 %v14454_v0, %v7262_v46 }
 0x6fa   : > { %v14455_v39 = vmul.f32 -1.442695, %v7265_v5 }
 0x6fb   : > { %v14456_v54 = vmul.f32 -1.442695, %v7266_v55  ;;  %v14457_v9 = vmul.f32 -1.442695, %v7268_v60 }
 0x6fc   : > { %17819 = vpow2.f32 %v14455_v39 }
 0x6fd   : > { %17821 = vpow2.f32 %v14456_v54  ;;  %v22684_v54 = vld [vmem:[#allocation45_spill] sm:$0xff] }
 0x6fe   : > { %17823 = vpow2.f32 %v14457_v9  ;;  %v22682_v9 = vld [vmem:[#allocation39_spill] sm:$0xff] }
 0x6ff   : > { %17825 = vtanh.f32 %v7267_v14  ;;  %v22685_v14 = vld [vmem:[#allocation92_spill] sm:$0xff] }
 0x706   : > { %v17820_v16 = vpop.eup %17819 }
 0x707   : > { %v17822_v34 = vpop.eup %17821  ;;  %v7272_v22 = vadd.f32 1.0, %v17820_v16 }
 0x708   : > { %v7278_v2 = vadd.f32 1.0, %v17822_v34  ;;  %v17824_v11 = vpop.eup %17823 }
 0x709   : > { %17827 = vrcp.f32 %v7272_v22  ;;  %v17826_v50 = vpop.eup %17825  ;;  %v7285_v62 = vadd.f32 1.0, %v17824_v11  ;;  %v22686_v11 = vld [vmem:[#allocation93_spill] sm:$0xff] }
 0x70a   : > { %17829 = vrcp.f32 %v7278_v2  ;;  %v22683_v2 = vld [vmem:[#allocation42_spill] sm:$0xff] }
 0x70b   : > { %17831 = vrcp.f32 %v7285_v62  ;;  %v22691_v62 = vld [vmem:[#allocation97_spill] sm:$0xff] }
 0x713   : > { %v17828_v5 = vpop.eup %17827 }
 0x714   : > { %v17830_v55 = vpop.eup %17829  ;;  %v7289_v39 = vmul.f32 %v17828_v5, %v17826_v50  ;;  %v22687_v50 = vld [vmem:[#allocation48_spill] sm:$0xff]  ;;  %v22688_v5 = vld [vmem:[#allocation95_spill] sm:$0xff] }
 0x715   : > { %v7288_v46 = vmul.f32 %v17830_v55, %v20311_v61  ;;  %v17832_v60 = vpop.eup %17831  ;;  %v22689_v55 = vld [vmem:[#allocation52_spill] sm:$0xff] }
 0x717   : > { %v20544_v57 = vadd.f32 %v7289_v39, %v7288_v46  ;;  %v22690_v39 = vld [vmem:[#allocation96_spill] sm:$0xff] }
 0x718   : > { %v22692_v46 = vld [vmem:[#allocation100_spill] sm:$0xff] }
 0x719   : > { %17833 = vtanh.f32 %v20544_v57 }
 0x723   : > { %v17834_v19 = vpop.eup %17833 }
 0x724   : > { %v7292_v16 = vmul.f32 %v17834_v19, %v17832_v60  ;;  %v22693_v60 = vld [vmem:[#allocation62_spill] sm:$0xff] }
 0x725   : > { %v22694_v19 = vld [vmem:[#allocation98_spill] sm:$0xff] }
 0x726   : > { %14458 = vst [vmem:[%s18042_s28 + $0x18] sm:$0xff] %v7292_v16  ;;  %v20548_v12 = vand.u32 4294901760, %v7292_v16 }
 0x728   : > { %v20551_v22 = vsub.f32 %v7292_v16, %v20548_v12  ;;  %v22695_v16 = vld [vmem:[#allocation60_spill] sm:$0xff] }
 0x72a   : > { %v20554_v34 = vand.u32 4294901760, %v20551_v22 }
 0x72c   : > { %v7400_v61 = vsub.f32 %v20551_v22, %v20554_v34 }
 0x72e   : > { %v7401_v0 = vand.u32 4294901760, %v7400_v61  ;;  %v22696_v61 = vld [vmem:[#allocation107_spill] sm:$0xff] }
 0x730   : > { %7402 = vmatmul.mubr.f32.vlgmr.msra.gmra.mrb[8].mxu0 %v7401_v0  ;;  %8257 = vmatmul.mubr.f32.vlgmr.msra.gmra.mrb[8].mxu1 %v7401_v0  ;;  %v22697_v0 = vld [vmem:[#allocation109_spill] sm:$0xff] }
 0x731   : > { %16070 = vmatpush1.bf16.msra.mxu0 %v22428_v53  ;;  %16262 = vmatpush1.bf16.msra.mxu1 %v22429_v20 }
 0x732   : > { %16072 = vmatprep.subr.bf16.mxu0 %v22430_v59  ;;  %16264 = vmatprep.subr.bf16.mxu1 %v22431_v38 }
 0x733   : > { %7632 = vmatprep.mubr.f32.mxu0 %v22097_v1  ;;  %8487 = vmatprep.mubr.f32.mxu1 %v22097_v1 }
 0x735   : > { %16074 = vmatpush1.bf16.msra.mxu0 %v22512_v8  ;;  %16266 = vmatpush1.bf16.msra.mxu1 %v22513_v31 }
 0x736   : > { %16076 = vmatprep.subr.bf16.mxu0 %v22514_v35  ;;  %16268 = vmatprep.subr.bf16.mxu1 %v22515_v7 }
 0x739   : > { %16078 = vmatpush1.bf16.msra.mxu0 %v22516_v48  ;;  %16270 = vmatpush1.bf16.msra.mxu1 %v22597_v40 }
 0x73a   : > { %16080 = vmatprep.subr.bf16.mxu0 %v22518_v25  ;;  %16272 = vmatprep.subr.bf16.mxu1 %v22519_v27 }
 0x73d   : > { %16082 = vmatpush1.bf16.msra.mxu0 %v22598_v18  ;;  %16274 = vmatpush1.bf16.msra.mxu1 %v22599_v6 }
 0x73e   : > { %16084 = vmatprep.subr.bf16.mxu0 %v22600_v41  ;;  %16276 = vmatprep.subr.bf16.mxu1 %v22601_v32 }
 0x741   : > { %16086 = vmatpush1.bf16.msra.mxu0 %v22602_v47  ;;  %16278 = vmatpush1.bf16.msra.mxu1 %v22603_v45 }
 0x742   : > { %16088 = vmatprep.subr.bf16.mxu0 %v22682_v9  ;;  %16280 = vmatprep.subr.bf16.mxu1 %v22683_v2  ;;  %v22748_v2 = vld [vmem:[#allocation83_spill] sm:$0xff]  ;;  %v22749_v9 = vld [vmem:[#allocation122_spill] sm:$0xff] }
 0x745   : > { %16090 = vmatpush1.bf16.msra.mxu0 %v22684_v54  ;;  %16282 = vmatpush1.bf16.msra.mxu1 %v22685_v14  ;;  %v22739_v14 = vld [vmem:[#allocation13_spill] sm:$0xff]  ;;  %v22742_v54 = vld [vmem:[#allocation116_spill] sm:$0xff] }
 0x746   : > { %16092 = vmatprep.subr.bf16.mxu0 %v22686_v11  ;;  %16284 = vmatprep.subr.bf16.mxu1 %v22687_v50  ;;  %v22710_v50 = vld [vmem:[#allocation114_spill] sm:$0xff]  ;;  %v22738_v11 = vld [vmem:[#allocation16_spill] sm:$0xff] }
 0x749   : > { %16094 = vmatpush1.bf16.msra.mxu0 %v22688_v5  ;;  %16286 = vmatpush1.bf16.msra.mxu1 %v22689_v55  ;;  %v22698_v55 = vld [vmem:[#allocation99_spill] sm:$0xff] }
 0x74a   : > { %16096 = vmatprep.subr.bf16.mxu0 %v22690_v39  ;;  %16288 = vmatprep.subr.bf16.mxu1 %v22691_v62  ;;  %v22699_v39 = vld [vmem:[#allocation101_spill] sm:$0xff]  ;;  %v22704_v62 = vld [vmem:[#allocation106_spill] sm:$0xff]  ;;  %v22709_v5 = vld [vmem:[#allocation123_spill] sm:$0xff] }
 0x74d   : > { %16098 = vmatpush1.bf16.msra.mxu0 %v22692_v46  ;;  %16290 = vmatpush1.bf16.msra.mxu1 %v22693_v60  ;;  %v22700_v60 = vld [vmem:[#allocation102_spill] sm:$0xff]  ;;  %v22703_v46 = vld [vmem:[#allocation105_spill] sm:$0xff] }
 0x74e   : > { %16100 = vmatprep.subr.bf16.mxu0 %v22694_v19  ;;  %16292 = vmatprep.subr.bf16.mxu1 %v22695_v16  ;;  %v22701_v19 = vld [vmem:[#allocation103_spill] sm:$0xff]  ;;  %v22702_v16 = vld [vmem:[#allocation104_spill] sm:$0xff] }
 0x750   : > { %7634 = vmatmul.mubr.f32.vlgmr.msra.gmra.mrb[8].mxu0 %v20548_v12  ;;  %8489 = vmatmul.mubr.f32.vlgmr.msra.gmra.mrb[8].mxu1 %v20548_v12 }
 0x751   : > { %16102 = vmatpush1.bf16.msra.mxu0 %v22696_v61  ;;  %16294 = vmatpush1.bf16.msra.mxu1 %v22697_v0  ;;  %v22705_v61 = vld [vmem:[#allocation108_spill] sm:$0xff]  ;;  %v22706_v0 = vld [vmem:[#allocation111_spill] sm:$0xff] }
 0x752   : > { %16104 = vmatprep.subr.bf16.mxu0 %v22698_v55  ;;  %16296 = vmatprep.subr.bf16.mxu1 %v22699_v39  ;;  %v22707_v55 = vld [vmem:[#allocation112_spill] sm:$0xff]  ;;  %v22708_v39 = vld [vmem:[#allocation113_spill] sm:$0xff] }
 0x753   : > { %7768 = vmatprep.mubr.f32.mxu0 %v22097_v1  ;;  %8623 = vmatprep.mubr.f32.mxu1 %v22097_v1 }
 0x755   : > { %16106 = vmatpush1.bf16.msra.mxu0 %v22700_v60  ;;  %16298 = vmatpush1.bf16.msra.mxu1 %v22701_v19  ;;  %v22711_v60 = vld [vmem:[#allocation125_spill] sm:$0xff]  ;;  %v22712_v19 = vld [vmem:[#allocation124_spill] sm:$0xff] }
 0x756   : > { %16108 = vmatprep.subr.bf16.mxu0 %v22702_v16  ;;  %16300 = vmatprep.subr.bf16.mxu1 %v22703_v46  ;;  %v22713_v16 = vld [vmem:[#allocation127_spill] sm:$0xff]  ;;  %v22714_v46 = vld [vmem:[#allocation126_spill] sm:$0xff] }
 0x759   : > { %16110 = vmatpush1.bf16.msra.mxu0 %v22704_v62  ;;  %16302 = vmatpush1.bf16.msra.mxu1 %v22705_v61  ;;  %v22715_v62 = vld [vmem:[#allocation129_spill] sm:$0xff]  ;;  %v22716_v61 = vld [vmem:[#allocation128_spill] sm:$0xff] }
 0x75a   : > { %16112 = vmatprep.subr.bf16.mxu0 %v22706_v0  ;;  %16304 = vmatprep.subr.bf16.mxu1 %v22707_v55  ;;  %v22717_v0 = vld [vmem:[#allocation131_spill] sm:$0xff]  ;;  %v22718_v55 = vld [vmem:[#allocation130_spill] sm:$0xff] }
 0x75d   : > { %16114 = vmatpush1.bf16.msra.mxu0 %v22708_v39  ;;  %16306 = vmatpush1.bf16.msra.mxu1 %v22709_v5  ;;  %v22719_v39 = vld [vmem:[#allocation133_spill] sm:$0xff]  ;;  %v22720_v5 = vld [vmem:[#allocation132_spill] sm:$0xff] }
 0x75e   : > { %16116 = vmatprep.subr.bf16.mxu0 %v22710_v50  ;;  %16308 = vmatprep.subr.bf16.mxu1 %v22711_v60  ;;  %v22721_v50 = vld [vmem:[#allocation135_spill] sm:$0xff]  ;;  %v22722_v60 = vld [vmem:[#allocation134_spill] sm:$0xff] }
 0x761   : > { %16118 = vmatpush1.bf16.msra.mxu0 %v22712_v19  ;;  %16310 = vmatpush1.bf16.msra.mxu1 %v22713_v16  ;;  %v22723_v19 = vld [vmem:[#allocation137_spill] sm:$0xff]  ;;  %v22724_v16 = vld [vmem:[#allocation136_spill] sm:$0xff] }
 0x762   : > { %16120 = vmatprep.subr.bf16.mxu0 %v22714_v46  ;;  %16312 = vmatprep.subr.bf16.mxu1 %v22715_v62  ;;  %v22725_v46 = vld [vmem:[#allocation110_spill] sm:$0xff]  ;;  %v22737_v62 = vld [vmem:[#allocation11_spill] sm:$0xff] }
 0x765   : > { %16122 = vmatpush1.bf16.msra.mxu0 %v22716_v61  ;;  %16314 = vmatpush1.bf16.msra.mxu1 %v22717_v0  ;;  %v22735_v0 = vld [vmem:[#allocation64_spill] sm:$0xff]  ;;  %v22736_v61 = vld [vmem:[#allocation14_spill] sm:$0xff] }
 0x766   : > { %16124 = vmatprep.subr.bf16.mxu0 %v22718_v55  ;;  %16316 = vmatprep.subr.bf16.mxu1 %v22719_v39  ;;  %v22733_v39 = vld [vmem:[#allocation10_spill] sm:$0xff]  ;;  %v22734_v55 = vld [vmem:[#allocation12_spill] sm:$0xff] }
 0x769   : > { %16126 = vmatpush1.bf16.msra.mxu0 %v22720_v5  ;;  %16318 = vmatpush1.bf16.msra.mxu1 %v22721_v50  ;;  %v22731_v50 = vld [vmem:[#allocation59_spill] sm:$0xff]  ;;  %v22732_v5 = vld [vmem:[#allocation61_spill] sm:$0xff] }
 0x76a   : > { %16128 = vmatprep.subr.bf16.mxu0 %v22722_v60  ;;  %16320 = vmatprep.subr.bf16.mxu1 %v22723_v19  ;;  %v22729_v19 = vld [vmem:[#allocation57_spill] sm:$0xff]  ;;  %v22730_v60 = vld [vmem:[#allocation58_spill] sm:$0xff] }
 0x76d   : > { %16130 = vmatpush1.bf16.msra.mxu0 %v22724_v16  ;;  %16322 = vmatpush1.bf16.msra.mxu1 %v22725_v46  ;;  %v22727_v46 = vld [vmem:[#allocation55_spill] sm:$0xff]  ;;  %v22728_v16 = vld [vmem:[#allocation56_spill] sm:$0xff] }
 0x76e   : > { %16132 = vmatprep.subr.bf16.mxu0 %v22345_v21  ;;  %16324 = vmatprep.subr.bf16.mxu1 %v22348_v23 }
 0x770   : > { %7771 = vmatmul.mubr.f32.vlgmr.msra.gmra.mrb[8].mxu0 %v20551_v22  ;;  %8626 = vmatmul.mubr.f32.vlgmr.msra.gmra.mrb[8].mxu1 %v20551_v22  ;;  %v22726_v22 = vld [vmem:[#allocation54_spill] sm:$0xff] }
 0x771   : > { %16134 = vmatpush1.bf16.msra.mxu0 %v22347_v29  ;;  %16326 = vmatpush1.bf16.msra.mxu1 %v22350_v49 }
 0x772   : > { %16136 = vmatprep.subr.bf16.mxu0 %v22349_v3  ;;  %16328 = vmatprep.subr.bf16.mxu1 %v22352_v24 }
 0x773   : > { %7873 = vmatprep.mubr.f32.mxu0 %v22097_v1  ;;  %8728 = vmatprep.mubr.f32.mxu1 %v22097_v1 }
 0x775   : > { %16138 = vmatpush1.bf16.msra.mxu0 %v22351_v10  ;;  %16330 = vmatpush1.bf16.msra.mxu1 %v22354_v44 }
 0x776   : > { %16140 = vmatprep.subr.bf16.mxu0 %v22353_v30  ;;  %16332 = vmatprep.subr.bf16.mxu1 %v22356_v37 }
 0x779   : > { %16142 = vmatpush1.bf16.msra.mxu0 %v22355_v13  ;;  %16334 = vmatpush1.bf16.msra.mxu1 %v22358_v36 }
 0x77a   : > { %16144 = vmatprep.subr.bf16.mxu0 %v22357_v56  ;;  %16336 = vmatprep.subr.bf16.mxu1 %v22360_v51 }
 0x77d   : > { %16146 = vmatpush1.bf16.msra.mxu0 %v22359_v33  ;;  %16338 = vmatpush1.bf16.msra.mxu1 %v22362_v63 }
 0x77e   : > { %16148 = vmatprep.subr.bf16.mxu0 %v22361_v42  ;;  %16340 = vmatprep.subr.bf16.mxu1 %v22364_v43 }
 0x781   : > { %16150 = vmatpush1.bf16.msra.mxu0 %v22363_v52  ;;  %16342 = vmatpush1.bf16.msra.mxu1 %v22366_v17 }
 0x782   : > { %16152 = vmatprep.subr.bf16.mxu0 %v22365_v26  ;;  %16344 = vmatprep.subr.bf16.mxu1 %v22368_v4 }
 0x785   : > { %16154 = vmatpush1.bf16.msra.mxu0 %v22367_v28  ;;  %16346 = vmatpush1.bf16.msra.mxu1 %v22370_v58 }
 0x786   : > { %16156 = vmatprep.subr.bf16.mxu0 %v22369_v15  ;;  %16348 = vmatprep.subr.bf16.mxu1 %v22726_v22 }
 0x789   : > { %16158 = vmatpush1.bf16.msra.mxu0 %v22727_v46  ;;  %16350 = vmatpush1.bf16.msra.mxu1 %v22728_v16 }
 0x78a   : > { %16160 = vmatprep.subr.bf16.mxu0 %v22729_v19  ;;  %16352 = vmatprep.subr.bf16.mxu1 %v22730_v60 }
 0x78d   : > { %16162 = vmatpush1.bf16.msra.mxu0 %v22731_v50  ;;  %16354 = vmatpush1.bf16.msra.mxu1 %v22732_v5 }
 0x78e   : > { %16164 = vmatprep.subr.bf16.mxu0 %v22733_v39  ;;  %16356 = vmatprep.subr.bf16.mxu1 %v22734_v55  ;;  %v22740_v39 = vld [vmem:[#allocation15_spill] sm:$0xff] }
 0x78f   : > { %v22741_v55 = vld [vmem:[#allocation115_spill] sm:$0xff] }
 0x790   : > { %7877 = vmatmul.mubr.f32.vlgmr.msra.gmra.mrb[8].mxu0 %v20554_v34  ;;  %8732 = vmatmul.mubr.f32.vlgmr.msra.gmra.mrb[8].mxu1 %v20554_v34  ;;  %v22743_v34 = vld [vmem:[#allocation117_spill] sm:$0xff] }
 0x791   : > { %16166 = vmatpush1.bf16.msra.mxu0 %v22735_v0  ;;  %16358 = vmatpush1.bf16.msra.mxu1 %v22736_v61  ;;  %v22744_v0 = vld [vmem:[#allocation118_spill] sm:$0xff]  ;;  %v22745_v61 = vld [vmem:[#allocation119_spill] sm:$0xff] }
 0x792   : > { %16168 = vmatprep.subr.bf16.mxu0 %v22737_v62  ;;  %16360 = vmatprep.subr.bf16.mxu1 %v22738_v11  ;;  %v22746_v62 = vld [vmem:[#allocation120_spill] sm:$0xff]  ;;  %v22747_v11 = vld [vmem:[#allocation121_spill] sm:$0xff] }
 0x793   : > { %8043 = vmatprep.mubr.f32.mxu0 %v22097_v1  ;;  %8898 = vmatprep.mubr.f32.mxu1 %v22097_v1 }
 0x795   : > { %16170 = vmatpush1.bf16.msra.mxu0 %v22739_v14  ;;  %16362 = vmatpush1.bf16.msra.mxu1 %v22740_v39  ;;  %v22750_v14 = vld [vmem:[#allocation86_spill] sm:$0xff] }
 0x796   : > { %16172 = vmatprep.subr.bf16.mxu0 %v22741_v55  ;;  %16364 = vmatprep.subr.bf16.mxu1 %v22742_v54  ;;  %v22751_v39 = vld [vmem:[#allocation22_spill] sm:$0xff]  ;;  %v22752_v55 = vld [vmem:[#allocation24_spill] sm:$0xff]  ;;  %v22753_v54 = vld [vmem:[#allocation25_spill] sm:$0xff] }
 0x799   : > { %16174 = vmatpush1.bf16.msra.mxu0 %v22743_v34  ;;  %16366 = vmatpush1.bf16.msra.mxu1 %v22744_v0  ;;  %v22754_v34 = vld [vmem:[#allocation26_spill] sm:$0xff]  ;;  %v22755_v0 = vld [vmem:[#allocation29_spill] sm:$0xff] }
 0x79a   : > { %16176 = vmatprep.subr.bf16.mxu0 %v22745_v61  ;;  %16368 = vmatprep.subr.bf16.mxu1 %v22746_v62  ;;  %v22756_v61 = vld [vmem:[#allocation30_spill] sm:$0xff]  ;;  %v22757_v62 = vld [vmem:[#allocation31_spill] sm:$0xff] }
 0x79d   : > { %16178 = vmatpush1.bf16.msra.mxu0 %v22747_v11  ;;  %16370 = vmatpush1.bf16.msra.mxu1 %v22748_v2  ;;  %v22758_v11 = vld [vmem:[#allocation33_spill] sm:$0xff]  ;;  %v22759_v2 = vld [vmem:[#allocation35_spill] sm:$0xff] }
 0x79e   : > { %16180 = vmatprep.subr.bf16.mxu0 %v22749_v9  ;;  %16372 = vmatprep.subr.bf16.mxu1 %v22750_v14  ;;  %v22760_v9 = vld [vmem:[#allocation37_spill] sm:$0xff]  ;;  %v22761_v14 = vld [vmem:[#allocation43_spill] sm:$0xff] }
 0x7a1   : > { %16182 = vmatpush1.bf16.msra.mxu0 %v22751_v39  ;;  %16374 = vmatpush1.bf16.msra.mxu1 %v22752_v55  ;;  %v22762_v39 = vld [vmem:[#allocation91_spill] sm:$0xff]  ;;  %v22763_v55 = vld [vmem:[#allocation46_spill] sm:$0xff] }
 0x7a2   : > { %16184 = vmatprep.subr.bf16.mxu0 %v22753_v54  ;;  %16376 = vmatprep.subr.bf16.mxu1 %v22754_v34  ;;  %v22764_v54 = vld [vmem:[#allocation94_spill] sm:$0xff] }
 0x7a5   : > { %16186 = vmatpush1.bf16.msra.mxu0 %v22755_v0  ;;  %16378 = vmatpush1.bf16.msra.mxu1 %v22756_v61 }
 0x7a6   : > { %16188 = vmatprep.subr.bf16.mxu0 %v22757_v62  ;;  %16380 = vmatprep.subr.bf16.mxu1 %v22758_v11 }
 0x7a9   : > { %16190 = vmatpush1.bf16.msra.mxu0 %v22759_v2  ;;  %16382 = vmatpush1.bf16.msra.mxu1 %v22760_v9 }
 0x7aa   : > { %16192 = vmatprep.subr.bf16.mxu0 %v22761_v14  ;;  %16384 = vmatprep.subr.bf16.mxu1 %v22762_v39  ;;  %v14460_v39 = vld [vmem:[%s18037_s25 + $0x88] sm:$0xff] }
 0x7ad   : > { %16194 = vmatpush1.bf16.msra.mxu0 %v22763_v55  ;;  %16386 = vmatpush1.bf16.msra.mxu1 %v22764_v54  ;;  %v22766_v54 = vld [vmem:[#allocation67_spill] sm:$0xff]  ;;  %v14459_v55 = vld [vmem:[%s18037_s25 + $0x80] sm:$0xff] }
 0x7ae   : > { %16196 = vmatprep.subr.bf16.mxu0 %v22345_v21  ;;  %16388 = vmatprep.subr.bf16.mxu1 %v22348_v23 }
 0x7b0   : > { %8045 = vmatmul.mubr.f32.vlgmr.msra.gmra.mrb[8].mxu0 %v20548_v12  ;;  %8900 = vmatmul.mubr.f32.vlgmr.msra.gmra.mrb[8].mxu1 %v20548_v12 }
 0x7b1   : > { %16198 = vmatpush1.bf16.msra.mxu0 %v22347_v29  ;;  %16390 = vmatpush1.bf16.msra.mxu1 %v22350_v49 }
 0x7b2   : > { %16200 = vmatprep.subr.bf16.mxu0 %v22349_v3  ;;  %16392 = vmatprep.subr.bf16.mxu1 %v22352_v24 }
 0x7b3   : > { %8147 = vmatprep.mubr.f32.mxu0 %v22097_v1  ;;  %9002 = vmatprep.mubr.f32.mxu1 %v22097_v1 }
 0x7b5   : > { %16202 = vmatpush1.bf16.msra.mxu0 %v22351_v10  ;;  %16394 = vmatpush1.bf16.msra.mxu1 %v22354_v44 }
 0x7b6   : > { %16204 = vmatprep.subr.bf16.mxu0 %v22353_v30  ;;  %16396 = vmatprep.subr.bf16.mxu1 %v22356_v37 }
 0x7b9   : > { %16206 = vmatpush1.bf16.msra.mxu0 %v22355_v13  ;;  %16398 = vmatpush1.bf16.msra.mxu1 %v22358_v36 }
 0x7ba   : > { %16208 = vmatprep.subr.bf16.mxu0 %v22357_v56  ;;  %16400 = vmatprep.subr.bf16.mxu1 %v22360_v51 }
 0x7bd   : > { %16210 = vmatpush1.bf16.msra.mxu0 %v22359_v33  ;;  %16402 = vmatpush1.bf16.msra.mxu1 %v22362_v63 }
 0x7be   : > { %16212 = vmatprep.subr.bf16.mxu0 %v22361_v42  ;;  %16404 = vmatprep.subr.bf16.mxu1 %v22364_v43 }
 0x7c1   : > { %16214 = vmatpush1.bf16.msra.mxu0 %v22363_v52  ;;  %16406 = vmatpush1.bf16.msra.mxu1 %v22366_v17 }
 0x7c2   : > { %16216 = vmatprep.subr.bf16.mxu0 %v22365_v26  ;;  %16408 = vmatprep.subr.bf16.mxu1 %v22368_v4 }
 0x7c5   : > { %16218 = vmatpush1.bf16.msra.mxu0 %v22367_v28  ;;  %16410 = vmatpush1.bf16.msra.mxu1 %v22370_v58 }
 0x7c6   : > { %16220 = vmatprep.subr.bf16.mxu0 %v22369_v15  ;;  %16412 = vmatprep.subr.bf16.mxu1 %v22726_v22 }
 0x7c9   : > { %16222 = vmatpush1.bf16.msra.mxu0 %v22727_v46  ;;  %16414 = vmatpush1.bf16.msra.mxu1 %v22728_v16 }
 0x7ca   : > { %16224 = vmatprep.subr.bf16.mxu0 %v22729_v19  ;;  %16416 = vmatprep.subr.bf16.mxu1 %v22730_v60 }
 0x7cd   : > { %16226 = vmatpush1.bf16.msra.mxu0 %v22731_v50  ;;  %16418 = vmatpush1.bf16.msra.mxu1 %v22732_v5 }
 0x7ce   : > { %16420 = vmatprep.subr.bf16.mxu0 %v22345_v21  ;;  %16612 = vmatprep.subr.bf16.mxu1 %v22348_v23 }
 0x7d0   : > { %8149 = vmatmul.mubr.f32.vlgmr.msra.gmra.mrb[8].mxu0 %v20548_v12  ;;  %9004 = vmatmul.mubr.f32.vlgmr.msra.gmra.mrb[8].mxu1 %v20548_v12  ;;  %v22765_v12 = vld [vmem:[#allocation66_spill] sm:$0xff] }
 0x7d1   : > { %16422 = vmatpush1.bf16.msra.mxu0 %v22347_v29  ;;  %16614 = vmatpush1.bf16.msra.mxu1 %v22350_v49 }
 0x7d2   : > { %16424 = vmatprep.subr.bf16.mxu0 %v22349_v3  ;;  %16616 = vmatprep.subr.bf16.mxu1 %v22352_v24 }
 0x7d3   : > { %9141 = vmatprep.mubr.f32.mxu0 %v22097_v1  ;;  %9996 = vmatprep.mubr.f32.mxu1 %v22097_v1 }
 0x7d5   : > { %16426 = vmatpush1.bf16.msra.mxu0 %v22351_v10  ;;  %16618 = vmatpush1.bf16.msra.mxu1 %v22354_v44 }
 0x7d6   : > { %16428 = vmatprep.subr.bf16.mxu0 %v22353_v30  ;;  %16620 = vmatprep.subr.bf16.mxu1 %v22356_v37 }
 0x7d9   : > { %16430 = vmatpush1.bf16.msra.mxu0 %v22355_v13  ;;  %16622 = vmatpush1.bf16.msra.mxu1 %v22358_v36 }
 0x7da   : > { %16432 = vmatprep.subr.bf16.mxu0 %v22357_v56  ;;  %16624 = vmatprep.subr.bf16.mxu1 %v22360_v51 }
 0x7dd   : > { %16434 = vmatpush1.bf16.msra.mxu0 %v22359_v33  ;;  %16626 = vmatpush1.bf16.msra.mxu1 %v22362_v63 }
 0x7de   : > { %16436 = vmatprep.subr.bf16.mxu0 %v22361_v42  ;;  %16628 = vmatprep.subr.bf16.mxu1 %v22364_v43 }
 0x7e1   : > { %16438 = vmatpush1.bf16.msra.mxu0 %v22363_v52  ;;  %16630 = vmatpush1.bf16.msra.mxu1 %v22366_v17 }
 0x7e2   : > { %16440 = vmatprep.subr.bf16.mxu0 %v22365_v26  ;;  %16632 = vmatprep.subr.bf16.mxu1 %v22368_v4 }
 0x7e5   : > { %16442 = vmatpush1.bf16.msra.mxu0 %v22367_v28  ;;  %16634 = vmatpush1.bf16.msra.mxu1 %v22370_v58 }
 0x7e6   : > { %16444 = vmatprep.subr.bf16.mxu0 %v22369_v15  ;;  %16636 = vmatprep.subr.bf16.mxu1 %v22726_v22 }
 0x7e9   : > { %16446 = vmatpush1.bf16.msra.mxu0 %v22727_v46  ;;  %16638 = vmatpush1.bf16.msra.mxu1 %v22728_v16 }
 0x7ea   : > { %16448 = vmatprep.subr.bf16.mxu0 %v22729_v19  ;;  %16640 = vmatprep.subr.bf16.mxu1 %v22730_v60  ;;  %v14462_v60 = vld [vmem:[%s18037_s25 + $0x98] sm:$0xff] }
 0x7ed   : > { %16450 = vmatpush1.bf16.msra.mxu0 %v22731_v50  ;;  %16642 = vmatpush1.bf16.msra.mxu1 %v22732_v5  ;;  %v14461_v5 = vld [vmem:[%s18037_s25 + $0x90] sm:$0xff] }
 0x7ee   : > { %16452 = vmatprep.subr.bf16.mxu0 %v22765_v12  ;;  %16644 = vmatprep.subr.bf16.mxu1 %v22766_v54 }
 0x8a3   : > { %v8150_v14 = vpop.f32.mrb[8].mxu0  ;;  %v9005_v9 = vpop.f32.mrb[8].mxu1 }
 0x8a4   : > { %v9010_v2 = vadd.f32 %v14459_v55, %v8150_v14  ;;  %v8152_v11 = vpop.f32.mrb[9].mxu0  ;;  %v9007_v62 = vpop.f32.mrb[9].mxu1  ;;  %v9012_v12 = vadd.f32 %v14461_v5, %v9005_v9 }
 0x8a5   : > { %v9011_v61 = vadd.f32 %v14460_v39, %v8152_v11  ;;  %v9013_v50 = vadd.f32 %v14462_v60, %v9007_v62 }
 0x8a6   : > { %v14463_v0 = vmul.f32 -1.442695, %v9010_v2 }
 0x8a7   : > { %v14464_v34 = vmul.f32 -1.442695, %v9011_v61  ;;  %v14465_v19 = vmul.f32 -1.442695, %v9013_v50 }
 0x8a8   : > { %17835 = vpow2.f32 %v14463_v0  ;;  %v22767_v0 = vld [vmem:[#allocation39_spill] sm:$0xff] }
 0x8a9   : > { %17837 = vpow2.f32 %v14464_v34  ;;  %v22769_v34 = vld [vmem:[#allocation45_spill] sm:$0xff] }
 0x8aa   : > { %17839 = vpow2.f32 %v14465_v19 }
 0x8ab   : > { %17841 = vtanh.f32 %v9012_v12  ;;  %v22770_v12 = vld [vmem:[#allocation92_spill] sm:$0xff] }
 0x8b2   : > { %v17836_v16 = vpop.eup %17835 }
 0x8b3   : > { %v17838_v46 = vpop.eup %17837  ;;  %v9017_v54 = vadd.f32 1.0, %v17836_v16 }
 0x8b4   : > { %v9023_v22 = vadd.f32 1.0, %v17838_v46  ;;  %v17840_v14 = vpop.eup %17839 }
 0x8b5   : > { %17843 = vrcp.f32 %v9017_v54  ;;  %v17842_v11 = vpop.eup %17841  ;;  %v9030_v61 = vadd.f32 1.0, %v17840_v14  ;;  %v22771_v14 = vld [vmem:[#allocation93_spill] sm:$0xff] }
 0x8b6   : > { %17845 = vrcp.f32 %v9023_v22  ;;  %v22768_v22 = vld [vmem:[#allocation42_spill] sm:$0xff] }
 0x8b7   : > { %17847 = vrcp.f32 %v9030_v61  ;;  %v22776_v61 = vld [vmem:[#allocation97_spill] sm:$0xff] }
 0x8bf   : > { %v17844_v2 = vpop.eup %17843 }
 0x8c0   : > { %v17846_v55 = vpop.eup %17845  ;;  %v9034_v39 = vmul.f32 %v17844_v2, %v17842_v11  ;;  %v22772_v11 = vld [vmem:[#allocation48_spill] sm:$0xff]  ;;  %v22773_v2 = vld [vmem:[#allocation95_spill] sm:$0xff] }
 0x8c1   : > { %v9033_v62 = vmul.f32 %v17846_v55, %v20544_v57  ;;  %v17848_v9 = vpop.eup %17847  ;;  %v22774_v55 = vld [vmem:[#allocation52_spill] sm:$0xff] }
 0x8c3   : > { %v20777_v60 = vadd.f32 %v9034_v39, %v9033_v62  ;;  %v22775_v39 = vld [vmem:[#allocation96_spill] sm:$0xff] }
 0x8c4   : > { %v22777_v62 = vld [vmem:[#allocation100_spill] sm:$0xff] }
 0x8c5   : > { %17849 = vtanh.f32 %v20777_v60 }
 0x8cf   : > { %v17850_v50 = vpop.eup %17849 }
 0x8d0   : > { %v9037_v5 = vmul.f32 %v17850_v50, %v17848_v9  ;;  %v22778_v9 = vld [vmem:[#allocation62_spill] sm:$0xff] }
 0x8d1   : > { %v22779_v50 = vld [vmem:[#allocation98_spill] sm:$0xff] }
 0x8d2   : > { %14466 = vst [vmem:[%s18042_s28 + $0x20] sm:$0xff] %v9037_v5  ;;  %v20781_v46 = vand.u32 4294901760, %v9037_v5 }
 0x8d4   : > { %v20784_v54 = vsub.f32 %v9037_v5, %v20781_v46  ;;  %v22780_v5 = vld [vmem:[#allocation60_spill] sm:$0xff] }
 0x8d6   : > { %v20787_v19 = vand.u32 4294901760, %v20784_v54 }
 0x8d8   : > { %v9145_v57 = vsub.f32 %v20784_v54, %v20787_v19 }
 0x8da   : > { %v9146_v16 = vand.u32 4294901760, %v9145_v57  ;;  %v22781_v57 = vld [vmem:[#allocation107_spill] sm:$0xff] }
 0x8dc   : > { %9147 = vmatmul.mubr.f32.vlgmr.msra.gmra.mrb[10].mxu0 %v9146_v16  ;;  %10002 = vmatmul.mubr.f32.vlgmr.msra.gmra.mrb[10].mxu1 %v9146_v16  ;;  %v22782_v16 = vld [vmem:[#allocation109_spill] sm:$0xff] }
 0x8dd   : > { %16454 = vmatpush1.bf16.msra.mxu0 %v22428_v53  ;;  %16646 = vmatpush1.bf16.msra.mxu1 %v22429_v20 }
 0x8de   : > { %16456 = vmatprep.subr.bf16.mxu0 %v22430_v59  ;;  %16648 = vmatprep.subr.bf16.mxu1 %v22431_v38 }
 0x8df   : > { %9377 = vmatprep.mubr.f32.mxu0 %v22097_v1  ;;  %10232 = vmatprep.mubr.f32.mxu1 %v22097_v1 }
 0x8e1   : > { %16458 = vmatpush1.bf16.msra.mxu0 %v22512_v8  ;;  %16650 = vmatpush1.bf16.msra.mxu1 %v22513_v31 }
 0x8e2   : > { %16460 = vmatprep.subr.bf16.mxu0 %v22514_v35  ;;  %16652 = vmatprep.subr.bf16.mxu1 %v22515_v7 }
 0x8e5   : > { %16462 = vmatpush1.bf16.msra.mxu0 %v22516_v48  ;;  %16654 = vmatpush1.bf16.msra.mxu1 %v22597_v40 }
 0x8e6   : > { %16464 = vmatprep.subr.bf16.mxu0 %v22518_v25  ;;  %16656 = vmatprep.subr.bf16.mxu1 %v22519_v27 }
 0x8e9   : > { %16466 = vmatpush1.bf16.msra.mxu0 %v22598_v18  ;;  %16658 = vmatpush1.bf16.msra.mxu1 %v22599_v6 }
 0x8ea   : > { %16468 = vmatprep.subr.bf16.mxu0 %v22600_v41  ;;  %16660 = vmatprep.subr.bf16.mxu1 %v22601_v32 }
 0x8ed   : > { %16470 = vmatpush1.bf16.msra.mxu0 %v22602_v47  ;;  %16662 = vmatpush1.bf16.msra.mxu1 %v22603_v45 }
 0x8ee   : > { %16472 = vmatprep.subr.bf16.mxu0 %v22767_v0  ;;  %16664 = vmatprep.subr.bf16.mxu1 %v22768_v22  ;;  %v22833_v22 = vld [vmem:[#allocation83_spill] sm:$0xff]  ;;  %v22834_v0 = vld [vmem:[#allocation122_spill] sm:$0xff] }
 0x8f1   : > { %16474 = vmatpush1.bf16.msra.mxu0 %v22769_v34  ;;  %16666 = vmatpush1.bf16.msra.mxu1 %v22770_v12  ;;  %v22824_v12 = vld [vmem:[#allocation13_spill] sm:$0xff]  ;;  %v22827_v34 = vld [vmem:[#allocation116_spill] sm:$0xff] }
 0x8f2   : > { %16476 = vmatprep.subr.bf16.mxu0 %v22771_v14  ;;  %16668 = vmatprep.subr.bf16.mxu1 %v22772_v11  ;;  %v22795_v11 = vld [vmem:[#allocation114_spill] sm:$0xff]  ;;  %v22823_v14 = vld [vmem:[#allocation16_spill] sm:$0xff] }
 0x8f5   : > { %16478 = vmatpush1.bf16.msra.mxu0 %v22773_v2  ;;  %16670 = vmatpush1.bf16.msra.mxu1 %v22774_v55  ;;  %v22783_v55 = vld [vmem:[#allocation99_spill] sm:$0xff] }
 0x8f6   : > { %16480 = vmatprep.subr.bf16.mxu0 %v22775_v39  ;;  %16672 = vmatprep.subr.bf16.mxu1 %v22776_v61  ;;  %v22784_v39 = vld [vmem:[#allocation101_spill] sm:$0xff]  ;;  %v22789_v61 = vld [vmem:[#allocation106_spill] sm:$0xff]  ;;  %v22794_v2 = vld [vmem:[#allocation123_spill] sm:$0xff] }
 0x8f9   : > { %16482 = vmatpush1.bf16.msra.mxu0 %v22777_v62  ;;  %16674 = vmatpush1.bf16.msra.mxu1 %v22778_v9  ;;  %v22785_v9 = vld [vmem:[#allocation102_spill] sm:$0xff]  ;;  %v22788_v62 = vld [vmem:[#allocation105_spill] sm:$0xff] }
 0x8fa   : > { %16484 = vmatprep.subr.bf16.mxu0 %v22779_v50  ;;  %16676 = vmatprep.subr.bf16.mxu1 %v22780_v5  ;;  %v22786_v50 = vld [vmem:[#allocation103_spill] sm:$0xff]  ;;  %v22787_v5 = vld [vmem:[#allocation104_spill] sm:$0xff] }
 0x8fc   : > { %9379 = vmatmul.mubr.f32.vlgmr.msra.gmra.mrb[10].mxu0 %v20781_v46  ;;  %10234 = vmatmul.mubr.f32.vlgmr.msra.gmra.mrb[10].mxu1 %v20781_v46 }
 0x8fd   : > { %16486 = vmatpush1.bf16.msra.mxu0 %v22781_v57  ;;  %16678 = vmatpush1.bf16.msra.mxu1 %v22782_v16  ;;  %v22790_v57 = vld [vmem:[#allocation108_spill] sm:$0xff]  ;;  %v22791_v16 = vld [vmem:[#allocation111_spill] sm:$0xff] }
 0x8fe   : > { %16488 = vmatprep.subr.bf16.mxu0 %v22783_v55  ;;  %16680 = vmatprep.subr.bf16.mxu1 %v22784_v39  ;;  %v22792_v55 = vld [vmem:[#allocation112_spill] sm:$0xff]  ;;  %v22793_v39 = vld [vmem:[#allocation113_spill] sm:$0xff] }
 0x8ff   : > { %9513 = vmatprep.mubr.f32.mxu0 %v22097_v1  ;;  %10368 = vmatprep.mubr.f32.mxu1 %v22097_v1 }
 0x901   : > { %16490 = vmatpush1.bf16.msra.mxu0 %v22785_v9  ;;  %16682 = vmatpush1.bf16.msra.mxu1 %v22786_v50  ;;  %v22796_v9 = vld [vmem:[#allocation125_spill] sm:$0xff]  ;;  %v22797_v50 = vld [vmem:[#allocation124_spill] sm:$0xff] }
 0x902   : > { %16492 = vmatprep.subr.bf16.mxu0 %v22787_v5  ;;  %16684 = vmatprep.subr.bf16.mxu1 %v22788_v62  ;;  %v22798_v5 = vld [vmem:[#allocation127_spill] sm:$0xff]  ;;  %v22799_v62 = vld [vmem:[#allocation126_spill] sm:$0xff] }
 0x905   : > { %16494 = vmatpush1.bf16.msra.mxu0 %v22789_v61  ;;  %16686 = vmatpush1.bf16.msra.mxu1 %v22790_v57  ;;  %v22800_v61 = vld [vmem:[#allocation129_spill] sm:$0xff]  ;;  %v22801_v57 = vld [vmem:[#allocation128_spill] sm:$0xff] }
 0x906   : > { %16496 = vmatprep.subr.bf16.mxu0 %v22791_v16  ;;  %16688 = vmatprep.subr.bf16.mxu1 %v22792_v55  ;;  %v22802_v16 = vld [vmem:[#allocation131_spill] sm:$0xff]  ;;  %v22803_v55 = vld [vmem:[#allocation130_spill] sm:$0xff] }
 0x909   : > { %16498 = vmatpush1.bf16.msra.mxu0 %v22793_v39  ;;  %16690 = vmatpush1.bf16.msra.mxu1 %v22794_v2  ;;  %v22804_v39 = vld [vmem:[#allocation133_spill] sm:$0xff]  ;;  %v22805_v2 = vld [vmem:[#allocation132_spill] sm:$0xff] }
 0x90a   : > { %16500 = vmatprep.subr.bf16.mxu0 %v22795_v11  ;;  %16692 = vmatprep.subr.bf16.mxu1 %v22796_v9  ;;  %v22806_v11 = vld [vmem:[#allocation135_spill] sm:$0xff]  ;;  %v22807_v9 = vld [vmem:[#allocation134_spill] sm:$0xff] }
 0x90d   : > { %16502 = vmatpush1.bf16.msra.mxu0 %v22797_v50  ;;  %16694 = vmatpush1.bf16.msra.mxu1 %v22798_v5  ;;  %v22808_v50 = vld [vmem:[#allocation137_spill] sm:$0xff]  ;;  %v22809_v5 = vld [vmem:[#allocation136_spill] sm:$0xff] }
 0x90e   : > { %16504 = vmatprep.subr.bf16.mxu0 %v22799_v62  ;;  %16696 = vmatprep.subr.bf16.mxu1 %v22800_v61  ;;  %v22810_v62 = vld [vmem:[#allocation110_spill] sm:$0xff]  ;;  %v22822_v61 = vld [vmem:[#allocation11_spill] sm:$0xff] }
 0x911   : > { %16506 = vmatpush1.bf16.msra.mxu0 %v22801_v57  ;;  %16698 = vmatpush1.bf16.msra.mxu1 %v22802_v16  ;;  %v22820_v16 = vld [vmem:[#allocation64_spill] sm:$0xff]  ;;  %v22821_v57 = vld [vmem:[#allocation14_spill] sm:$0xff] }
 0x912   : > { %16508 = vmatprep.subr.bf16.mxu0 %v22803_v55  ;;  %16700 = vmatprep.subr.bf16.mxu1 %v22804_v39  ;;  %v22818_v39 = vld [vmem:[#allocation10_spill] sm:$0xff]  ;;  %v22819_v55 = vld [vmem:[#allocation12_spill] sm:$0xff] }
 0x915   : > { %16510 = vmatpush1.bf16.msra.mxu0 %v22805_v2  ;;  %16702 = vmatpush1.bf16.msra.mxu1 %v22806_v11  ;;  %v22816_v11 = vld [vmem:[#allocation59_spill] sm:$0xff]  ;;  %v22817_v2 = vld [vmem:[#allocation61_spill] sm:$0xff] }
 0x916   : > { %16512 = vmatprep.subr.bf16.mxu0 %v22807_v9  ;;  %16704 = vmatprep.subr.bf16.mxu1 %v22808_v50  ;;  %v22814_v50 = vld [vmem:[#allocation57_spill] sm:$0xff]  ;;  %v22815_v9 = vld [vmem:[#allocation58_spill] sm:$0xff] }
 0x919   : > { %16514 = vmatpush1.bf16.msra.mxu0 %v22809_v5  ;;  %16706 = vmatpush1.bf16.msra.mxu1 %v22810_v62  ;;  %v22812_v62 = vld [vmem:[#allocation55_spill] sm:$0xff]  ;;  %v22813_v5 = vld [vmem:[#allocation56_spill] sm:$0xff] }
 0x91a   : > { %16516 = vmatprep.subr.bf16.mxu0 %v22345_v21  ;;  %16708 = vmatprep.subr.bf16.mxu1 %v22348_v23 }
 0x91c   : > { %9516 = vmatmul.mubr.f32.vlgmr.msra.gmra.mrb[10].mxu0 %v20784_v54  ;;  %10371 = vmatmul.mubr.f32.vlgmr.msra.gmra.mrb[10].mxu1 %v20784_v54  ;;  %v22811_v54 = vld [vmem:[#allocation54_spill] sm:$0xff] }
 0x91d   : > { %16518 = vmatpush1.bf16.msra.mxu0 %v22347_v29  ;;  %16710 = vmatpush1.bf16.msra.mxu1 %v22350_v49 }
 0x91e   : > { %16520 = vmatprep.subr.bf16.mxu0 %v22349_v3  ;;  %16712 = vmatprep.subr.bf16.mxu1 %v22352_v24 }
 0x91f   : > { %9618 = vmatprep.mubr.f32.mxu0 %v22097_v1  ;;  %10473 = vmatprep.mubr.f32.mxu1 %v22097_v1 }
 0x921   : > { %16522 = vmatpush1.bf16.msra.mxu0 %v22351_v10  ;;  %16714 = vmatpush1.bf16.msra.mxu1 %v22354_v44 }
 0x922   : > { %16524 = vmatprep.subr.bf16.mxu0 %v22353_v30  ;;  %16716 = vmatprep.subr.bf16.mxu1 %v22356_v37 }
 0x925   : > { %16526 = vmatpush1.bf16.msra.mxu0 %v22355_v13  ;;  %16718 = vmatpush1.bf16.msra.mxu1 %v22358_v36 }
 0x926   : > { %16528 = vmatprep.subr.bf16.mxu0 %v22357_v56  ;;  %16720 = vmatprep.subr.bf16.mxu1 %v22360_v51 }
 0x929   : > { %16530 = vmatpush1.bf16.msra.mxu0 %v22359_v33  ;;  %16722 = vmatpush1.bf16.msra.mxu1 %v22362_v63 }
 0x92a   : > { %16532 = vmatprep.subr.bf16.mxu0 %v22361_v42  ;;  %16724 = vmatprep.subr.bf16.mxu1 %v22364_v43 }
 0x92d   : > { %16534 = vmatpush1.bf16.msra.mxu0 %v22363_v52  ;;  %16726 = vmatpush1.bf16.msra.mxu1 %v22366_v17 }
 0x92e   : > { %16536 = vmatprep.subr.bf16.mxu0 %v22365_v26  ;;  %16728 = vmatprep.subr.bf16.mxu1 %v22368_v4 }
 0x931   : > { %16538 = vmatpush1.bf16.msra.mxu0 %v22367_v28  ;;  %16730 = vmatpush1.bf16.msra.mxu1 %v22370_v58 }
 0x932   : > { %16540 = vmatprep.subr.bf16.mxu0 %v22369_v15  ;;  %16732 = vmatprep.subr.bf16.mxu1 %v22811_v54 }
 0x935   : > { %16542 = vmatpush1.bf16.msra.mxu0 %v22812_v62  ;;  %16734 = vmatpush1.bf16.msra.mxu1 %v22813_v5 }
 0x936   : > { %16544 = vmatprep.subr.bf16.mxu0 %v22814_v50  ;;  %16736 = vmatprep.subr.bf16.mxu1 %v22815_v9 }
 0x939   : > { %16546 = vmatpush1.bf16.msra.mxu0 %v22816_v11  ;;  %16738 = vmatpush1.bf16.msra.mxu1 %v22817_v2 }
 0x93a   : > { %16548 = vmatprep.subr.bf16.mxu0 %v22818_v39  ;;  %16740 = vmatprep.subr.bf16.mxu1 %v22819_v55  ;;  %v22825_v39 = vld [vmem:[#allocation15_spill] sm:$0xff] }
 0x93b   : > { %v22826_v55 = vld [vmem:[#allocation115_spill] sm:$0xff] }
 0x93c   : > { %9622 = vmatmul.mubr.f32.vlgmr.msra.gmra.mrb[10].mxu0 %v20787_v19  ;;  %10477 = vmatmul.mubr.f32.vlgmr.msra.gmra.mrb[10].mxu1 %v20787_v19  ;;  %v22828_v19 = vld [vmem:[#allocation117_spill] sm:$0xff] }
 0x93d   : > { %16550 = vmatpush1.bf16.msra.mxu0 %v22820_v16  ;;  %16742 = vmatpush1.bf16.msra.mxu1 %v22821_v57  ;;  %v22829_v16 = vld [vmem:[#allocation118_spill] sm:$0xff]  ;;  %v22830_v57 = vld [vmem:[#allocation119_spill] sm:$0xff] }
 0x93e   : > { %16552 = vmatprep.subr.bf16.mxu0 %v22822_v61  ;;  %16744 = vmatprep.subr.bf16.mxu1 %v22823_v14  ;;  %v22831_v61 = vld [vmem:[#allocation120_spill] sm:$0xff]  ;;  %v22832_v14 = vld [vmem:[#allocation121_spill] sm:$0xff] }
 0x93f   : > { %9788 = vmatprep.mubr.f32.mxu0 %v22097_v1  ;;  %10643 = vmatprep.mubr.f32.mxu1 %v22097_v1 }
 0x941   : > { %16554 = vmatpush1.bf16.msra.mxu0 %v22824_v12  ;;  %16746 = vmatpush1.bf16.msra.mxu1 %v22825_v39  ;;  %v22835_v12 = vld [vmem:[#allocation86_spill] sm:$0xff] }
 0x942   : > { %16556 = vmatprep.subr.bf16.mxu0 %v22826_v55  ;;  %16748 = vmatprep.subr.bf16.mxu1 %v22827_v34  ;;  %v22836_v39 = vld [vmem:[#allocation22_spill] sm:$0xff]  ;;  %v22837_v55 = vld [vmem:[#allocation24_spill] sm:$0xff]  ;;  %v22838_v34 = vld [vmem:[#allocation25_spill] sm:$0xff] }
 0x945   : > { %16558 = vmatpush1.bf16.msra.mxu0 %v22828_v19  ;;  %16750 = vmatpush1.bf16.msra.mxu1 %v22829_v16  ;;  %v22839_v19 = vld [vmem:[#allocation26_spill] sm:$0xff]  ;;  %v22840_v16 = vld [vmem:[#allocation29_spill] sm:$0xff] }
 0x946   : > { %16560 = vmatprep.subr.bf16.mxu0 %v22830_v57  ;;  %16752 = vmatprep.subr.bf16.mxu1 %v22831_v61  ;;  %v22841_v57 = vld [vmem:[#allocation30_spill] sm:$0xff]  ;;  %v22842_v61 = vld [vmem:[#allocation31_spill] sm:$0xff] }
 0x949   : > { %16562 = vmatpush1.bf16.msra.mxu0 %v22832_v14  ;;  %16754 = vmatpush1.bf16.msra.mxu1 %v22833_v22  ;;  %v22843_v14 = vld [vmem:[#allocation33_spill] sm:$0xff]  ;;  %v22844_v22 = vld [vmem:[#allocation35_spill] sm:$0xff] }
 0x94a   : > { %16564 = vmatprep.subr.bf16.mxu0 %v22834_v0  ;;  %16756 = vmatprep.subr.bf16.mxu1 %v22835_v12  ;;  %v22845_v0 = vld [vmem:[#allocation37_spill] sm:$0xff]  ;;  %v22846_v12 = vld [vmem:[#allocation43_spill] sm:$0xff] }
 0x94d   : > { %16566 = vmatpush1.bf16.msra.mxu0 %v22836_v39  ;;  %16758 = vmatpush1.bf16.msra.mxu1 %v22837_v55  ;;  %v22847_v39 = vld [vmem:[#allocation91_spill] sm:$0xff]  ;;  %v22848_v55 = vld [vmem:[#allocation46_spill] sm:$0xff] }
 0x94e   : > { %16568 = vmatprep.subr.bf16.mxu0 %v22838_v34  ;;  %16760 = vmatprep.subr.bf16.mxu1 %v22839_v19  ;;  %v22849_v34 = vld [vmem:[#allocation94_spill] sm:$0xff] }
 0x951   : > { %16570 = vmatpush1.bf16.msra.mxu0 %v22840_v16  ;;  %16762 = vmatpush1.bf16.msra.mxu1 %v22841_v57 }
 0x952   : > { %16572 = vmatprep.subr.bf16.mxu0 %v22842_v61  ;;  %16764 = vmatprep.subr.bf16.mxu1 %v22843_v14 }
 0x955   : > { %16574 = vmatpush1.bf16.msra.mxu0 %v22844_v22  ;;  %16766 = vmatpush1.bf16.msra.mxu1 %v22845_v0 }
 0x956   : > { %16576 = vmatprep.subr.bf16.mxu0 %v22846_v12  ;;  %16768 = vmatprep.subr.bf16.mxu1 %v22847_v39  ;;  %v14468_v39 = vld [vmem:[%s18037_s25 + $0xa8] sm:$0xff] }
 0x959   : > { %16578 = vmatpush1.bf16.msra.mxu0 %v22848_v55  ;;  %16770 = vmatpush1.bf16.msra.mxu1 %v22849_v34  ;;  %v22851_v34 = vld [vmem:[#allocation67_spill] sm:$0xff]  ;;  %v14467_v55 = vld [vmem:[%s18037_s25 + $0xa0] sm:$0xff] }
 0x95a   : > { %16580 = vmatprep.subr.bf16.mxu0 %v22345_v21  ;;  %16772 = vmatprep.subr.bf16.mxu1 %v22348_v23 }
 0x95c   : > { %9790 = vmatmul.mubr.f32.vlgmr.msra.gmra.mrb[10].mxu0 %v20781_v46  ;;  %10645 = vmatmul.mubr.f32.vlgmr.msra.gmra.mrb[10].mxu1 %v20781_v46 }
 0x95d   : > { %16582 = vmatpush1.bf16.msra.mxu0 %v22347_v29  ;;  %16774 = vmatpush1.bf16.msra.mxu1 %v22350_v49 }
 0x95e   : > { %16584 = vmatprep.subr.bf16.mxu0 %v22349_v3  ;;  %16776 = vmatprep.subr.bf16.mxu1 %v22352_v24 }
 0x95f   : > { %9892 = vmatprep.mubr.f32.mxu0 %v22097_v1  ;;  %10747 = vmatprep.mubr.f32.mxu1 %v22097_v1 }
 0x961   : > { %16586 = vmatpush1.bf16.msra.mxu0 %v22351_v10  ;;  %16778 = vmatpush1.bf16.msra.mxu1 %v22354_v44 }
 0x962   : > { %16588 = vmatprep.subr.bf16.mxu0 %v22353_v30  ;;  %16780 = vmatprep.subr.bf16.mxu1 %v22356_v37 }
 0x965   : > { %16590 = vmatpush1.bf16.msra.mxu0 %v22355_v13  ;;  %16782 = vmatpush1.bf16.msra.mxu1 %v22358_v36 }
 0x966   : > { %16592 = vmatprep.subr.bf16.mxu0 %v22357_v56  ;;  %16784 = vmatprep.subr.bf16.mxu1 %v22360_v51 }
 0x969   : > { %16594 = vmatpush1.bf16.msra.mxu0 %v22359_v33  ;;  %16786 = vmatpush1.bf16.msra.mxu1 %v22362_v63 }
 0x96a   : > { %16596 = vmatprep.subr.bf16.mxu0 %v22361_v42  ;;  %16788 = vmatprep.subr.bf16.mxu1 %v22364_v43 }
 0x96d   : > { %16598 = vmatpush1.bf16.msra.mxu0 %v22363_v52  ;;  %16790 = vmatpush1.bf16.msra.mxu1 %v22366_v17 }
 0x96e   : > { %16600 = vmatprep.subr.bf16.mxu0 %v22365_v26  ;;  %16792 = vmatprep.subr.bf16.mxu1 %v22368_v4 }
 0x971   : > { %16602 = vmatpush1.bf16.msra.mxu0 %v22367_v28  ;;  %16794 = vmatpush1.bf16.msra.mxu1 %v22370_v58 }
 0x972   : > { %16604 = vmatprep.subr.bf16.mxu0 %v22369_v15  ;;  %16796 = vmatprep.subr.bf16.mxu1 %v22811_v54 }
 0x975   : > { %16606 = vmatpush1.bf16.msra.mxu0 %v22812_v62  ;;  %16798 = vmatpush1.bf16.msra.mxu1 %v22813_v5 }
 0x976   : > { %16608 = vmatprep.subr.bf16.mxu0 %v22814_v50  ;;  %16800 = vmatprep.subr.bf16.mxu1 %v22815_v9 }
 0x979   : > { %16610 = vmatpush1.bf16.msra.mxu0 %v22816_v11  ;;  %16802 = vmatpush1.bf16.msra.mxu1 %v22817_v2 }
 0x97a   : > { %16804 = vmatprep.subr.bf16.mxu0 %v22345_v21  ;;  %16996 = vmatprep.subr.bf16.mxu1 %v22348_v23 }
 0x97c   : > { %9894 = vmatmul.mubr.f32.vlgmr.msra.gmra.mrb[10].mxu0 %v20781_v46  ;;  %10749 = vmatmul.mubr.f32.vlgmr.msra.gmra.mrb[10].mxu1 %v20781_v46  ;;  %v22850_v46 = vld [vmem:[#allocation66_spill] sm:$0xff] }
 0x97d   : > { %16806 = vmatpush1.bf16.msra.mxu0 %v22347_v29  ;;  %16998 = vmatpush1.bf16.msra.mxu1 %v22350_v49 }
 0x97e   : > { %16808 = vmatprep.subr.bf16.mxu0 %v22349_v3  ;;  %17000 = vmatprep.subr.bf16.mxu1 %v22352_v24 }
 0x97f   : > { %10886 = vmatprep.mubr.f32.mxu0 %v22097_v1  ;;  %11741 = vmatprep.mubr.f32.mxu1 %v22097_v1 }
 0x981   : > { %16810 = vmatpush1.bf16.msra.mxu0 %v22351_v10  ;;  %17002 = vmatpush1.bf16.msra.mxu1 %v22354_v44 }
 0x982   : > { %16812 = vmatprep.subr.bf16.mxu0 %v22353_v30  ;;  %17004 = vmatprep.subr.bf16.mxu1 %v22356_v37 }
 0x985   : > { %16814 = vmatpush1.bf16.msra.mxu0 %v22355_v13  ;;  %17006 = vmatpush1.bf16.msra.mxu1 %v22358_v36 }
 0x986   : > { %16816 = vmatprep.subr.bf16.mxu0 %v22357_v56  ;;  %17008 = vmatprep.subr.bf16.mxu1 %v22360_v51 }
 0x989   : > { %16818 = vmatpush1.bf16.msra.mxu0 %v22359_v33  ;;  %17010 = vmatpush1.bf16.msra.mxu1 %v22362_v63 }
 0x98a   : > { %16820 = vmatprep.subr.bf16.mxu0 %v22361_v42  ;;  %17012 = vmatprep.subr.bf16.mxu1 %v22364_v43 }
 0x98d   : > { %16822 = vmatpush1.bf16.msra.mxu0 %v22363_v52  ;;  %17014 = vmatpush1.bf16.msra.mxu1 %v22366_v17 }
 0x98e   : > { %16824 = vmatprep.subr.bf16.mxu0 %v22365_v26  ;;  %17016 = vmatprep.subr.bf16.mxu1 %v22368_v4 }
 0x991   : > { %16826 = vmatpush1.bf16.msra.mxu0 %v22367_v28  ;;  %17018 = vmatpush1.bf16.msra.mxu1 %v22370_v58 }
 0x992   : > { %16828 = vmatprep.subr.bf16.mxu0 %v22369_v15  ;;  %17020 = vmatprep.subr.bf16.mxu1 %v22811_v54 }
 0x995   : > { %16830 = vmatpush1.bf16.msra.mxu0 %v22812_v62  ;;  %17022 = vmatpush1.bf16.msra.mxu1 %v22813_v5 }
 0x996   : > { %16832 = vmatprep.subr.bf16.mxu0 %v22814_v50  ;;  %17024 = vmatprep.subr.bf16.mxu1 %v22815_v9  ;;  %v14470_v9 = vld [vmem:[%s18037_s25 + $0xb8] sm:$0xff] }
 0x999   : > { %16834 = vmatpush1.bf16.msra.mxu0 %v22816_v11  ;;  %17026 = vmatpush1.bf16.msra.mxu1 %v22817_v2  ;;  %v14469_v2 = vld [vmem:[%s18037_s25 + $0xb0] sm:$0xff] }
 0x99a   : > { %16836 = vmatprep.subr.bf16.mxu0 %v22850_v46  ;;  %17028 = vmatprep.subr.bf16.mxu1 %v22851_v34 }
 0xa4f   : > { %v9895_v12 = vpop.f32.mrb[10].mxu0  ;;  %v10750_v0 = vpop.f32.mrb[10].mxu1 }
 0xa50   : > { %v10755_v22 = vadd.f32 %v14467_v55, %v9895_v12  ;;  %v9897_v14 = vpop.f32.mrb[11].mxu0  ;;  %v10752_v61 = vpop.f32.mrb[11].mxu1  ;;  %v10757_v46 = vadd.f32 %v14469_v2, %v10750_v0 }
 0xa51   : > { %v10756_v57 = vadd.f32 %v14468_v39, %v9897_v14  ;;  %v10758_v11 = vadd.f32 %v14470_v9, %v10752_v61 }
 0xa52   : > { %v14471_v16 = vmul.f32 -1.442695, %v10755_v22 }
 0xa53   : > { %v14472_v19 = vmul.f32 -1.442695, %v10756_v57  ;;  %v14473_v50 = vmul.f32 -1.442695, %v10758_v11 }
 0xa54   : > { %17851 = vpow2.f32 %v14471_v16  ;;  %v22852_v16 = vld [vmem:[#allocation39_spill] sm:$0xff] }
 0xa55   : > { %17853 = vpow2.f32 %v14472_v19  ;;  %v22854_v19 = vld [vmem:[#allocation45_spill] sm:$0xff] }
 0xa56   : > { %17855 = vpow2.f32 %v14473_v50 }
 0xa57   : > { %17857 = vtanh.f32 %v10757_v46  ;;  %v22855_v46 = vld [vmem:[#allocation92_spill] sm:$0xff] }
 0xa5e   : > { %v17852_v5 = vpop.eup %17851 }
 0xa5f   : > { %v17854_v62 = vpop.eup %17853  ;;  %v10762_v34 = vadd.f32 1.0, %v17852_v5 }
 0xa60   : > { %v10768_v54 = vadd.f32 1.0, %v17854_v62  ;;  %v17856_v12 = vpop.eup %17855 }
 0xa61   : > { %17859 = vrcp.f32 %v10762_v34  ;;  %v17858_v14 = vpop.eup %17857  ;;  %v10775_v57 = vadd.f32 1.0, %v17856_v12  ;;  %v22856_v12 = vld [vmem:[#allocation93_spill] sm:$0xff] }
 0xa62   : > { %17861 = vrcp.f32 %v10768_v54  ;;  %v22853_v54 = vld [vmem:[#allocation42_spill] sm:$0xff] }
 0xa63   : > { %17863 = vrcp.f32 %v10775_v57  ;;  %v22861_v57 = vld [vmem:[#allocation97_spill] sm:$0xff] }
 0xa6b   : > { %v17860_v22 = vpop.eup %17859 }
 0xa6c   : > { %v17862_v55 = vpop.eup %17861  ;;  %v10779_v39 = vmul.f32 %v17860_v22, %v17858_v14  ;;  %v22857_v14 = vld [vmem:[#allocation48_spill] sm:$0xff]  ;;  %v22858_v22 = vld [vmem:[#allocation95_spill] sm:$0xff] }
 0xa6d   : > { %v10778_v61 = vmul.f32 %v17862_v55, %v20777_v60  ;;  %v17864_v0 = vpop.eup %17863  ;;  %v22859_v55 = vld [vmem:[#allocation52_spill] sm:$0xff] }
 0xa6f   : > { %v21010_v9 = vadd.f32 %v10779_v39, %v10778_v61  ;;  %v22860_v39 = vld [vmem:[#allocation96_spill] sm:$0xff] }
 0xa70   : > { %v22862_v61 = vld [vmem:[#allocation100_spill] sm:$0xff] }
 0xa71   : > { %17865 = vtanh.f32 %v21010_v9 }
 0xa7b   : > { %v17866_v11 = vpop.eup %17865 }
 0xa7c   : > { %v10782_v2 = vmul.f32 %v17866_v11, %v17864_v0  ;;  %v22863_v0 = vld [vmem:[#allocation62_spill] sm:$0xff] }
 0xa7d   : > { %v22864_v11 = vld [vmem:[#allocation98_spill] sm:$0xff] }
 0xa7e   : > { %14474 = vst [vmem:[%s18042_s28 + $0x28] sm:$0xff] %v10782_v2  ;;  %v21014_v62 = vand.u32 4294901760, %v10782_v2 }
 0xa80   : > { %v21017_v34 = vsub.f32 %v10782_v2, %v21014_v62  ;;  %v22865_v2 = vld [vmem:[#allocation60_spill] sm:$0xff] }
 0xa82   : > { %v21020_v50 = vand.u32 4294901760, %v21017_v34 }
 0xa84   : > { %v10890_v60 = vsub.f32 %v21017_v34, %v21020_v50 }
 0xa86   : > { %v10891_v5 = vand.u32 4294901760, %v10890_v60  ;;  %v22866_v60 = vld [vmem:[#allocation107_spill] sm:$0xff] }
 0xa88   : > { %10892 = vmatmul.mubr.f32.vlgmr.msra.gmra.mrb[12].mxu0 %v10891_v5  ;;  %11747 = vmatmul.mubr.f32.vlgmr.msra.gmra.mrb[12].mxu1 %v10891_v5  ;;  %v22867_v5 = vld [vmem:[#allocation109_spill] sm:$0xff] }
 0xa89   : > { %16838 = vmatpush1.bf16.msra.mxu0 %v22428_v53  ;;  %17030 = vmatpush1.bf16.msra.mxu1 %v22429_v20 }
 0xa8a   : > { %16840 = vmatprep.subr.bf16.mxu0 %v22430_v59  ;;  %17032 = vmatprep.subr.bf16.mxu1 %v22431_v38 }
 0xa8b   : > { %11122 = vmatprep.mubr.f32.mxu0 %v22097_v1  ;;  %11977 = vmatprep.mubr.f32.mxu1 %v22097_v1 }
 0xa8d   : > { %16842 = vmatpush1.bf16.msra.mxu0 %v22512_v8  ;;  %17034 = vmatpush1.bf16.msra.mxu1 %v22513_v31 }
 0xa8e   : > { %16844 = vmatprep.subr.bf16.mxu0 %v22514_v35  ;;  %17036 = vmatprep.subr.bf16.mxu1 %v22515_v7 }
 0xa91   : > { %16846 = vmatpush1.bf16.msra.mxu0 %v22516_v48  ;;  %17038 = vmatpush1.bf16.msra.mxu1 %v22597_v40 }
 0xa92   : > { %16848 = vmatprep.subr.bf16.mxu0 %v22518_v25  ;;  %17040 = vmatprep.subr.bf16.mxu1 %v22519_v27 }
 0xa95   : > { %16850 = vmatpush1.bf16.msra.mxu0 %v22598_v18  ;;  %17042 = vmatpush1.bf16.msra.mxu1 %v22599_v6 }
 0xa96   : > { %16852 = vmatprep.subr.bf16.mxu0 %v22600_v41  ;;  %17044 = vmatprep.subr.bf16.mxu1 %v22601_v32 }
 0xa99   : > { %16854 = vmatpush1.bf16.msra.mxu0 %v22602_v47  ;;  %17046 = vmatpush1.bf16.msra.mxu1 %v22603_v45 }
 0xa9a   : > { %16856 = vmatprep.subr.bf16.mxu0 %v22852_v16  ;;  %17048 = vmatprep.subr.bf16.mxu1 %v22853_v54  ;;  %v22918_v54 = vld [vmem:[#allocation83_spill] sm:$0xff]  ;;  %v22919_v16 = vld [vmem:[#allocation122_spill] sm:$0xff] }
 0xa9d   : > { %16858 = vmatpush1.bf16.msra.mxu0 %v22854_v19  ;;  %17050 = vmatpush1.bf16.msra.mxu1 %v22855_v46  ;;  %v22909_v46 = vld [vmem:[#allocation13_spill] sm:$0xff]  ;;  %v22912_v19 = vld [vmem:[#allocation116_spill] sm:$0xff] }
 0xa9e   : > { %16860 = vmatprep.subr.bf16.mxu0 %v22856_v12  ;;  %17052 = vmatprep.subr.bf16.mxu1 %v22857_v14  ;;  %v22880_v14 = vld [vmem:[#allocation114_spill] sm:$0xff]  ;;  %v22908_v12 = vld [vmem:[#allocation16_spill] sm:$0xff] }
 0xaa1   : > { %16862 = vmatpush1.bf16.msra.mxu0 %v22858_v22  ;;  %17054 = vmatpush1.bf16.msra.mxu1 %v22859_v55  ;;  %v22868_v55 = vld [vmem:[#allocation99_spill] sm:$0xff] }
 0xaa2   : > { %16864 = vmatprep.subr.bf16.mxu0 %v22860_v39  ;;  %17056 = vmatprep.subr.bf16.mxu1 %v22861_v57  ;;  %v22869_v39 = vld [vmem:[#allocation101_spill] sm:$0xff]  ;;  %v22874_v57 = vld [vmem:[#allocation106_spill] sm:$0xff]  ;;  %v22879_v22 = vld [vmem:[#allocation123_spill] sm:$0xff] }
 0xaa5   : > { %16866 = vmatpush1.bf16.msra.mxu0 %v22862_v61  ;;  %17058 = vmatpush1.bf16.msra.mxu1 %v22863_v0  ;;  %v22870_v0 = vld [vmem:[#allocation102_spill] sm:$0xff]  ;;  %v22873_v61 = vld [vmem:[#allocation105_spill] sm:$0xff] }
 0xaa6   : > { %16868 = vmatprep.subr.bf16.mxu0 %v22864_v11  ;;  %17060 = vmatprep.subr.bf16.mxu1 %v22865_v2  ;;  %v22871_v11 = vld [vmem:[#allocation103_spill] sm:$0xff]  ;;  %v22872_v2 = vld [vmem:[#allocation104_spill] sm:$0xff] }
 0xaa8   : > { %11124 = vmatmul.mubr.f32.vlgmr.msra.gmra.mrb[12].mxu0 %v21014_v62  ;;  %11979 = vmatmul.mubr.f32.vlgmr.msra.gmra.mrb[12].mxu1 %v21014_v62 }
 0xaa9   : > { %16870 = vmatpush1.bf16.msra.mxu0 %v22866_v60  ;;  %17062 = vmatpush1.bf16.msra.mxu1 %v22867_v5  ;;  %v22875_v60 = vld [vmem:[#allocation108_spill] sm:$0xff]  ;;  %v22876_v5 = vld [vmem:[#allocation111_spill] sm:$0xff] }
 0xaaa   : > { %16872 = vmatprep.subr.bf16.mxu0 %v22868_v55  ;;  %17064 = vmatprep.subr.bf16.mxu1 %v22869_v39  ;;  %v22877_v55 = vld [vmem:[#allocation112_spill] sm:$0xff]  ;;  %v22878_v39 = vld [vmem:[#allocation113_spill] sm:$0xff] }
 0xaab   : > { %11258 = vmatprep.mubr.f32.mxu0 %v22097_v1  ;;  %12113 = vmatprep.mubr.f32.mxu1 %v22097_v1 }
 0xaad   : > { %16874 = vmatpush1.bf16.msra.mxu0 %v22870_v0  ;;  %17066 = vmatpush1.bf16.msra.mxu1 %v22871_v11  ;;  %v22881_v0 = vld [vmem:[#allocation125_spill] sm:$0xff]  ;;  %v22882_v11 = vld [vmem:[#allocation124_spill] sm:$0xff] }
 0xaae   : > { %16876 = vmatprep.subr.bf16.mxu0 %v22872_v2  ;;  %17068 = vmatprep.subr.bf16.mxu1 %v22873_v61  ;;  %v22883_v2 = vld [vmem:[#allocation127_spill] sm:$0xff]  ;;  %v22884_v61 = vld [vmem:[#allocation126_spill] sm:$0xff] }
 0xab1   : > { %16878 = vmatpush1.bf16.msra.mxu0 %v22874_v57  ;;  %17070 = vmatpush1.bf16.msra.mxu1 %v22875_v60  ;;  %v22885_v57 = vld [vmem:[#allocation129_spill] sm:$0xff]  ;;  %v22886_v60 = vld [vmem:[#allocation128_spill] sm:$0xff] }
 0xab2   : > { %16880 = vmatprep.subr.bf16.mxu0 %v22876_v5  ;;  %17072 = vmatprep.subr.bf16.mxu1 %v22877_v55  ;;  %v22887_v5 = vld [vmem:[#allocation131_spill] sm:$0xff]  ;;  %v22888_v55 = vld [vmem:[#allocation130_spill] sm:$0xff] }
 0xab5   : > { %16882 = vmatpush1.bf16.msra.mxu0 %v22878_v39  ;;  %17074 = vmatpush1.bf16.msra.mxu1 %v22879_v22  ;;  %v22889_v39 = vld [vmem:[#allocation133_spill] sm:$0xff]  ;;  %v22890_v22 = vld [vmem:[#allocation132_spill] sm:$0xff] }
 0xab6   : > { %16884 = vmatprep.subr.bf16.mxu0 %v22880_v14  ;;  %17076 = vmatprep.subr.bf16.mxu1 %v22881_v0  ;;  %v22891_v14 = vld [vmem:[#allocation135_spill] sm:$0xff]  ;;  %v22892_v0 = vld [vmem:[#allocation134_spill] sm:$0xff] }
 0xab9   : > { %16886 = vmatpush1.bf16.msra.mxu0 %v22882_v11  ;;  %17078 = vmatpush1.bf16.msra.mxu1 %v22883_v2  ;;  %v22893_v11 = vld [vmem:[#allocation137_spill] sm:$0xff]  ;;  %v22894_v2 = vld [vmem:[#allocation136_spill] sm:$0xff] }
 0xaba   : > { %16888 = vmatprep.subr.bf16.mxu0 %v22884_v61  ;;  %17080 = vmatprep.subr.bf16.mxu1 %v22885_v57  ;;  %v22895_v61 = vld [vmem:[#allocation110_spill] sm:$0xff]  ;;  %v22907_v57 = vld [vmem:[#allocation11_spill] sm:$0xff] }
 0xabd   : > { %16890 = vmatpush1.bf16.msra.mxu0 %v22886_v60  ;;  %17082 = vmatpush1.bf16.msra.mxu1 %v22887_v5  ;;  %v22905_v5 = vld [vmem:[#allocation64_spill] sm:$0xff]  ;;  %v22906_v60 = vld [vmem:[#allocation14_spill] sm:$0xff] }
 0xabe   : > { %16892 = vmatprep.subr.bf16.mxu0 %v22888_v55  ;;  %17084 = vmatprep.subr.bf16.mxu1 %v22889_v39  ;;  %v22903_v39 = vld [vmem:[#allocation10_spill] sm:$0xff]  ;;  %v22904_v55 = vld [vmem:[#allocation12_spill] sm:$0xff] }
 0xac1   : > { %16894 = vmatpush1.bf16.msra.mxu0 %v22890_v22  ;;  %17086 = vmatpush1.bf16.msra.mxu1 %v22891_v14  ;;  %v22901_v14 = vld [vmem:[#allocation59_spill] sm:$0xff]  ;;  %v22902_v22 = vld [vmem:[#allocation61_spill] sm:$0xff] }
 0xac2   : > { %16896 = vmatprep.subr.bf16.mxu0 %v22892_v0  ;;  %17088 = vmatprep.subr.bf16.mxu1 %v22893_v11  ;;  %v22899_v11 = vld [vmem:[#allocation57_spill] sm:$0xff]  ;;  %v22900_v0 = vld [vmem:[#allocation58_spill] sm:$0xff] }
 0xac5   : > { %16898 = vmatpush1.bf16.msra.mxu0 %v22894_v2  ;;  %17090 = vmatpush1.bf16.msra.mxu1 %v22895_v61  ;;  %v22897_v61 = vld [vmem:[#allocation55_spill] sm:$0xff]  ;;  %v22898_v2 = vld [vmem:[#allocation56_spill] sm:$0xff] }
 0xac6   : > { %16900 = vmatprep.subr.bf16.mxu0 %v22345_v21  ;;  %17092 = vmatprep.subr.bf16.mxu1 %v22348_v23 }
 0xac8   : > { %11261 = vmatmul.mubr.f32.vlgmr.msra.gmra.mrb[12].mxu0 %v21017_v34  ;;  %12116 = vmatmul.mubr.f32.vlgmr.msra.gmra.mrb[12].mxu1 %v21017_v34  ;;  %v22896_v34 = vld [vmem:[#allocation54_spill] sm:$0xff] }
 0xac9   : > { %16902 = vmatpush1.bf16.msra.mxu0 %v22347_v29  ;;  %17094 = vmatpush1.bf16.msra.mxu1 %v22350_v49 }
 0xaca   : > { %16904 = vmatprep.subr.bf16.mxu0 %v22349_v3  ;;  %17096 = vmatprep.subr.bf16.mxu1 %v22352_v24 }
 0xacb   : > { %11363 = vmatprep.mubr.f32.mxu0 %v22097_v1  ;;  %12218 = vmatprep.mubr.f32.mxu1 %v22097_v1 }
 0xacd   : > { %16906 = vmatpush1.bf16.msra.mxu0 %v22351_v10  ;;  %17098 = vmatpush1.bf16.msra.mxu1 %v22354_v44 }
 0xace   : > { %16908 = vmatprep.subr.bf16.mxu0 %v22353_v30  ;;  %17100 = vmatprep.subr.bf16.mxu1 %v22356_v37 }
 0xad1   : > { %16910 = vmatpush1.bf16.msra.mxu0 %v22355_v13  ;;  %17102 = vmatpush1.bf16.msra.mxu1 %v22358_v36 }
 0xad2   : > { %16912 = vmatprep.subr.bf16.mxu0 %v22357_v56  ;;  %17104 = vmatprep.subr.bf16.mxu1 %v22360_v51 }
 0xad5   : > { %16914 = vmatpush1.bf16.msra.mxu0 %v22359_v33  ;;  %17106 = vmatpush1.bf16.msra.mxu1 %v22362_v63 }
 0xad6   : > { %16916 = vmatprep.subr.bf16.mxu0 %v22361_v42  ;;  %17108 = vmatprep.subr.bf16.mxu1 %v22364_v43 }
 0xad9   : > { %16918 = vmatpush1.bf16.msra.mxu0 %v22363_v52  ;;  %17110 = vmatpush1.bf16.msra.mxu1 %v22366_v17 }
 0xada   : > { %16920 = vmatprep.subr.bf16.mxu0 %v22365_v26  ;;  %17112 = vmatprep.subr.bf16.mxu1 %v22368_v4 }
 0xadd   : > { %16922 = vmatpush1.bf16.msra.mxu0 %v22367_v28  ;;  %17114 = vmatpush1.bf16.msra.mxu1 %v22370_v58 }
 0xade   : > { %16924 = vmatprep.subr.bf16.mxu0 %v22369_v15  ;;  %17116 = vmatprep.subr.bf16.mxu1 %v22896_v34 }
 0xae1   : > { %16926 = vmatpush1.bf16.msra.mxu0 %v22897_v61  ;;  %17118 = vmatpush1.bf16.msra.mxu1 %v22898_v2 }
 0xae2   : > { %16928 = vmatprep.subr.bf16.mxu0 %v22899_v11  ;;  %17120 = vmatprep.subr.bf16.mxu1 %v22900_v0 }
 0xae5   : > { %16930 = vmatpush1.bf16.msra.mxu0 %v22901_v14  ;;  %17122 = vmatpush1.bf16.msra.mxu1 %v22902_v22 }
 0xae6   : > { %16932 = vmatprep.subr.bf16.mxu0 %v22903_v39  ;;  %17124 = vmatprep.subr.bf16.mxu1 %v22904_v55  ;;  %v22910_v39 = vld [vmem:[#allocation15_spill] sm:$0xff] }
 0xae7   : > { %v22911_v55 = vld [vmem:[#allocation115_spill] sm:$0xff] }
 0xae8   : > { %11367 = vmatmul.mubr.f32.vlgmr.msra.gmra.mrb[12].mxu0 %v21020_v50  ;;  %12222 = vmatmul.mubr.f32.vlgmr.msra.gmra.mrb[12].mxu1 %v21020_v50  ;;  %v22913_v50 = vld [vmem:[#allocation117_spill] sm:$0xff] }
 0xae9   : > { %16934 = vmatpush1.bf16.msra.mxu0 %v22905_v5  ;;  %17126 = vmatpush1.bf16.msra.mxu1 %v22906_v60  ;;  %v22914_v5 = vld [vmem:[#allocation118_spill] sm:$0xff]  ;;  %v22915_v60 = vld [vmem:[#allocation119_spill] sm:$0xff] }
 0xaea   : > { %16936 = vmatprep.subr.bf16.mxu0 %v22907_v57  ;;  %17128 = vmatprep.subr.bf16.mxu1 %v22908_v12  ;;  %v22916_v57 = vld [vmem:[#allocation120_spill] sm:$0xff]  ;;  %v22917_v12 = vld [vmem:[#allocation121_spill] sm:$0xff] }
 0xaeb   : > { %11533 = vmatprep.mubr.f32.mxu0 %v22097_v1  ;;  %12388 = vmatprep.mubr.f32.mxu1 %v22097_v1 }
 0xaed   : > { %16938 = vmatpush1.bf16.msra.mxu0 %v22909_v46  ;;  %17130 = vmatpush1.bf16.msra.mxu1 %v22910_v39  ;;  %v22920_v46 = vld [vmem:[#allocation86_spill] sm:$0xff] }
 0xaee   : > { %16940 = vmatprep.subr.bf16.mxu0 %v22911_v55  ;;  %17132 = vmatprep.subr.bf16.mxu1 %v22912_v19  ;;  %v22921_v39 = vld [vmem:[#allocation22_spill] sm:$0xff]  ;;  %v22922_v55 = vld [vmem:[#allocation24_spill] sm:$0xff]  ;;  %v22923_v19 = vld [vmem:[#allocation25_spill] sm:$0xff] }
 0xaf1   : > { %16942 = vmatpush1.bf16.msra.mxu0 %v22913_v50  ;;  %17134 = vmatpush1.bf16.msra.mxu1 %v22914_v5  ;;  %v22924_v50 = vld [vmem:[#allocation26_spill] sm:$0xff]  ;;  %v22925_v5 = vld [vmem:[#allocation29_spill] sm:$0xff] }
 0xaf2   : > { %16944 = vmatprep.subr.bf16.mxu0 %v22915_v60  ;;  %17136 = vmatprep.subr.bf16.mxu1 %v22916_v57  ;;  %v22926_v60 = vld [vmem:[#allocation30_spill] sm:$0xff]  ;;  %v22927_v57 = vld [vmem:[#allocation31_spill] sm:$0xff] }
 0xaf5   : > { %16946 = vmatpush1.bf16.msra.mxu0 %v22917_v12  ;;  %17138 = vmatpush1.bf16.msra.mxu1 %v22918_v54  ;;  %v22928_v12 = vld [vmem:[#allocation33_spill] sm:$0xff]  ;;  %v22929_v54 = vld [vmem:[#allocation35_spill] sm:$0xff] }
 0xaf6   : > { %16948 = vmatprep.subr.bf16.mxu0 %v22919_v16  ;;  %17140 = vmatprep.subr.bf16.mxu1 %v22920_v46  ;;  %v22930_v16 = vld [vmem:[#allocation37_spill] sm:$0xff]  ;;  %v22931_v46 = vld [vmem:[#allocation43_spill] sm:$0xff] }
 0xaf9   : > { %16950 = vmatpush1.bf16.msra.mxu0 %v22921_v39  ;;  %17142 = vmatpush1.bf16.msra.mxu1 %v22922_v55  ;;  %v22932_v39 = vld [vmem:[#allocation91_spill] sm:$0xff]  ;;  %v22933_v55 = vld [vmem:[#allocation46_spill] sm:$0xff] }
 0xafa   : > { %16952 = vmatprep.subr.bf16.mxu0 %v22923_v19  ;;  %17144 = vmatprep.subr.bf16.mxu1 %v22924_v50  ;;  %v22934_v19 = vld [vmem:[#allocation94_spill] sm:$0xff] }
 0xafd   : > { %16954 = vmatpush1.bf16.msra.mxu0 %v22925_v5  ;;  %17146 = vmatpush1.bf16.msra.mxu1 %v22926_v60 }
 0xafe   : > { %16956 = vmatprep.subr.bf16.mxu0 %v22927_v57  ;;  %17148 = vmatprep.subr.bf16.mxu1 %v22928_v12 }
 0xb01   : > { %16958 = vmatpush1.bf16.msra.mxu0 %v22929_v54  ;;  %17150 = vmatpush1.bf16.msra.mxu1 %v22930_v16 }
 0xb02   : > { %16960 = vmatprep.subr.bf16.mxu0 %v22931_v46  ;;  %17152 = vmatprep.subr.bf16.mxu1 %v22932_v39  ;;  %v14476_v39 = vld [vmem:[%s18037_s25 + $0xc8] sm:$0xff] }
 0xb05   : > { %16962 = vmatpush1.bf16.msra.mxu0 %v22933_v55  ;;  %17154 = vmatpush1.bf16.msra.mxu1 %v22934_v19  ;;  %v22936_v19 = vld [vmem:[#allocation67_spill] sm:$0xff]  ;;  %v14475_v55 = vld [vmem:[%s18037_s25 + $0xc0] sm:$0xff] }
 0xb06   : > { %16964 = vmatprep.subr.bf16.mxu0 %v22345_v21  ;;  %17156 = vmatprep.subr.bf16.mxu1 %v22348_v23 }
 0xb08   : > { %11535 = vmatmul.mubr.f32.vlgmr.msra.gmra.mrb[12].mxu0 %v21014_v62  ;;  %12390 = vmatmul.mubr.f32.vlgmr.msra.gmra.mrb[12].mxu1 %v21014_v62 }
 0xb09   : > { %16966 = vmatpush1.bf16.msra.mxu0 %v22347_v29  ;;  %17158 = vmatpush1.bf16.msra.mxu1 %v22350_v49 }
 0xb0a   : > { %16968 = vmatprep.subr.bf16.mxu0 %v22349_v3  ;;  %17160 = vmatprep.subr.bf16.mxu1 %v22352_v24 }
 0xb0b   : > { %11637 = vmatprep.mubr.f32.mxu0 %v22097_v1  ;;  %12492 = vmatprep.mubr.f32.mxu1 %v22097_v1 }
 0xb0d   : > { %16970 = vmatpush1.bf16.msra.mxu0 %v22351_v10  ;;  %17162 = vmatpush1.bf16.msra.mxu1 %v22354_v44 }
 0xb0e   : > { %16972 = vmatprep.subr.bf16.mxu0 %v22353_v30  ;;  %17164 = vmatprep.subr.bf16.mxu1 %v22356_v37 }
 0xb11   : > { %16974 = vmatpush1.bf16.msra.mxu0 %v22355_v13  ;;  %17166 = vmatpush1.bf16.msra.mxu1 %v22358_v36 }
 0xb12   : > { %16976 = vmatprep.subr.bf16.mxu0 %v22357_v56  ;;  %17168 = vmatprep.subr.bf16.mxu1 %v22360_v51 }
 0xb15   : > { %16978 = vmatpush1.bf16.msra.mxu0 %v22359_v33  ;;  %17170 = vmatpush1.bf16.msra.mxu1 %v22362_v63 }
 0xb16   : > { %16980 = vmatprep.subr.bf16.mxu0 %v22361_v42  ;;  %17172 = vmatprep.subr.bf16.mxu1 %v22364_v43 }
 0xb19   : > { %16982 = vmatpush1.bf16.msra.mxu0 %v22363_v52  ;;  %17174 = vmatpush1.bf16.msra.mxu1 %v22366_v17 }
 0xb1a   : > { %16984 = vmatprep.subr.bf16.mxu0 %v22365_v26  ;;  %17176 = vmatprep.subr.bf16.mxu1 %v22368_v4 }
 0xb1d   : > { %16986 = vmatpush1.bf16.msra.mxu0 %v22367_v28  ;;  %17178 = vmatpush1.bf16.msra.mxu1 %v22370_v58 }
 0xb1e   : > { %16988 = vmatprep.subr.bf16.mxu0 %v22369_v15  ;;  %17180 = vmatprep.subr.bf16.mxu1 %v22896_v34 }
 0xb21   : > { %16990 = vmatpush1.bf16.msra.mxu0 %v22897_v61  ;;  %17182 = vmatpush1.bf16.msra.mxu1 %v22898_v2 }
 0xb22   : > { %16992 = vmatprep.subr.bf16.mxu0 %v22899_v11  ;;  %17184 = vmatprep.subr.bf16.mxu1 %v22900_v0 }
 0xb25   : > { %16994 = vmatpush1.bf16.msra.mxu0 %v22901_v14  ;;  %17186 = vmatpush1.bf16.msra.mxu1 %v22902_v22 }
 0xb26   : > { %17188 = vmatprep.subr.bf16.mxu0 %v22345_v21  ;;  %17380 = vmatprep.subr.bf16.mxu1 %v22348_v23 }
 0xb28   : > { %11639 = vmatmul.mubr.f32.vlgmr.msra.gmra.mrb[12].mxu0 %v21014_v62  ;;  %12494 = vmatmul.mubr.f32.vlgmr.msra.gmra.mrb[12].mxu1 %v21014_v62  ;;  %v22935_v62 = vld [vmem:[#allocation66_spill] sm:$0xff] }
 0xb29   : > { %17190 = vmatpush1.bf16.msra.mxu0 %v22347_v29  ;;  %17382 = vmatpush1.bf16.msra.mxu1 %v22350_v49 }
 0xb2a   : > { %17192 = vmatprep.subr.bf16.mxu0 %v22349_v3  ;;  %17384 = vmatprep.subr.bf16.mxu1 %v22352_v24 }
 0xb2b   : > { %12631 = vmatprep.mubr.f32.mxu0 %v22097_v1  ;;  %13486 = vmatprep.mubr.f32.mxu1 %v22097_v1 }
 0xb2d   : > { %17194 = vmatpush1.bf16.msra.mxu0 %v22351_v10  ;;  %17386 = vmatpush1.bf16.msra.mxu1 %v22354_v44 }
 0xb2e   : > { %17196 = vmatprep.subr.bf16.mxu0 %v22353_v30  ;;  %17388 = vmatprep.subr.bf16.mxu1 %v22356_v37 }
 0xb31   : > { %17198 = vmatpush1.bf16.msra.mxu0 %v22355_v13  ;;  %17390 = vmatpush1.bf16.msra.mxu1 %v22358_v36 }
 0xb32   : > { %17200 = vmatprep.subr.bf16.mxu0 %v22357_v56  ;;  %17392 = vmatprep.subr.bf16.mxu1 %v22360_v51 }
 0xb35   : > { %17202 = vmatpush1.bf16.msra.mxu0 %v22359_v33  ;;  %17394 = vmatpush1.bf16.msra.mxu1 %v22362_v63 }
 0xb36   : > { %17204 = vmatprep.subr.bf16.mxu0 %v22361_v42  ;;  %17396 = vmatprep.subr.bf16.mxu1 %v22364_v43 }
 0xb39   : > { %17206 = vmatpush1.bf16.msra.mxu0 %v22363_v52  ;;  %17398 = vmatpush1.bf16.msra.mxu1 %v22366_v17 }
 0xb3a   : > { %17208 = vmatprep.subr.bf16.mxu0 %v22365_v26  ;;  %17400 = vmatprep.subr.bf16.mxu1 %v22368_v4 }
 0xb3d   : > { %17210 = vmatpush1.bf16.msra.mxu0 %v22367_v28  ;;  %17402 = vmatpush1.bf16.msra.mxu1 %v22370_v58 }
 0xb3e   : > { %17212 = vmatprep.subr.bf16.mxu0 %v22369_v15  ;;  %17404 = vmatprep.subr.bf16.mxu1 %v22896_v34 }
 0xb41   : > { %17214 = vmatpush1.bf16.msra.mxu0 %v22897_v61  ;;  %17406 = vmatpush1.bf16.msra.mxu1 %v22898_v2 }
 0xb42   : > { %17216 = vmatprep.subr.bf16.mxu0 %v22899_v11  ;;  %17408 = vmatprep.subr.bf16.mxu1 %v22900_v0  ;;  %v14478_v0 = vld [vmem:[%s18037_s25 + $0xd8] sm:$0xff] }
 0xb45   : > { %17218 = vmatpush1.bf16.msra.mxu0 %v22901_v14  ;;  %17410 = vmatpush1.bf16.msra.mxu1 %v22902_v22  ;;  %v14477_v22 = vld [vmem:[%s18037_s25 + $0xd0] sm:$0xff] }
 0xb46   : > { %17220 = vmatprep.subr.bf16.mxu0 %v22935_v62  ;;  %17412 = vmatprep.subr.bf16.mxu1 %v22936_v19 }
 0xbfb   : > { %v11640_v46 = vpop.f32.mrb[12].mxu0  ;;  %v12495_v16 = vpop.f32.mrb[12].mxu1 }
 0xbfc   : > { %v12500_v54 = vadd.f32 %v14475_v55, %v11640_v46  ;;  %v11642_v12 = vpop.f32.mrb[13].mxu0  ;;  %v12497_v57 = vpop.f32.mrb[13].mxu1  ;;  %v12502_v62 = vadd.f32 %v14477_v22, %v12495_v16 }
 0xbfd   : > { %v12501_v60 = vadd.f32 %v14476_v39, %v11642_v12  ;;  %v12503_v14 = vadd.f32 %v14478_v0, %v12497_v57 }
 0xbfe   : > { %v14479_v5 = vmul.f32 -1.442695, %v12500_v54 }
 0xbff   : > { %v14480_v50 = vmul.f32 -1.442695, %v12501_v60  ;;  %v14481_v11 = vmul.f32 -1.442695, %v12503_v14 }
 0xc00   : > { %17867 = vpow2.f32 %v14479_v5 }
 0xc01   : > { %17869 = vpow2.f32 %v14480_v50  ;;  %v22956_v50 = vld [vmem:[#allocation103_spill] sm:$0xff] }
 0xc02   : > { %17871 = vpow2.f32 %v14481_v11 }
 0xc03   : > { %17873 = vtanh.f32 %v12502_v62  ;;  %v22957_v62 = vld [vmem:[#allocation104_spill] sm:$0xff] }
 0xc0a   : > { %v17868_v2 = vpop.eup %17867 }
 0xc0b   : > { %v17870_v61 = vpop.eup %17869  ;;  %v12507_v19 = vadd.f32 1.0, %v17868_v2 }
 0xc0c   : > { %v12513_v34 = vadd.f32 1.0, %v17870_v61  ;;  %v17872_v46 = vpop.eup %17871 }
 0xc0d   : > { %17875 = vrcp.f32 %v12507_v19  ;;  %v17874_v12 = vpop.eup %17873  ;;  %v12520_v60 = vadd.f32 1.0, %v17872_v46  ;;  %v22958_v19 = vld [vmem:[#allocation105_spill] sm:$0xff]  ;;  %v22959_v46 = vld [vmem:[#allocation106_spill] sm:$0xff] }
 0xc0e   : > { %17877 = vrcp.f32 %v12513_v34  ;;  %v22955_v34 = vld [vmem:[#allocation102_spill] sm:$0xff] }
 0xc0f   : > { %17879 = vrcp.f32 %v12520_v60  ;;  %v22964_v60 = vld [vmem:[#allocation123_spill] sm:$0xff] }
 0xc17   : > { %v17876_v54 = vpop.eup %17875 }
 0xc18   : > { %v17878_v55 = vpop.eup %17877  ;;  %v12524_v39 = vmul.f32 %v17876_v54, %v17874_v12  ;;  %v22960_v12 = vld [vmem:[#allocation108_spill] sm:$0xff]  ;;  %v22961_v54 = vld [vmem:[#allocation111_spill] sm:$0xff] }
 0xc19   : > { %v12523_v57 = vmul.f32 %v17878_v55, %v21010_v9  ;;  %v17880_v16 = vpop.eup %17879  ;;  %v22962_v55 = vld [vmem:[#allocation112_spill] sm:$0xff] }
 0xc1b   : > { %v21243_v0 = vadd.f32 %v12524_v39, %v12523_v57  ;;  %v22963_v39 = vld [vmem:[#allocation113_spill] sm:$0xff]  ;;  %v22965_v57 = vld [vmem:[#allocation114_spill] sm:$0xff] }
 0xc1d   : > { %17881 = vtanh.f32 %v21243_v0 }
 0xc27   : > { %v17882_v14 = vpop.eup %17881 }
 0xc28   : > { %v12527_v22 = vmul.f32 %v17882_v14, %v17880_v16  ;;  %v22966_v16 = vld [vmem:[#allocation125_spill] sm:$0xff]  ;;  %v22967_v14 = vld [vmem:[#allocation124_spill] sm:$0xff] }
 0xc2a   : > { %14482 = vst [vmem:[%s18042_s28 + $0x30] sm:$0xff] %v12527_v22  ;;  %v21247_v61 = vand.u32 4294901760, %v12527_v22 }
 0xc2c   : > { %v21250_v11 = vsub.f32 %v12527_v22, %v21247_v61  ;;  %v22968_v22 = vld [vmem:[#allocation127_spill] sm:$0xff] }
 0xc2e   : > { %v21253_v2 = vand.u32 4294901760, %v21250_v11 }
 0xc30   : > { %v12635_v9 = vsub.f32 %v21250_v11, %v21253_v2 }
 0xc32   : > { %v12636_v5 = vand.u32 4294901760, %v12635_v9  ;;  %v22969_v9 = vld [vmem:[#allocation126_spill] sm:$0xff] }
 0xc34   : > { %12637 = vmatmul.mubr.f32.vlgmr.msra.gmra.mrb[14].mxu0 %v12636_v5  ;;  %13492 = vmatmul.mubr.f32.vlgmr.msra.gmra.mrb[14].mxu1 %v12636_v5  ;;  %v22970_v5 = vld [vmem:[#allocation129_spill] sm:$0xff] }
 0xc35   : > { %17222 = vmatpush1.bf16.msra.mxu0 %v22428_v53  ;;  %17414 = vmatpush1.bf16.msra.mxu1 %v22429_v20  ;;  %v22937_v53 = vld [vmem:[#allocation39_spill] sm:$0xff]  ;;  %v22938_v20 = vld [vmem:[#allocation42_spill] sm:$0xff] }
 0xc36   : > { %17224 = vmatprep.subr.bf16.mxu0 %v22430_v59  ;;  %17416 = vmatprep.subr.bf16.mxu1 %v22431_v38  ;;  %v22939_v59 = vld [vmem:[#allocation45_spill] sm:$0xff]  ;;  %v22940_v38 = vld [vmem:[#allocation92_spill] sm:$0xff] }
 0xc37   : > { %12867 = vmatprep.mubr.f32.mxu0 %v22097_v1  ;;  %13722 = vmatprep.mubr.f32.mxu1 %v22097_v1 }
 0xc39   : > { %17226 = vmatpush1.bf16.msra.mxu0 %v22512_v8  ;;  %17418 = vmatpush1.bf16.msra.mxu1 %v22513_v31  ;;  %v22941_v8 = vld [vmem:[#allocation93_spill] sm:$0xff]  ;;  %v22942_v31 = vld [vmem:[#allocation48_spill] sm:$0xff] }
 0xc3a   : > { %17228 = vmatprep.subr.bf16.mxu0 %v22514_v35  ;;  %17420 = vmatprep.subr.bf16.mxu1 %v22515_v7  ;;  %v22943_v35 = vld [vmem:[#allocation95_spill] sm:$0xff]  ;;  %v22944_v7 = vld [vmem:[#allocation52_spill] sm:$0xff] }
 0xc3d   : > { %17230 = vmatpush1.bf16.msra.mxu0 %v22516_v48  ;;  %17422 = vmatpush1.bf16.msra.mxu1 %v22597_v40  ;;  %v22945_v48 = vld [vmem:[#allocation96_spill] sm:$0xff]  ;;  %v22948_v40 = vld [vmem:[#allocation62_spill] sm:$0xff] }
 0xc3e   : > { %17232 = vmatprep.subr.bf16.mxu0 %v22518_v25  ;;  %17424 = vmatprep.subr.bf16.mxu1 %v22519_v27  ;;  %v22946_v25 = vld [vmem:[#allocation97_spill] sm:$0xff]  ;;  %v22947_v27 = vld [vmem:[#allocation100_spill] sm:$0xff] }
 0xc41   : > { %17234 = vmatpush1.bf16.msra.mxu0 %v22598_v18  ;;  %17426 = vmatpush1.bf16.msra.mxu1 %v22599_v6  ;;  %v22949_v18 = vld [vmem:[#allocation98_spill] sm:$0xff]  ;;  %v22950_v6 = vld [vmem:[#allocation60_spill] sm:$0xff] }
 0xc42   : > { %17236 = vmatprep.subr.bf16.mxu0 %v22600_v41  ;;  %17428 = vmatprep.subr.bf16.mxu1 %v22601_v32  ;;  %v22951_v41 = vld [vmem:[#allocation107_spill] sm:$0xff]  ;;  %v22952_v32 = vld [vmem:[#allocation109_spill] sm:$0xff] }
 0xc45   : > { %17238 = vmatpush1.bf16.msra.mxu0 %v22602_v47  ;;  %17430 = vmatpush1.bf16.msra.mxu1 %v22603_v45  ;;  %v22953_v47 = vld [vmem:[#allocation99_spill] sm:$0xff]  ;;  %v22954_v45 = vld [vmem:[#allocation101_spill] sm:$0xff] }
 0xc46   : > { %17240 = vmatprep.subr.bf16.mxu0 %v22937_v53  ;;  %17432 = vmatprep.subr.bf16.mxu1 %v22938_v20  ;;  %v22971_v53 = vld [vmem:[#allocation128_spill] sm:$0xff]  ;;  %v22972_v20 = vld [vmem:[#allocation131_spill] sm:$0xff] }
 0xc49   : > { %17242 = vmatpush1.bf16.msra.mxu0 %v22939_v59  ;;  %17434 = vmatpush1.bf16.msra.mxu1 %v22940_v38  ;;  %v22973_v59 = vld [vmem:[#allocation130_spill] sm:$0xff]  ;;  %v22974_v38 = vld [vmem:[#allocation133_spill] sm:$0xff] }
 0xc4a   : > { %17244 = vmatprep.subr.bf16.mxu0 %v22941_v8  ;;  %17436 = vmatprep.subr.bf16.mxu1 %v22942_v31  ;;  %v22975_v8 = vld [vmem:[#allocation132_spill] sm:$0xff]  ;;  %v22976_v31 = vld [vmem:[#allocation135_spill] sm:$0xff] }
 0xc4d   : > { %17246 = vmatpush1.bf16.msra.mxu0 %v22943_v35  ;;  %17438 = vmatpush1.bf16.msra.mxu1 %v22944_v7  ;;  %v22977_v35 = vld [vmem:[#allocation134_spill] sm:$0xff]  ;;  %v22978_v7 = vld [vmem:[#allocation137_spill] sm:$0xff] }
 0xc4e   : > { %17248 = vmatprep.subr.bf16.mxu0 %v22945_v48  ;;  %17440 = vmatprep.subr.bf16.mxu1 %v22946_v25  ;;  %v22979_v48 = vld [vmem:[#allocation136_spill] sm:$0xff]  ;;  %v22980_v25 = vld [vmem:[#allocation110_spill] sm:$0xff] }
 0xc51   : > { %17250 = vmatpush1.bf16.msra.mxu0 %v22947_v27  ;;  %17442 = vmatpush1.bf16.msra.mxu1 %v22948_v40  ;;  %v22982_v27 = vld [vmem:[#allocation55_spill] sm:$0xff]  ;;  %v22983_v40 = vld [vmem:[#allocation56_spill] sm:$0xff] }
 0xc52   : > { %17252 = vmatprep.subr.bf16.mxu0 %v22949_v18  ;;  %17444 = vmatprep.subr.bf16.mxu1 %v22950_v6  ;;  %v22984_v18 = vld [vmem:[#allocation57_spill] sm:$0xff]  ;;  %v22985_v6 = vld [vmem:[#allocation58_spill] sm:$0xff] }
 0xc54   : > { %12869 = vmatmul.mubr.f32.vlgmr.msra.gmra.mrb[14].mxu0 %v21247_v61  ;;  %13724 = vmatmul.mubr.f32.vlgmr.msra.gmra.mrb[14].mxu1 %v21247_v61 }
 0xc55   : > { %17254 = vmatpush1.bf16.msra.mxu0 %v22951_v41  ;;  %17446 = vmatpush1.bf16.msra.mxu1 %v22952_v32  ;;  %v22986_v41 = vld [vmem:[#allocation59_spill] sm:$0xff]  ;;  %v22987_v32 = vld [vmem:[#allocation61_spill] sm:$0xff] }
 0xc56   : > { %17256 = vmatprep.subr.bf16.mxu0 %v22953_v47  ;;  %17448 = vmatprep.subr.bf16.mxu1 %v22954_v45  ;;  %v22988_v47 = vld [vmem:[#allocation10_spill] sm:$0xff]  ;;  %v22989_v45 = vld [vmem:[#allocation12_spill] sm:$0xff] }
 0xc57   : > { %13003 = vmatprep.mubr.f32.mxu0 %v22097_v1  ;;  %13858 = vmatprep.mubr.f32.mxu1 %v22097_v1 }
 0xc59   : > { %17258 = vmatpush1.bf16.msra.mxu0 %v22955_v34  ;;  %17450 = vmatpush1.bf16.msra.mxu1 %v22956_v50  ;;  %v22990_v34 = vld [vmem:[#allocation64_spill] sm:$0xff]  ;;  %v22991_v50 = vld [vmem:[#allocation14_spill] sm:$0xff] }
 0xc5a   : > { %17260 = vmatprep.subr.bf16.mxu0 %v22957_v62  ;;  %17452 = vmatprep.subr.bf16.mxu1 %v22958_v19  ;;  %v22992_v62 = vld [vmem:[#allocation11_spill] sm:$0xff]  ;;  %v22993_v19 = vld [vmem:[#allocation16_spill] sm:$0xff] }
 0xc5d   : > { %17262 = vmatpush1.bf16.msra.mxu0 %v22959_v46  ;;  %17454 = vmatpush1.bf16.msra.mxu1 %v22960_v12  ;;  %v22994_v46 = vld [vmem:[#allocation13_spill] sm:$0xff]  ;;  %v22995_v12 = vld [vmem:[#allocation15_spill] sm:$0xff] }
 0xc5e   : > { %17264 = vmatprep.subr.bf16.mxu0 %v22961_v54  ;;  %17456 = vmatprep.subr.bf16.mxu1 %v22962_v55  ;;  %v22996_v54 = vld [vmem:[#allocation115_spill] sm:$0xff]  ;;  %v22997_v55 = vld [vmem:[#allocation116_spill] sm:$0xff] }
 0xc61   : > { %17266 = vmatpush1.bf16.msra.mxu0 %v22963_v39  ;;  %17458 = vmatpush1.bf16.msra.mxu1 %v22964_v60  ;;  %v22999_v39 = vld [vmem:[#allocation118_spill] sm:$0xff]  ;;  %v23000_v60 = vld [vmem:[#allocation119_spill] sm:$0xff] }
 0xc62   : > { %17268 = vmatprep.subr.bf16.mxu0 %v22965_v57  ;;  %17460 = vmatprep.subr.bf16.mxu1 %v22966_v16  ;;  %v23001_v57 = vld [vmem:[#allocation120_spill] sm:$0xff]  ;;  %v23002_v16 = vld [vmem:[#allocation121_spill] sm:$0xff] }
 0xc65   : > { %17270 = vmatpush1.bf16.msra.mxu0 %v22967_v14  ;;  %17462 = vmatpush1.bf16.msra.mxu1 %v22968_v22  ;;  %v23003_v14 = vld [vmem:[#allocation83_spill] sm:$0xff]  ;;  %v23004_v22 = vld [vmem:[#allocation122_spill] sm:$0xff] }
 0xc66   : > { %17272 = vmatprep.subr.bf16.mxu0 %v22969_v9  ;;  %17464 = vmatprep.subr.bf16.mxu1 %v22970_v5  ;;  %v23005_v9 = vld [vmem:[#allocation86_spill] sm:$0xff] }
 0xc67   : > { %v23006_v5 = vld [vmem:[#allocation22_spill] sm:$0xff] }
 0xc69   : > { %17274 = vmatpush1.bf16.msra.mxu0 %v22971_v53  ;;  %17466 = vmatpush1.bf16.msra.mxu1 %v22972_v20  ;;  %v23007_v53 = vld [vmem:[#allocation24_spill] sm:$0xff]  ;;  %v23008_v20 = vld [vmem:[#allocation25_spill] sm:$0xff] }
 0xc6a   : > { %17276 = vmatprep.subr.bf16.mxu0 %v22973_v59  ;;  %17468 = vmatprep.subr.bf16.mxu1 %v22974_v38  ;;  %v23009_v59 = vld [vmem:[#allocation26_spill] sm:$0xff]  ;;  %v23010_v38 = vld [vmem:[#allocation29_spill] sm:$0xff] }
 0xc6d   : > { %17278 = vmatpush1.bf16.msra.mxu0 %v22975_v8  ;;  %17470 = vmatpush1.bf16.msra.mxu1 %v22976_v31  ;;  %v23011_v8 = vld [vmem:[#allocation30_spill] sm:$0xff]  ;;  %v23012_v31 = vld [vmem:[#allocation31_spill] sm:$0xff] }
 0xc6e   : > { %17280 = vmatprep.subr.bf16.mxu0 %v22977_v35  ;;  %17472 = vmatprep.subr.bf16.mxu1 %v22978_v7  ;;  %v23013_v35 = vld [vmem:[#allocation33_spill] sm:$0xff]  ;;  %v23014_v7 = vld [vmem:[#allocation35_spill] sm:$0xff] }
 0xc71   : > { %17282 = vmatpush1.bf16.msra.mxu0 %v22979_v48  ;;  %17474 = vmatpush1.bf16.msra.mxu1 %v22980_v25  ;;  %v23015_v48 = vld [vmem:[#allocation37_spill] sm:$0xff]  ;;  %v23016_v25 = vld [vmem:[#allocation43_spill] sm:$0xff] }
 0xc72   : > { %17284 = vmatprep.subr.bf16.mxu0 %v22345_v21  ;;  %17476 = vmatprep.subr.bf16.mxu1 %v22348_v23 }
 0xc74   : > { %13006 = vmatmul.mubr.f32.vlgmr.msra.gmra.mrb[14].mxu0 %v21250_v11  ;;  %13861 = vmatmul.mubr.f32.vlgmr.msra.gmra.mrb[14].mxu1 %v21250_v11  ;;  %v22981_v11 = vld [vmem:[#allocation54_spill] sm:$0xff] }
 0xc75   : > { %17286 = vmatpush1.bf16.msra.mxu0 %v22347_v29  ;;  %17478 = vmatpush1.bf16.msra.mxu1 %v22350_v49 }
 0xc76   : > { %17288 = vmatprep.subr.bf16.mxu0 %v22349_v3  ;;  %17480 = vmatprep.subr.bf16.mxu1 %v22352_v24 }
 0xc77   : > { %13108 = vmatprep.mubr.f32.mxu0 %v22097_v1  ;;  %13963 = vmatprep.mubr.f32.mxu1 %v22097_v1 }
 0xc79   : > { %17290 = vmatpush1.bf16.msra.mxu0 %v22351_v10  ;;  %17482 = vmatpush1.bf16.msra.mxu1 %v22354_v44 }
 0xc7a   : > { %17292 = vmatprep.subr.bf16.mxu0 %v22353_v30  ;;  %17484 = vmatprep.subr.bf16.mxu1 %v22356_v37 }
 0xc7d   : > { %17294 = vmatpush1.bf16.msra.mxu0 %v22355_v13  ;;  %17486 = vmatpush1.bf16.msra.mxu1 %v22358_v36 }
 0xc7e   : > { %17296 = vmatprep.subr.bf16.mxu0 %v22357_v56  ;;  %17488 = vmatprep.subr.bf16.mxu1 %v22360_v51 }
 0xc81   : > { %17298 = vmatpush1.bf16.msra.mxu0 %v22359_v33  ;;  %17490 = vmatpush1.bf16.msra.mxu1 %v22362_v63 }
 0xc82   : > { %17300 = vmatprep.subr.bf16.mxu0 %v22361_v42  ;;  %17492 = vmatprep.subr.bf16.mxu1 %v22364_v43 }
 0xc85   : > { %17302 = vmatpush1.bf16.msra.mxu0 %v22363_v52  ;;  %17494 = vmatpush1.bf16.msra.mxu1 %v22366_v17 }
 0xc86   : > { %17304 = vmatprep.subr.bf16.mxu0 %v22365_v26  ;;  %17496 = vmatprep.subr.bf16.mxu1 %v22368_v4 }
 0xc89   : > { %17306 = vmatpush1.bf16.msra.mxu0 %v22367_v28  ;;  %17498 = vmatpush1.bf16.msra.mxu1 %v22370_v58 }
 0xc8a   : > { %17308 = vmatprep.subr.bf16.mxu0 %v22369_v15  ;;  %17500 = vmatprep.subr.bf16.mxu1 %v22981_v11 }
 0xc8d   : > { %17310 = vmatpush1.bf16.msra.mxu0 %v22982_v27  ;;  %17502 = vmatpush1.bf16.msra.mxu1 %v22983_v40 }
 0xc8e   : > { %17312 = vmatprep.subr.bf16.mxu0 %v22984_v18  ;;  %17504 = vmatprep.subr.bf16.mxu1 %v22985_v6 }
 0xc91   : > { %17314 = vmatpush1.bf16.msra.mxu0 %v22986_v41  ;;  %17506 = vmatpush1.bf16.msra.mxu1 %v22987_v32 }
 0xc92   : > { %17316 = vmatprep.subr.bf16.mxu0 %v22988_v47  ;;  %17508 = vmatprep.subr.bf16.mxu1 %v22989_v45  ;;  %v23017_v47 = vld [vmem:[#allocation91_spill] sm:$0xff]  ;;  %v23018_v45 = vld [vmem:[#allocation46_spill] sm:$0xff] }
 0xc94   : > { %13112 = vmatmul.mubr.f32.vlgmr.msra.gmra.mrb[14].mxu0 %v21253_v2  ;;  %13967 = vmatmul.mubr.f32.vlgmr.msra.gmra.mrb[14].mxu1 %v21253_v2  ;;  %v22998_v2 = vld [vmem:[#allocation117_spill] sm:$0xff] }
 0xc95   : > { %17318 = vmatpush1.bf16.msra.mxu0 %v22990_v34  ;;  %17510 = vmatpush1.bf16.msra.mxu1 %v22991_v50  ;;  %v23019_v34 = vld [vmem:[#allocation94_spill] sm:$0xff] }
 0xc96   : > { %17320 = vmatprep.subr.bf16.mxu0 %v22992_v62  ;;  %17512 = vmatprep.subr.bf16.mxu1 %v22993_v19 }
 0xc97   : > { %13278 = vmatprep.mubr.f32.mxu0 %v22097_v1  ;;  %14133 = vmatprep.mubr.f32.mxu1 %v22097_v1 }
 0xc99   : > { %17322 = vmatpush1.bf16.msra.mxu0 %v22994_v46  ;;  %17514 = vmatpush1.bf16.msra.mxu1 %v22995_v12 }
 0xc9a   : > { %17324 = vmatprep.subr.bf16.mxu0 %v22996_v54  ;;  %17516 = vmatprep.subr.bf16.mxu1 %v22997_v55 }
 0xc9d   : > { %17326 = vmatpush1.bf16.msra.mxu0 %v22998_v2  ;;  %17518 = vmatpush1.bf16.msra.mxu1 %v22999_v39 }
 0xc9e   : > { %17328 = vmatprep.subr.bf16.mxu0 %v23000_v60  ;;  %17520 = vmatprep.subr.bf16.mxu1 %v23001_v57 }
 0xca1   : > { %17330 = vmatpush1.bf16.msra.mxu0 %v23002_v16  ;;  %17522 = vmatpush1.bf16.msra.mxu1 %v23003_v14 }
 0xca2   : > { %17332 = vmatprep.subr.bf16.mxu0 %v23004_v22  ;;  %17524 = vmatprep.subr.bf16.mxu1 %v23005_v9 }
 0xca5   : > { %17334 = vmatpush1.bf16.msra.mxu0 %v23006_v5  ;;  %17526 = vmatpush1.bf16.msra.mxu1 %v23007_v53 }
 0xca6   : > { %17336 = vmatprep.subr.bf16.mxu0 %v23008_v20  ;;  %17528 = vmatprep.subr.bf16.mxu1 %v23009_v59 }
 0xca9   : > { %17338 = vmatpush1.bf16.msra.mxu0 %v23010_v38  ;;  %17530 = vmatpush1.bf16.msra.mxu1 %v23011_v8 }
 0xcaa   : > { %17340 = vmatprep.subr.bf16.mxu0 %v23012_v31  ;;  %17532 = vmatprep.subr.bf16.mxu1 %v23013_v35 }
 0xcad   : > { %17342 = vmatpush1.bf16.msra.mxu0 %v23014_v7  ;;  %17534 = vmatpush1.bf16.msra.mxu1 %v23015_v48 }
 0xcae   : > { %17344 = vmatprep.subr.bf16.mxu0 %v23016_v25  ;;  %17536 = vmatprep.subr.bf16.mxu1 %v23017_v47 }
 0xcb1   : > { %17346 = vmatpush1.bf16.msra.mxu0 %v23018_v45  ;;  %17538 = vmatpush1.bf16.msra.mxu1 %v23019_v34 }
 0xcb2   : > { %17348 = vmatprep.subr.bf16.mxu0 %v22345_v21  ;;  %17540 = vmatprep.subr.bf16.mxu1 %v22348_v23  ;;  %v14484_v21 = vld [vmem:[%s18037_s25 + $0xe8] sm:$0xff] }
 0xcb4   : > { %13280 = vmatmul.mubr.f32.vlgmr.msra.gmra.mrb[14].mxu0 %v21247_v61  ;;  %14135 = vmatmul.mubr.f32.vlgmr.msra.gmra.mrb[14].mxu1 %v21247_v61 }
 0xcb5   : > { %17350 = vmatpush1.bf16.msra.mxu0 %v22347_v29  ;;  %17542 = vmatpush1.bf16.msra.mxu1 %v22350_v49 }
 0xcb6   : > { %17352 = vmatprep.subr.bf16.mxu0 %v22349_v3  ;;  %17544 = vmatprep.subr.bf16.mxu1 %v22352_v24 }
 0xcb7   : > { %13382 = vmatprep.mubr.f32.mxu0 %v22097_v1  ;;  %14237 = vmatprep.mubr.f32.mxu1 %v22097_v1  ;;  %v14483_v1 = vld [vmem:[%s18037_s25 + $0xe0] sm:$0xff] }
 0xcb9   : > { %17354 = vmatpush1.bf16.msra.mxu0 %v22351_v10  ;;  %17546 = vmatpush1.bf16.msra.mxu1 %v22354_v44 }
 0xcba   : > { %17356 = vmatprep.subr.bf16.mxu0 %v22353_v30  ;;  %17548 = vmatprep.subr.bf16.mxu1 %v22356_v37 }
 0xcbd   : > { %17358 = vmatpush1.bf16.msra.mxu0 %v22355_v13  ;;  %17550 = vmatpush1.bf16.msra.mxu1 %v22358_v36  ;;  %v14486_v13 = vld [vmem:[%s18037_s25 + $0xf8] sm:$0xff] }
 0xcbe   : > { %17360 = vmatprep.subr.bf16.mxu0 %v22357_v56  ;;  %17552 = vmatprep.subr.bf16.mxu1 %v22360_v51  ;;  %v14485_v56 = vld [vmem:[%s18037_s25 + $0xf0] sm:$0xff] }
 0xcc1   : > { %17362 = vmatpush1.bf16.msra.mxu0 %v22359_v33  ;;  %17554 = vmatpush1.bf16.msra.mxu1 %v22362_v63 }
 0xcc2   : > { %17364 = vmatprep.subr.bf16.mxu0 %v22361_v42  ;;  %17556 = vmatprep.subr.bf16.mxu1 %v22364_v43 }
 0xcc5   : > { %17366 = vmatpush1.bf16.msra.mxu0 %v22363_v52  ;;  %17558 = vmatpush1.bf16.msra.mxu1 %v22366_v17 }
 0xcc6   : > { %17368 = vmatprep.subr.bf16.mxu0 %v22365_v26  ;;  %17560 = vmatprep.subr.bf16.mxu1 %v22368_v4 }
 0xcc9   : > { %17370 = vmatpush1.bf16.msra.mxu0 %v22367_v28  ;;  %17562 = vmatpush1.bf16.msra.mxu1 %v22370_v58 }
 0xcca   : > { %17372 = vmatprep.subr.bf16.mxu0 %v22369_v15  ;;  %17564 = vmatprep.subr.bf16.mxu1 %v22981_v11 }
 0xccd   : > { %17374 = vmatpush1.bf16.msra.mxu0 %v22982_v27  ;;  %17566 = vmatpush1.bf16.msra.mxu1 %v22983_v40 }
 0xcce   : > { %17376 = vmatprep.subr.bf16.mxu0 %v22984_v18  ;;  %17568 = vmatprep.subr.bf16.mxu1 %v22985_v6 }
 0xcd1   : > { %17378 = vmatpush1.bf16.msra.mxu0 %v22986_v41  ;;  %17570 = vmatpush1.bf16.msra.mxu1 %v22987_v32 }
 0xcd4   : > { %13384 = vmatmul.mubr.f32.vlgmr.msra.gmra.mrb[14].mxu0 %v21247_v61  ;;  %14239 = vmatmul.mubr.f32.vlgmr.msra.gmra.mrb[14].mxu1 %v21247_v61 }
 0xda7   : > { %v13385_v29 = vpop.f32.mrb[14].mxu0  ;;  %v14240_v23 = vpop.f32.mrb[14].mxu1 }
 0xda8   : > { %v14245_v3 = vadd.f32 %v14483_v1, %v13385_v29  ;;  %v13387_v49 = vpop.f32.mrb[15].mxu0  ;;  %v14242_v10 = vpop.f32.mrb[15].mxu1  ;;  %v14247_v33 = vadd.f32 %v14485_v56, %v14240_v23 }
 0xda9   : > { %v14246_v24 = vadd.f32 %v14484_v21, %v13387_v49  ;;  %v14248_v37 = vadd.f32 %v14486_v13, %v14242_v10 }
 0xdaa   : > { %v14487_v30 = vmul.f32 -1.442695, %v14245_v3 }
 0xdab   : > { %v14488_v44 = vmul.f32 -1.442695, %v14246_v24  ;;  %v14489_v36 = vmul.f32 -1.442695, %v14248_v37 }
 0xdac   : > { %17883 = vpow2.f32 %v14487_v30 }
 0xdad   : > { %17885 = vpow2.f32 %v14488_v44 }
 0xdae   : > { %17887 = vpow2.f32 %v14489_v36 }
 0xdaf   : > { %17889 = vtanh.f32 %v14247_v33 }
 0xdb6   : > { %v17884_v51 = vpop.eup %17883 }
 0xdb7   : > { %v17886_v42 = vpop.eup %17885  ;;  %v14252_v63 = vadd.f32 1.0, %v17884_v51 }
 0xdb8   : > { %v14258_v52 = vadd.f32 1.0, %v17886_v42  ;;  %v17888_v43 = vpop.eup %17887 }
 0xdb9   : > { %17891 = vrcp.f32 %v14252_v63  ;;  %v17890_v26 = vpop.eup %17889  ;;  %v14265_v15 = vadd.f32 1.0, %v17888_v43 }
 0xdba   : > { %17893 = vrcp.f32 %v14258_v52 }
 0xdbb   : > { %17895 = vrcp.f32 %v14265_v15 }
 0xdc3   : > { %v17892_v17 = vpop.eup %17891 }
 0xdc4   : > { %v17894_v28 = vpop.eup %17893  ;;  %v14269_v4 = vmul.f32 %v17892_v17, %v17890_v26 }
 0xdc5   : > { %v14268_v58 = vmul.f32 %v17894_v28, %v21243_v0  ;;  %v17896_v11 = vpop.eup %17895 }
 0xdc7   : > { %v14270_v61 = vadd.f32 %v14269_v4, %v14268_v58 }
 0xdc9   : > { %17897 = vtanh.f32 %v14270_v61  ;;  %14276 = vst [vmem:[#allocation3] sm:$0xff] %v14270_v61  ;;  %14282 = vst [vmem:[#allocation6] sm:$0xff] (!%p14491_p6), %v14270_v61 }
 0xdd0   : > { %14280 = sbr.rel (%p14491_p6) target bundleno = 3544 (0xdd8), region = 36 }
 0xdd3   : > { %v17898_v27 = vpop.eup %17897 }
 0xdd4   : > { %v14272_v40 = vmul.f32 %v17898_v27, %v17896_v11 }
 0xdd6   : > { %14490 = vst [vmem:[%s18042_s28 + $0x38] sm:$0xff] %v14272_v40  ;;  %14275 = vst [vmem:[#allocation2] sm:$0xff] %v14272_v40 }
 0xdd7   : > { %14281 = vst [vmem:[#allocation4] sm:$0xff] %v14272_v40 }
 0xdd8 PF: > { %p21444_p7 = scmp.eq.s32.totalorder %s14421_s18, 1  ;;  %s17985_s22 = smov [#allocation4]  }
 0xdd9   : > { %s14304_s23 = sshll.u32 %s17985_s22, 4  ;;  %s17986_s24 = smov [#allocation6]   ;;  %s14305_s23 = int_to_ptr.vmem [resolvable:$true] %s14304_s23 }
 0xdda   : > { %s14317_s26 = sshll.u32 %s17986_s24, 4  ;;  %s17899_s28 = scalar_lea.vmem %s14305_s23, 128  ;;  %s21448_s26 = int_to_ptr.vmem [resolvable:$true] %s14317_s26 }
 0xddb   : > { %p17900_p8 = scmp.ne.s32.totalorder %s14305_s23, %s17899_s28  ;;  %p17906_p11 = scmp.lt.s32.totalorder %s14305_s23, %s14305_s23 }
 0xddc   : > { %p17907_p12 = scmp.lt.s32.totalorder %s17899_s28, %s17899_s28 }
 0xddd   : > { %p17901_p9 = pnand %p17900_p8, %p21444_p7 }
 0xdde   : > { %p17908_p13 = por %p17907_p12, %p17906_p11 }
 0xddf   : > { %p17902_p10 = pneg %p17901_p9 }
 0xde1   : > { %p17909_p0 = pnand %p17908_p13, %p17902_p10 }
 0xde3   : > { %17912 = shalt.err (!%p17909_p0)
}
 0xde4   : > { %s17913_s27 = scalar_lea.hbm %s21511_s3, 128 }
 0xde5   : > { %p17914_p1 = scmp.ne.s32.totalorder %s21511_s3, %s17913_s27  ;;  %p17919_p4 = scmp.lt.u32.totalorder %s17913_s27, %s21511_s3 }
 0xde7   : > { %p17915_p2 = pnand %p17914_p1, %p21444_p7 }
 0xde9   : > { %p17916_p3 = pneg %p17915_p2 }
 0xdeb   : > { %p17921_p5 = pnand %p17919_p4, %p17916_p3 }
 0xded   : > { %17924 = shalt.err (!%p17921_p5)
}
 0xdee   : > { %17732 = dma.vmem_to_hbm [thread:$0]  (%p21444_p7), %s14305_s23, 128, %s21511_s3, [#allocation5]  }
 0xdef   : > { %s17925_s9 = scalar_lea.vmem %s21448_s26, 128  ;;  %p17932_p10 = scmp.lt.s32.totalorder %s21448_s26, %s21448_s26 }
 0xdf0   : > { %p17926_p6 = scmp.ne.s32.totalorder %s21448_s26, %s17925_s9  ;;  %p17933_p11 = scmp.lt.s32.totalorder %s17925_s9, %s17925_s9 }
 0xdf2   : > { %p17927_p8 = pnand %p17926_p6, %p21444_p7  ;;  %p17934_p12 = por %p17933_p11, %p17932_p10 }
 0xdf4   : > { %p17928_p9 = pneg %p17927_p8 }
 0xdf6   : > { %p17935_p13 = pnand %p17934_p12, %p17928_p9 }
 0xdf8   : > { %17938 = shalt.err (!%p17935_p13)
}
 0xdf9   : > { %s17939_s12 = scalar_lea.hbm %s21512_s4, 128 }
 0xdfa   : > { %p17940_p0 = scmp.ne.s32.totalorder %s21512_s4, %s17939_s12  ;;  %p17945_p3 = scmp.lt.u32.totalorder %s17939_s12, %s21512_s4 }
 0xdfc   : > { %p17941_p1 = pnand %p17940_p0, %p21444_p7 }
 0xdfe   : > { %p17942_p2 = pneg %p17941_p1 }
 0xe00   : > { %p17947_p4 = pnand %p17945_p3, %p17942_p2 }
 0xe02   : > { %17950 = shalt.err (!%p17947_p4)
}
 0xe03   : > { %17734 = dma.vmem_to_hbm [thread:$0]  (%p21444_p7), %s21448_s26, 128, %s21512_s4, [#allocation7]  }
 0xe04   : > { %17964 = dma.done.wait (%p21444_p7), [#allocation5], 128  }
 0xe05   : > { %17966 = vsyncadd (%p21444_p7), [#allocation5], 4294967168 }
 0xe06   : > { %17968 = dma.done.wait (%p21444_p7), [#allocation7], 128  }
 0xe07   : > { %17970 = vsyncadd (%p21444_p7), [#allocation7], 4294967168 }
 0xe08 PF: > { %s17_s17 = sadd.s32 1, %s17981_s17   ;;  %s23021_s15 = smov %s17977_s16 }
 0xe09   : > { %p14_p5 = scmp.ge.s32.totalorder %s17_s17, 4   ;;  %s23022_s16 = smov %s23024_s19 }
 0xe0b   :  { %16 = sbr.rel (!%p14_p5) target bundleno = 3 (0x3), region = 99 }
 0xe12   :  { %14345 = vsyncpa [#allocation5], 1 }
 0xe13   :  { %14347 = vsyncpa [#allocation5 + $0x1], 1 }
 0xe14   :  { %14348 = vsyncpa [#allocation7], 1 }

</bundles_post_ra>
